<compile_context>
chip_gen: v6e
topology: v6e:2x2x1
jax: 0.10.0
libtpu: 0.0.40
codegen_flags: <defaults>
</compile_context>

<pallas_src>
import functools

import jax
import jax.numpy as jnp
from jax import lax
from jax.experimental import pallas as pl
from jax.experimental.pallas import tpu as pltpu


def mb_deform_embedding_kernel(x_ref, dwow_ref, offw_ref, dcnw_ref, pww_ref,
                               cmask_ref, out_ref, xpf_ref, off_ref,
                               *, H, W, PAD):
    C = x_ref.shape[1]
    HW = H * W

    # Flat zero-padded input: [zeros(PAD) | x_flat | zeros(PAD)].
    # Pad strips are tiny (C x PAD); re-zero them every step so the kernel is
    # also correct when the "parallel" batch axis is split across TensorCores.
    xpf_ref[:, :PAD] = jnp.zeros((C, PAD), jnp.float32)
    xpf_ref[:, PAD + HW:] = jnp.zeros((C, PAD), jnp.float32)
    xpf_ref[:, PAD:PAD + HW] = x_ref[0].astype(jnp.float32)   # lane-aligned store

    # ---- hoist the 25 distinct shifted slabs: each read exactly once ----
    # x[c, h+dy, w+dx] on the flattened axis; rows that fall outside [0, H)
    # land in the zero pad strips, row-wrap across W is killed by the cmask.
    slab = {}
    for dy in range(-2, 3):
        for dx in range(-2, 3):
            s = dy * W + dx
            slab[(dy, dx)] = xpf_ref[:, PAD + s:PAD + s + HW]  # (C, HW)

    # Column-validity masks for dx in {-2,-1,1,2}; dx == 0 is all-ones -> skipped.
    cm = {dx: cmask_ref[dx + 2:dx + 3, :] for dx in (-2, -1, 1, 2)}  # (1, HW)

    # ---- offset generator, stage 1: depthwise 3x3 conv, pad=1, no bias ----
    # TODO(synk): for C >= 16 fold this stage into the offset head as an MXU
    # matmul against the masked shifted slabs (break-even at the C=4 stem).
    dwow = dwow_ref[...]                                      # (C, 9)
    t = None
    for ki in range(3):
        for kj in range(3):
            dy, dx = ki - 1, kj - 1
            idx = ki * 3 + kj
            sl = slab[(dy, dx)]
            sl = sl if dx == 0 else cm[dx] * sl
            contrib = dwow[:, idx:idx + 1] * sl               # (C, HW)
            t = contrib if t is None else t + contrib

    # ---- offset generator, stage 2: 1x1 conv C -> 18 (MXU), clamp, park ----
    off_ref[...] = jnp.clip(
        jnp.dot(offw_ref[...], t, preferred_element_type=jnp.float32),
        -1.0, 1.0)                                            # (18, HW)

    # ---- depthwise deformable 3x3 conv (torchvision DeformConv2d) ----
    # For tap (ki,kj) the sample sits at (h+ki-1+oy, w+kj-1+ox) with
    # oy, ox in [-1, 1]; its bilinear hat weights over the integer shifts
    # dy in {ki-2, ki-1, ki} are exactly relu(-oy), 1-|oy|, relu(oy)
    # (same for columns), so no py/px reconstruction is needed.
    dcnw = dcnw_ref[...]                                      # (C, 9)
    acc = None
    for ki in range(3):
        for kj in range(3):
            k = ki * 3 + kj
            oy = off_ref[2 * k:2 * k + 1, :]                  # (1, HW)
            ox = off_ref[2 * k + 1:2 * k + 2, :]              # (1, HW)
            wy = (jnp.maximum(0.0, -oy), 1.0 - jnp.abs(oy), jnp.maximum(0.0, oy))
            wx = (jnp.maximum(0.0, -ox), 1.0 - jnp.abs(ox), jnp.maximum(0.0, ox))
            # Fold the column mask into the column weights once per tap.
            dxs = (kj - 2, kj - 1, kj)
            wxm = tuple(wx[j] if dxs[j] == 0 else wx[j] * cm[dxs[j]]
                        for j in range(3))
            tap = None
            for i, dy in enumerate((ki - 2, ki - 1, ki)):
                for j in range(3):
                    wgt = wy[i] * wxm[j]                      # (1, HW)
                    contrib = wgt * slab[(dy, dxs[j])]        # (C, HW)
                    tap = contrib if tap is None else tap + contrib
            term = dcnw[:, k:k + 1] * tap                     # tap weight factored out
            acc = term if acc is None else acc + term         # (C, HW)

    # ---- pointwise 1x1 conv C -> E (MXU) ----
    y = jnp.dot(pww_ref[...], acc, preferred_element_type=jnp.float32)  # (E, HW)

    # ---- Hardswish: x * relu6(x + 3) / 6, lane-dense store ----
    y = y * jnp.clip(y + 3.0, 0.0, 6.0) * (1.0 / 6.0)
    out_ref[0] = y.astype(out_ref.dtype)


@jax.jit
def mb_deform_embedding(x, dw_off_w, off_w, dcn_w, pw_w):
    B, C, H, W = x.shape
    E = pw_w.shape[0]
    HW = H * W
    # Lane-aligned pad strip, always >= 2W+2 so every +/-(2W+2) shift stays
    # inside the zero pads.
    PAD = ((max(128, 2 * W + 2) + 127) // 128) * 128

    x_flat = x.reshape(B, C, HW)
    dwow2 = dw_off_w.reshape(C, 9)
    dcnw2 = dcn_w.reshape(C, 9)

    # Column-validity masks for shifts dx in {-2..2} on the flattened spatial
    # axis (kills row wrap-around of the flat shift). Tiny; computed once in XLA.
    wcol = jnp.arange(HW, dtype=jnp.int32) % W
    cmask = jnp.stack(
        [((wcol + dx >= 0) & (wcol + dx < W)).astype(jnp.float32)
         for dx in (-2, -1, 0, 1, 2)], axis=0)                 # (5, HW)

    kernel = functools.partial(mb_deform_embedding_kernel, H=H, W=W, PAD=PAD)
    out_flat = pl.pallas_call(
        kernel,
        out_shape=jax.ShapeDtypeStruct((B, E, HW), x.dtype),
        grid=(B,),
        in_specs=[
            pl.BlockSpec((1, C, HW), lambda b: (b, 0, 0)),
            pl.BlockSpec((C, 9), lambda b: (0, 0)),
            pl.BlockSpec((18, C), lambda b: (0, 0)),
            pl.BlockSpec((C, 9), lambda b: (0, 0)),
            pl.BlockSpec((E, C), lambda b: (0, 0)),
            pl.BlockSpec((5, HW), lambda b: (0, 0)),
        ],
        out_specs=pl.BlockSpec((1, E, HW), lambda b: (b, 0, 0)),
        scratch_shapes=[
            pltpu.VMEM((C, HW + 2 * PAD), jnp.float32),   # flat zero-padded input
            pltpu.VMEM((18, HW), jnp.float32),            # clamped offset field
        ],
        compiler_params=pltpu.CompilerParams(dimension_semantics=("parallel",)),
    )(x_flat, dwow2, off_w, dcnw2, pw_w, cmask)
    return out_flat.reshape(B, E, H, W)


# ----------------- independent pure-JAX reference (gather-based) -----------------
def reference_forward(x, dw_off_w, off_w, dcn_w, pw_w):
    B, C, H, W = x.shape
    hi_prec = lax.Precision.HIGHEST
    xp = jnp.pad(x, ((0, 0), (0, 0), (1, 1), (1, 1)))
    t = jnp.zeros_like(x)
    for i in range(3):
        for j in range(3):
            t = t + dw_off_w[None, :, i, j, None, None] * xp[:, :, i:i + H, j:j + W]
    off = jnp.clip(jnp.einsum('oc,bchw->bohw', off_w, t, precision=hi_prec),
                   -1.0, 1.0)

    def bilinear(py, px):
        h0 = jnp.floor(py)
        w0 = jnp.floor(px)
        xf = x.reshape(B, C, H * W)
        val = jnp.zeros((B, C, H, W), x.dtype)
        for hi, wyt in ((h0, 1.0 - (py - h0)), (h0 + 1.0, py - h0)):
            for wi, wxt in ((w0, 1.0 - (px - w0)), (w0 + 1.0, px - w0)):
                valid = (hi >= 0) & (hi <= H - 1) & (wi >= 0) & (wi <= W - 1)
                hic = jnp.clip(hi, 0, H - 1).astype(jnp.int32)
                wic = jnp.clip(wi, 0, W - 1).astype(jnp.int32)
                idx = (hic * W + wic).reshape(B, 1, H * W)
                g = jnp.take_along_axis(
                    xf, jnp.broadcast_to(idx, (B, C, H * W)), axis=2
                ).reshape(B, C, H, W)
                g = jnp.where(valid[:, None], g, 0.0)
                val = val + (wyt * wxt)[:, None] * g
        oob = (py <= -1) | (py >= H) | (px <= -1) | (px >= W)
        return jnp.where(oob[:, None], 0.0, val)

    hh = jnp.arange(H, dtype=x.dtype)[None, :, None]
    ww = jnp.arange(W, dtype=x.dtype)[None, None, :]
    out = jnp.zeros((B, C, H, W), x.dtype)
    for ki in range(3):
        for kj in range(3):
            k = ki * 3 + kj
            py = hh + (ki - 1) + off[:, 2 * k]
            px = ww + (kj - 1) + off[:, 2 * k + 1]
            out = out + dcn_w[None, :, ki, kj, None, None] * bilinear(py, px)
    y = jnp.einsum('ec,bchw->behw', pw_w, out, precision=hi_prec)
    return y * jnp.clip(y + 3.0, 0.0, 6.0) / 6.0


if __name__ == "__main__":
    key = jax.random.PRNGKey(0)
    B, C, H, W, E = 2, 4, 16, 16, 32   # in_chans=4, embed_dim=32, 16x16 image
    k0, k1, k2, k3, k4 = jax.random.split(key, 5)

    x = jax.random.normal(k0, (B, C, H, W), jnp.float32)
    # deterministic init mirroring the module: normal(0, sqrt(2/n)), n = kh*kw*out_ch
    dw_off_w = jax.random.normal(k1, (C, 3, 3), jnp.float32) * (2.0 / (9 * C)) ** 0.5
    off_w = jax.random.normal(k2, (18, C), jnp.float32) * (2.0 / 18.0) ** 0.5
    dcn_w = jax.random.normal(k3, (C, 3, 3), jnp.float32) * (2.0 / 9.0) ** 0.5
    pw_w = jax.random.normal(k4, (E, C), jnp.float32) * (2.0 / E) ** 0.5

    out = jax.block_until_ready(mb_deform_embedding(x, dw_off_w, off_w, dcn_w, pw_w))
    ref = reference_forward(x, dw_off_w, off_w, dcn_w, pw_w)
    assert out.shape == (B, E, H, W), out.shape
    max_err = float(jnp.max(jnp.abs(out - ref)))
    assert max_err < 2e-4, max_err
    print("KERNEL_OK")
</pallas_src>

<mosaic_0001>
module attributes {stable_mosaic.version = 11 : i64} {
  func.func @mb_deform_embedding_kernel(%arg0: i32, %arg1: memref<1x4x256xf32, #tpu.memory_space<vmem>>, %arg2: memref<4x9xf32, #tpu.memory_space<vmem>>, %arg3: memref<18x4xf32, #tpu.memory_space<vmem>>, %arg4: memref<4x9xf32, #tpu.memory_space<vmem>>, %arg5: memref<32x4xf32, #tpu.memory_space<vmem>>, %arg6: memref<5x256xf32, #tpu.memory_space<vmem>>, %arg7: memref<1x32x256xf32, #tpu.memory_space<vmem>>, %arg8: memref<4x512xf32, #tpu.memory_space<vmem>>, %arg9: memref<18x256xf32, #tpu.memory_space<vmem>>) attributes {dimension_semantics = [#tpu.dimension_semantics<parallel>], iteration_bounds = array<i64: 2>, scalar_prefetch = 0 : i64, scratch_operands = 2 : i64, tpu.core_type = #tpu.core_type<tc>, window_params = [{transform_indices = @transform_0, window_bounds = array<i64: 1, 4, 256>}, {pipeline_mode = #tpu.pipeline_mode<synchronous>, transform_indices = @transform_1, window_bounds = array<i64: 4, 9>}, {pipeline_mode = #tpu.pipeline_mode<synchronous>, transform_indices = @transform_2, window_bounds = array<i64: 18, 4>}, {pipeline_mode = #tpu.pipeline_mode<synchronous>, transform_indices = @transform_3, window_bounds = array<i64: 4, 9>}, {pipeline_mode = #tpu.pipeline_mode<synchronous>, transform_indices = @transform_4, window_bounds = array<i64: 32, 4>}, {pipeline_mode = #tpu.pipeline_mode<synchronous>, transform_indices = @transform_5, window_bounds = array<i64: 5, 256>}, {transform_indices = @transform_6, window_bounds = array<i64: 1, 32, 256>}]} {
    %cst = arith.constant 0.000000e+00 : f32
    %0 = vector.broadcast %cst : f32 to vector<4x128xf32>
    %c0 = arith.constant 0 : index
    %c0_0 = arith.constant 0 : index
    %1 = vector.load %arg8[%c0, %c0_0] : memref<4x512xf32, #tpu.memory_space<vmem>>, vector<4x128xf32>
    tpu.vector_store %arg8[%c0, %c0_0], %0 {strides = array<i32>} : memref<4x512xf32, #tpu.memory_space<vmem>>, vector<4x128xf32>,
    %cst_1 = arith.constant 0.000000e+00 : f32
    %2 = vector.broadcast %cst_1 : f32 to vector<4x128xf32>
    %c0_2 = arith.constant 0 : index
    %c384 = arith.constant 384 : index
    %3 = vector.load %arg8[%c0_2, %c384] : memref<4x512xf32, #tpu.memory_space<vmem>>, vector<4x128xf32>
    tpu.vector_store %arg8[%c0_2, %c384], %2 {strides = array<i32>} : memref<4x512xf32, #tpu.memory_space<vmem>>, vector<4x128xf32>,
    %c0_3 = arith.constant 0 : index
    %c0_4 = arith.constant 0 : index
    %c0_5 = arith.constant 0 : index
    %4 = vector.load %arg1[%c0_3, %c0_4, %c0_5] : memref<1x4x256xf32, #tpu.memory_space<vmem>>, vector<1x4x256xf32>
    %5 = vector.shape_cast %4 : vector<1x4x256xf32> to vector<4x256xf32>
    %c0_6 = arith.constant 0 : index
    %c128 = arith.constant 128 : index
    %6 = vector.load %arg8[%c0_6, %c128] : memref<4x512xf32, #tpu.memory_space<vmem>>, vector<4x256xf32>
    tpu.vector_store %arg8[%c0_6, %c128], %5 {strides = array<i32>} : memref<4x512xf32, #tpu.memory_space<vmem>>, vector<4x256xf32>,
    %c0_7 = arith.constant 0 : index
    %c94 = arith.constant 94 : index
    %7 = vector.load %arg8[%c0_7, %c94] : memref<4x512xf32, #tpu.memory_space<vmem>>, vector<4x256xf32>
    %c0_8 = arith.constant 0 : index
    %c95 = arith.constant 95 : index
    %8 = vector.load %arg8[%c0_8, %c95] : memref<4x512xf32, #tpu.memory_space<vmem>>, vector<4x256xf32>
    %c0_9 = arith.constant 0 : index
    %c96 = arith.constant 96 : index
    %9 = vector.load %arg8[%c0_9, %c96] : memref<4x512xf32, #tpu.memory_space<vmem>>, vector<4x256xf32>
    %c0_10 = arith.constant 0 : index
    %c97 = arith.constant 97 : index
    %10 = vector.load %arg8[%c0_10, %c97] : memref<4x512xf32, #tpu.memory_space<vmem>>, vector<4x256xf32>
    %c0_11 = arith.constant 0 : index
    %c98 = arith.constant 98 : index
    %11 = vector.load %arg8[%c0_11, %c98] : memref<4x512xf32, #tpu.memory_space<vmem>>, vector<4x256xf32>
    %c0_12 = arith.constant 0 : index
    %c110 = arith.constant 110 : index
    %12 = vector.load %arg8[%c0_12, %c110] : memref<4x512xf32, #tpu.memory_space<vmem>>, vector<4x256xf32>
    %c0_13 = arith.constant 0 : index
    %c111 = arith.constant 111 : index
    %13 = vector.load %arg8[%c0_13, %c111] : memref<4x512xf32, #tpu.memory_space<vmem>>, vector<4x256xf32>
    %c0_14 = arith.constant 0 : index
    %c112 = arith.constant 112 : index
    %14 = vector.load %arg8[%c0_14, %c112] : memref<4x512xf32, #tpu.memory_space<vmem>>, vector<4x256xf32>
    %c0_15 = arith.constant 0 : index
    %c113 = arith.constant 113 : index
    %15 = vector.load %arg8[%c0_15, %c113] : memref<4x512xf32, #tpu.memory_space<vmem>>, vector<4x256xf32>
    %c0_16 = arith.constant 0 : index
    %c114 = arith.constant 114 : index
    %16 = vector.load %arg8[%c0_16, %c114] : memref<4x512xf32, #tpu.memory_space<vmem>>, vector<4x256xf32>
    %c0_17 = arith.constant 0 : index
    %c126 = arith.constant 126 : index
    %17 = vector.load %arg8[%c0_17, %c126] : memref<4x512xf32, #tpu.memory_space<vmem>>, vector<4x256xf32>
    %c0_18 = arith.constant 0 : index
    %c127 = arith.constant 127 : index
    %18 = vector.load %arg8[%c0_18, %c127] : memref<4x512xf32, #tpu.memory_space<vmem>>, vector<4x256xf32>
    %c0_19 = arith.constant 0 : index
    %c128_20 = arith.constant 128 : index
    %19 = vector.load %arg8[%c0_19, %c128_20] : memref<4x512xf32, #tpu.memory_space<vmem>>, vector<4x256xf32>
    %c0_21 = arith.constant 0 : index
    %c129 = arith.constant 129 : index
    %20 = vector.load %arg8[%c0_21, %c129] : memref<4x512xf32, #tpu.memory_space<vmem>>, vector<4x256xf32>
    %c0_22 = arith.constant 0 : index
    %c130 = arith.constant 130 : index
    %21 = vector.load %arg8[%c0_22, %c130] : memref<4x512xf32, #tpu.memory_space<vmem>>, vector<4x256xf32>
    %c0_23 = arith.constant 0 : index
    %c142 = arith.constant 142 : index
    %22 = vector.load %arg8[%c0_23, %c142] : memref<4x512xf32, #tpu.memory_space<vmem>>, vector<4x256xf32>
    %c0_24 = arith.constant 0 : index
    %c143 = arith.constant 143 : index
    %23 = vector.load %arg8[%c0_24, %c143] : memref<4x512xf32, #tpu.memory_space<vmem>>, vector<4x256xf32>
    %c0_25 = arith.constant 0 : index
    %c144 = arith.constant 144 : index
    %24 = vector.load %arg8[%c0_25, %c144] : memref<4x512xf32, #tpu.memory_space<vmem>>, vector<4x256xf32>
    %c0_26 = arith.constant 0 : index
    %c145 = arith.constant 145 : index
    %25 = vector.load %arg8[%c0_26, %c145] : memref<4x512xf32, #tpu.memory_space<vmem>>, vector<4x256xf32>
    %c0_27 = arith.constant 0 : index
    %c146 = arith.constant 146 : index
    %26 = vector.load %arg8[%c0_27, %c146] : memref<4x512xf32, #tpu.memory_space<vmem>>, vector<4x256xf32>
    %c0_28 = arith.constant 0 : index
    %c158 = arith.constant 158 : index
    %27 = vector.load %arg8[%c0_28, %c158] : memref<4x512xf32, #tpu.memory_space<vmem>>, vector<4x256xf32>
    %c0_29 = arith.constant 0 : index
    %c159 = arith.constant 159 : index
    %28 = vector.load %arg8[%c0_29, %c159] : memref<4x512xf32, #tpu.memory_space<vmem>>, vector<4x256xf32>
    %c0_30 = arith.constant 0 : index
    %c160 = arith.constant 160 : index
    %29 = vector.load %arg8[%c0_30, %c160] : memref<4x512xf32, #tpu.memory_space<vmem>>, vector<4x256xf32>
    %c0_31 = arith.constant 0 : index
    %c161 = arith.constant 161 : index
    %30 = vector.load %arg8[%c0_31, %c161] : memref<4x512xf32, #tpu.memory_space<vmem>>, vector<4x256xf32>
    %c0_32 = arith.constant 0 : index
    %c162 = arith.constant 162 : index
    %31 = vector.load %arg8[%c0_32, %c162] : memref<4x512xf32, #tpu.memory_space<vmem>>, vector<4x256xf32>
    %c0_33 = arith.constant 0 : index
    %c0_34 = arith.constant 0 : index
    %32 = vector.load %arg6[%c0_33, %c0_34] : memref<5x256xf32, #tpu.memory_space<vmem>>, vector<1x256xf32>
    %c1 = arith.constant 1 : index
    %c0_35 = arith.constant 0 : index
    %33 = vector.load %arg6[%c1, %c0_35] : memref<5x256xf32, #tpu.memory_space<vmem>>, vector<1x256xf32>
    %c3 = arith.constant 3 : index
    %c0_36 = arith.constant 0 : index
    %34 = vector.load %arg6[%c3, %c0_36] : memref<5x256xf32, #tpu.memory_space<vmem>>, vector<1x256xf32>
    %c4 = arith.constant 4 : index
    %c0_37 = arith.constant 0 : index
    %35 = vector.load %arg6[%c4, %c0_37] : memref<5x256xf32, #tpu.memory_space<vmem>>, vector<1x256xf32>
    %c0_38 = arith.constant 0 : index
    %c0_39 = arith.constant 0 : index
    %36 = vector.load %arg2[%c0_38, %c0_39] : memref<4x9xf32, #tpu.memory_space<vmem>>, vector<4x9xf32>
    %37 = vector.broadcast %33 : vector<1x256xf32> to vector<4x256xf32>
    %38 = arith.mulf %37, %13 : vector<4x256xf32>
    %39 = vector.extract_strided_slice %36 {offsets = [0, 0], sizes = [4, 1], strides = [1, 1]} : vector<4x9xf32> to vector<4x1xf32>
    %40 = vector.broadcast %39 : vector<4x1xf32> to vector<4x256xf32>
    %41 = arith.mulf %40, %38 : vector<4x256xf32>
    %42 = vector.extract_strided_slice %36 {offsets = [0, 1], sizes = [4, 1], strides = [1, 1]} : vector<4x9xf32> to vector<4x1xf32>
    %43 = vector.broadcast %42 : vector<4x1xf32> to vector<4x256xf32>
    %44 = arith.mulf %43, %14 : vector<4x256xf32>
    %45 = arith.addf %41, %44 : vector<4x256xf32>
    %46 = vector.broadcast %34 : vector<1x256xf32> to vector<4x256xf32>
    %47 = arith.mulf %46, %15 : vector<4x256xf32>
    %48 = vector.extract_strided_slice %36 {offsets = [0, 2], sizes = [4, 1], strides = [1, 1]} : vector<4x9xf32> to vector<4x1xf32>
    %49 = vector.broadcast %48 : vector<4x1xf32> to vector<4x256xf32>
    %50 = arith.mulf %49, %47 : vector<4x256xf32>
    %51 = arith.addf %45, %50 : vector<4x256xf32>
    %52 = vector.broadcast %33 : vector<1x256xf32> to vector<4x256xf32>
    %53 = arith.mulf %52, %18 : vector<4x256xf32>
    %54 = vector.extract_strided_slice %36 {offsets = [0, 3], sizes = [4, 1], strides = [1, 1]} : vector<4x9xf32> to vector<4x1xf32>
    %55 = vector.broadcast %54 : vector<4x1xf32> to vector<4x256xf32>
    %56 = arith.mulf %55, %53 : vector<4x256xf32>
    %57 = arith.addf %51, %56 : vector<4x256xf32>
    %58 = vector.extract_strided_slice %36 {offsets = [0, 4], sizes = [4, 1], strides = [1, 1]} : vector<4x9xf32> to vector<4x1xf32>
    %59 = vector.broadcast %58 : vector<4x1xf32> to vector<4x256xf32>
    %60 = arith.mulf %59, %19 : vector<4x256xf32>
    %61 = arith.addf %57, %60 : vector<4x256xf32>
    %62 = vector.broadcast %34 : vector<1x256xf32> to vector<4x256xf32>
    %63 = arith.mulf %62, %20 : vector<4x256xf32>
    %64 = vector.extract_strided_slice %36 {offsets = [0, 5], sizes = [4, 1], strides = [1, 1]} : vector<4x9xf32> to vector<4x1xf32>
    %65 = vector.broadcast %64 : vector<4x1xf32> to vector<4x256xf32>
    %66 = arith.mulf %65, %63 : vector<4x256xf32>
    %67 = arith.addf %61, %66 : vector<4x256xf32>
    %68 = vector.broadcast %33 : vector<1x256xf32> to vector<4x256xf32>
    %69 = arith.mulf %68, %23 : vector<4x256xf32>
    %70 = vector.extract_strided_slice %36 {offsets = [0, 6], sizes = [4, 1], strides = [1, 1]} : vector<4x9xf32> to vector<4x1xf32>
    %71 = vector.broadcast %70 : vector<4x1xf32> to vector<4x256xf32>
    %72 = arith.mulf %71, %69 : vector<4x256xf32>
    %73 = arith.addf %67, %72 : vector<4x256xf32>
    %74 = vector.extract_strided_slice %36 {offsets = [0, 7], sizes = [4, 1], strides = [1, 1]} : vector<4x9xf32> to vector<4x1xf32>
    %75 = vector.broadcast %74 : vector<4x1xf32> to vector<4x256xf32>
    %76 = arith.mulf %75, %24 : vector<4x256xf32>
    %77 = arith.addf %73, %76 : vector<4x256xf32>
    %78 = vector.broadcast %34 : vector<1x256xf32> to vector<4x256xf32>
    %79 = arith.mulf %78, %25 : vector<4x256xf32>
    %80 = vector.extract_strided_slice %36 {offsets = [0, 8], sizes = [4, 1], strides = [1, 1]} : vector<4x9xf32> to vector<4x1xf32>
    %81 = vector.broadcast %80 : vector<4x1xf32> to vector<4x256xf32>
    %82 = arith.mulf %81, %79 : vector<4x256xf32>
    %83 = arith.addf %77, %82 : vector<4x256xf32>
    %c0_40 = arith.constant 0 : index
    %c0_41 = arith.constant 0 : index
    %84 = vector.load %arg3[%c0_40, %c0_41] : memref<18x4xf32, #tpu.memory_space<vmem>>, vector<18x4xf32>
    %cst_42 = arith.constant dense<0.000000e+00> : vector<18x256xf32>
    %85 = tpu.matmul %84, %83, %cst_42 {dimension_numbers = #tpu.dot_dimension_numbers<[1], [0], [0], [1], [0, 0, 1, 1], [], []>} : vector<18x4xf32>, vector<4x256xf32>, vector<18x256xf32> -> vector<18x256xf32>
    %cst_43 = arith.constant -1.000000e+00 : f32
    %cst_44 = arith.constant 1.000000e+00 : f32
    %86 = vector.broadcast %cst_43 : f32 to vector<18x256xf32>
    %87 = arith.maximumf %86, %85 : vector<18x256xf32>
    %88 = vector.broadcast %cst_44 : f32 to vector<18x256xf32>
    %89 = arith.minimumf %88, %87 : vector<18x256xf32>
    %c0_45 = arith.constant 0 : index
    %c0_46 = arith.constant 0 : index
    %90 = vector.load %arg9[%c0_45, %c0_46] : memref<18x256xf32, #tpu.memory_space<vmem>>, vector<18x256xf32>
    tpu.vector_store %arg9[%c0_45, %c0_46], %89 {strides = array<i32>} : memref<18x256xf32, #tpu.memory_space<vmem>>, vector<18x256xf32>,
    %c0_47 = arith.constant 0 : index
    %c0_48 = arith.constant 0 : index
    %91 = vector.load %arg4[%c0_47, %c0_48] : memref<4x9xf32, #tpu.memory_space<vmem>>, vector<4x9xf32>
    %c0_49 = arith.constant 0 : index
    %c0_50 = arith.constant 0 : index
    %92 = vector.load %arg9[%c0_49, %c0_50] : memref<18x256xf32, #tpu.memory_space<vmem>>, vector<1x256xf32>
    %c1_51 = arith.constant 1 : index
    %c0_52 = arith.constant 0 : index
    %93 = vector.load %arg9[%c1_51, %c0_52] : memref<18x256xf32, #tpu.memory_space<vmem>>, vector<1x256xf32>
    %cst_53 = arith.constant 0.000000e+00 : f32
    %94 = vector.broadcast %cst_53 : f32 to vector<1x256xf32>
    %95 = arith.subf %94, %92 : vector<1x256xf32>
    %cst_54 = arith.constant 0.000000e+00 : f32
    %96 = vector.broadcast %cst_54 : f32 to vector<1x256xf32>
    %97 = arith.maximumf %96, %95 : vector<1x256xf32>
    %98 = math.absf %92 : vector<1x256xf32>
    %cst_55 = arith.constant 1.000000e+00 : f32
    %99 = vector.broadcast %cst_55 : f32 to vector<1x256xf32>
    %100 = arith.subf %99, %98 : vector<1x256xf32>
    %cst_56 = arith.constant 0.000000e+00 : f32
    %101 = vector.broadcast %cst_56 : f32 to vector<1x256xf32>
    %102 = arith.maximumf %101, %92 : vector<1x256xf32>
    %cst_57 = arith.constant 0.000000e+00 : f32
    %103 = vector.broadcast %cst_57 : f32 to vector<1x256xf32>
    %104 = arith.subf %103, %93 : vector<1x256xf32>
    %cst_58 = arith.constant 0.000000e+00 : f32
    %105 = vector.broadcast %cst_58 : f32 to vector<1x256xf32>
    %106 = arith.maximumf %105, %104 : vector<1x256xf32>
    %107 = math.absf %93 : vector<1x256xf32>
    %cst_59 = arith.constant 1.000000e+00 : f32
    %108 = vector.broadcast %cst_59 : f32 to vector<1x256xf32>
    %109 = arith.subf %108, %107 : vector<1x256xf32>
    %cst_60 = arith.constant 0.000000e+00 : f32
    %110 = vector.broadcast %cst_60 : f32 to vector<1x256xf32>
    %111 = arith.maximumf %110, %93 : vector<1x256xf32>
    %112 = arith.mulf %106, %32 : vector<1x256xf32>
    %113 = arith.mulf %109, %33 : vector<1x256xf32>
    %114 = arith.mulf %97, %112 : vector<1x256xf32>
    %115 = vector.broadcast %114 : vector<1x256xf32> to vector<4x256xf32>
    %116 = arith.mulf %115, %7 : vector<4x256xf32>
    %117 = arith.mulf %97, %113 : vector<1x256xf32>
    %118 = vector.broadcast %117 : vector<1x256xf32> to vector<4x256xf32>
    %119 = arith.mulf %118, %8 : vector<4x256xf32>
    %120 = arith.addf %116, %119 : vector<4x256xf32>
    %121 = arith.mulf %97, %111 : vector<1x256xf32>
    %122 = vector.broadcast %121 : vector<1x256xf32> to vector<4x256xf32>
    %123 = arith.mulf %122, %9 : vector<4x256xf32>
    %124 = arith.addf %120, %123 : vector<4x256xf32>
    %125 = arith.mulf %100, %112 : vector<1x256xf32>
    %126 = vector.broadcast %125 : vector<1x256xf32> to vector<4x256xf32>
    %127 = arith.mulf %126, %12 : vector<4x256xf32>
    %128 = arith.addf %124, %127 : vector<4x256xf32>
    %129 = arith.mulf %100, %113 : vector<1x256xf32>
    %130 = vector.broadcast %129 : vector<1x256xf32> to vector<4x256xf32>
    %131 = arith.mulf %130, %13 : vector<4x256xf32>
    %132 = arith.addf %128, %131 : vector<4x256xf32>
    %133 = arith.mulf %100, %111 : vector<1x256xf32>
    %134 = vector.broadcast %133 : vector<1x256xf32> to vector<4x256xf32>
    %135 = arith.mulf %134, %14 : vector<4x256xf32>
    %136 = arith.addf %132, %135 : vector<4x256xf32>
    %137 = arith.mulf %102, %112 : vector<1x256xf32>
    %138 = vector.broadcast %137 : vector<1x256xf32> to vector<4x256xf32>
    %139 = arith.mulf %138, %17 : vector<4x256xf32>
    %140 = arith.addf %136, %139 : vector<4x256xf32>
    %141 = arith.mulf %102, %113 : vector<1x256xf32>
    %142 = vector.broadcast %141 : vector<1x256xf32> to vector<4x256xf32>
    %143 = arith.mulf %142, %18 : vector<4x256xf32>
    %144 = arith.addf %140, %143 : vector<4x256xf32>
    %145 = arith.mulf %102, %111 : vector<1x256xf32>
    %146 = vector.broadcast %145 : vector<1x256xf32> to vector<4x256xf32>
    %147 = arith.mulf %146, %19 : vector<4x256xf32>
    %148 = arith.addf %144, %147 : vector<4x256xf32>
    %149 = vector.extract_strided_slice %91 {offsets = [0, 0], sizes = [4, 1], strides = [1, 1]} : vector<4x9xf32> to vector<4x1xf32>
    %150 = vector.broadcast %149 : vector<4x1xf32> to vector<4x256xf32>
    %151 = arith.mulf %150, %148 : vector<4x256xf32>
    %c2 = arith.constant 2 : index
    %c0_61 = arith.constant 0 : index
    %152 = vector.load %arg9[%c2, %c0_61] : memref<18x256xf32, #tpu.memory_space<vmem>>, vector<1x256xf32>
    %c3_62 = arith.constant 3 : index
    %c0_63 = arith.constant 0 : index
    %153 = vector.load %arg9[%c3_62, %c0_63] : memref<18x256xf32, #tpu.memory_space<vmem>>, vector<1x256xf32>
    %cst_64 = arith.constant 0.000000e+00 : f32
    %154 = vector.broadcast %cst_64 : f32 to vector<1x256xf32>
    %155 = arith.subf %154, %152 : vector<1x256xf32>
    %cst_65 = arith.constant 0.000000e+00 : f32
    %156 = vector.broadcast %cst_65 : f32 to vector<1x256xf32>
    %157 = arith.maximumf %156, %155 : vector<1x256xf32>
    %158 = math.absf %152 : vector<1x256xf32>
    %cst_66 = arith.constant 1.000000e+00 : f32
    %159 = vector.broadcast %cst_66 : f32 to vector<1x256xf32>
    %160 = arith.subf %159, %158 : vector<1x256xf32>
    %cst_67 = arith.constant 0.000000e+00 : f32
    %161 = vector.broadcast %cst_67 : f32 to vector<1x256xf32>
    %162 = arith.maximumf %161, %152 : vector<1x256xf32>
    %cst_68 = arith.constant 0.000000e+00 : f32
    %163 = vector.broadcast %cst_68 : f32 to vector<1x256xf32>
    %164 = arith.subf %163, %153 : vector<1x256xf32>
    %cst_69 = arith.constant 0.000000e+00 : f32
    %165 = vector.broadcast %cst_69 : f32 to vector<1x256xf32>
    %166 = arith.maximumf %165, %164 : vector<1x256xf32>
    %167 = math.absf %153 : vector<1x256xf32>
    %cst_70 = arith.constant 1.000000e+00 : f32
    %168 = vector.broadcast %cst_70 : f32 to vector<1x256xf32>
    %169 = arith.subf %168, %167 : vector<1x256xf32>
    %cst_71 = arith.constant 0.000000e+00 : f32
    %170 = vector.broadcast %cst_71 : f32 to vector<1x256xf32>
    %171 = arith.maximumf %170, %153 : vector<1x256xf32>
    %172 = arith.mulf %166, %33 : vector<1x256xf32>
    %173 = arith.mulf %171, %34 : vector<1x256xf32>
    %174 = arith.mulf %157, %172 : vector<1x256xf32>
    %175 = vector.broadcast %174 : vector<1x256xf32> to vector<4x256xf32>
    %176 = arith.mulf %175, %8 : vector<4x256xf32>
    %177 = arith.mulf %157, %169 : vector<1x256xf32>
    %178 = vector.broadcast %177 : vector<1x256xf32> to vector<4x256xf32>
    %179 = arith.mulf %178, %9 : vector<4x256xf32>
    %180 = arith.addf %176, %179 : vector<4x256xf32>
    %181 = arith.mulf %157, %173 : vector<1x256xf32>
    %182 = vector.broadcast %181 : vector<1x256xf32> to vector<4x256xf32>
    %183 = arith.mulf %182, %10 : vector<4x256xf32>
    %184 = arith.addf %180, %183 : vector<4x256xf32>
    %185 = arith.mulf %160, %172 : vector<1x256xf32>
    %186 = vector.broadcast %185 : vector<1x256xf32> to vector<4x256xf32>
    %187 = arith.mulf %186, %13 : vector<4x256xf32>
    %188 = arith.addf %184, %187 : vector<4x256xf32>
    %189 = arith.mulf %160, %169 : vector<1x256xf32>
    %190 = vector.broadcast %189 : vector<1x256xf32> to vector<4x256xf32>
    %191 = arith.mulf %190, %14 : vector<4x256xf32>
    %192 = arith.addf %188, %191 : vector<4x256xf32>
    %193 = arith.mulf %160, %173 : vector<1x256xf32>
    %194 = vector.broadcast %193 : vector<1x256xf32> to vector<4x256xf32>
    %195 = arith.mulf %194, %15 : vector<4x256xf32>
    %196 = arith.addf %192, %195 : vector<4x256xf32>
    %197 = arith.mulf %162, %172 : vector<1x256xf32>
    %198 = vector.broadcast %197 : vector<1x256xf32> to vector<4x256xf32>
    %199 = arith.mulf %198, %18 : vector<4x256xf32>
    %200 = arith.addf %196, %199 : vector<4x256xf32>
    %201 = arith.mulf %162, %169 : vector<1x256xf32>
    %202 = vector.broadcast %201 : vector<1x256xf32> to vector<4x256xf32>
    %203 = arith.mulf %202, %19 : vector<4x256xf32>
    %204 = arith.addf %200, %203 : vector<4x256xf32>
    %205 = arith.mulf %162, %173 : vector<1x256xf32>
    %206 = vector.broadcast %205 : vector<1x256xf32> to vector<4x256xf32>
    %207 = arith.mulf %206, %20 : vector<4x256xf32>
    %208 = arith.addf %204, %207 : vector<4x256xf32>
    %209 = vector.extract_strided_slice %91 {offsets = [0, 1], sizes = [4, 1], strides = [1, 1]} : vector<4x9xf32> to vector<4x1xf32>
    %210 = vector.broadcast %209 : vector<4x1xf32> to vector<4x256xf32>
    %211 = arith.mulf %210, %208 : vector<4x256xf32>
    %212 = arith.addf %151, %211 : vector<4x256xf32>
    %c4_72 = arith.constant 4 : index
    %c0_73 = arith.constant 0 : index
    %213 = vector.load %arg9[%c4_72, %c0_73] : memref<18x256xf32, #tpu.memory_space<vmem>>, vector<1x256xf32>
    %c5 = arith.constant 5 : index
    %c0_74 = arith.constant 0 : index
    %214 = vector.load %arg9[%c5, %c0_74] : memref<18x256xf32, #tpu.memory_space<vmem>>, vector<1x256xf32>
    %cst_75 = arith.constant 0.000000e+00 : f32
    %215 = vector.broadcast %cst_75 : f32 to vector<1x256xf32>
    %216 = arith.subf %215, %213 : vector<1x256xf32>
    %cst_76 = arith.constant 0.000000e+00 : f32
    %217 = vector.broadcast %cst_76 : f32 to vector<1x256xf32>
    %218 = arith.maximumf %217, %216 : vector<1x256xf32>
    %219 = math.absf %213 : vector<1x256xf32>
    %cst_77 = arith.constant 1.000000e+00 : f32
    %220 = vector.broadcast %cst_77 : f32 to vector<1x256xf32>
    %221 = arith.subf %220, %219 : vector<1x256xf32>
    %cst_78 = arith.constant 0.000000e+00 : f32
    %222 = vector.broadcast %cst_78 : f32 to vector<1x256xf32>
    %223 = arith.maximumf %222, %213 : vector<1x256xf32>
    %cst_79 = arith.constant 0.000000e+00 : f32
    %224 = vector.broadcast %cst_79 : f32 to vector<1x256xf32>
    %225 = arith.subf %224, %214 : vector<1x256xf32>
    %cst_80 = arith.constant 0.000000e+00 : f32
    %226 = vector.broadcast %cst_80 : f32 to vector<1x256xf32>
    %227 = arith.maximumf %226, %225 : vector<1x256xf32>
    %228 = math.absf %214 : vector<1x256xf32>
    %cst_81 = arith.constant 1.000000e+00 : f32
    %229 = vector.broadcast %cst_81 : f32 to vector<1x256xf32>
    %230 = arith.subf %229, %228 : vector<1x256xf32>
    %cst_82 = arith.constant 0.000000e+00 : f32
    %231 = vector.broadcast %cst_82 : f32 to vector<1x256xf32>
    %232 = arith.maximumf %231, %214 : vector<1x256xf32>
    %233 = arith.mulf %230, %34 : vector<1x256xf32>
    %234 = arith.mulf %232, %35 : vector<1x256xf32>
    %235 = arith.mulf %218, %227 : vector<1x256xf32>
    %236 = vector.broadcast %235 : vector<1x256xf32> to vector<4x256xf32>
    %237 = arith.mulf %236, %9 : vector<4x256xf32>
    %238 = arith.mulf %218, %233 : vector<1x256xf32>
    %239 = vector.broadcast %238 : vector<1x256xf32> to vector<4x256xf32>
    %240 = arith.mulf %239, %10 : vector<4x256xf32>
    %241 = arith.addf %237, %240 : vector<4x256xf32>
    %242 = arith.mulf %218, %234 : vector<1x256xf32>
    %243 = vector.broadcast %242 : vector<1x256xf32> to vector<4x256xf32>
    %244 = arith.mulf %243, %11 : vector<4x256xf32>
    %245 = arith.addf %241, %244 : vector<4x256xf32>
    %246 = arith.mulf %221, %227 : vector<1x256xf32>
    %247 = vector.broadcast %246 : vector<1x256xf32> to vector<4x256xf32>
    %248 = arith.mulf %247, %14 : vector<4x256xf32>
    %249 = arith.addf %245, %248 : vector<4x256xf32>
    %250 = arith.mulf %221, %233 : vector<1x256xf32>
    %251 = vector.broadcast %250 : vector<1x256xf32> to vector<4x256xf32>
    %252 = arith.mulf %251, %15 : vector<4x256xf32>
    %253 = arith.addf %249, %252 : vector<4x256xf32>
    %254 = arith.mulf %221, %234 : vector<1x256xf32>
    %255 = vector.broadcast %254 : vector<1x256xf32> to vector<4x256xf32>
    %256 = arith.mulf %255, %16 : vector<4x256xf32>
    %257 = arith.addf %253, %256 : vector<4x256xf32>
    %258 = arith.mulf %223, %227 : vector<1x256xf32>
    %259 = vector.broadcast %258 : vector<1x256xf32> to vector<4x256xf32>
    %260 = arith.mulf %259, %19 : vector<4x256xf32>
    %261 = arith.addf %257, %260 : vector<4x256xf32>
    %262 = arith.mulf %223, %233 : vector<1x256xf32>
    %263 = vector.broadcast %262 : vector<1x256xf32> to vector<4x256xf32>
    %264 = arith.mulf %263, %20 : vector<4x256xf32>
    %265 = arith.addf %261, %264 : vector<4x256xf32>
    %266 = arith.mulf %223, %234 : vector<1x256xf32>
    %267 = vector.broadcast %266 : vector<1x256xf32> to vector<4x256xf32>
    %268 = arith.mulf %267, %21 : vector<4x256xf32>
    %269 = arith.addf %265, %268 : vector<4x256xf32>
    %270 = vector.extract_strided_slice %91 {offsets = [0, 2], sizes = [4, 1], strides = [1, 1]} : vector<4x9xf32> to vector<4x1xf32>
    %271 = vector.broadcast %270 : vector<4x1xf32> to vector<4x256xf32>
    %272 = arith.mulf %271, %269 : vector<4x256xf32>
    %273 = arith.addf %212, %272 : vector<4x256xf32>
    %c6 = arith.constant 6 : index
    %c0_83 = arith.constant 0 : index
    %274 = vector.load %arg9[%c6, %c0_83] : memref<18x256xf32, #tpu.memory_space<vmem>>, vector<1x256xf32>
    %c7 = arith.constant 7 : index
    %c0_84 = arith.constant 0 : index
    %275 = vector.load %arg9[%c7, %c0_84] : memref<18x256xf32, #tpu.memory_space<vmem>>, vector<1x256xf32>
    %cst_85 = arith.constant 0.000000e+00 : f32
    %276 = vector.broadcast %cst_85 : f32 to vector<1x256xf32>
    %277 = arith.subf %276, %274 : vector<1x256xf32>
    %cst_86 = arith.constant 0.000000e+00 : f32
    %278 = vector.broadcast %cst_86 : f32 to vector<1x256xf32>
    %279 = arith.maximumf %278, %277 : vector<1x256xf32>
    %280 = math.absf %274 : vector<1x256xf32>
    %cst_87 = arith.constant 1.000000e+00 : f32
    %281 = vector.broadcast %cst_87 : f32 to vector<1x256xf32>
    %282 = arith.subf %281, %280 : vector<1x256xf32>
    %cst_88 = arith.constant 0.000000e+00 : f32
    %283 = vector.broadcast %cst_88 : f32 to vector<1x256xf32>
    %284 = arith.maximumf %283, %274 : vector<1x256xf32>
    %cst_89 = arith.constant 0.000000e+00 : f32
    %285 = vector.broadcast %cst_89 : f32 to vector<1x256xf32>
    %286 = arith.subf %285, %275 : vector<1x256xf32>
    %cst_90 = arith.constant 0.000000e+00 : f32
    %287 = vector.broadcast %cst_90 : f32 to vector<1x256xf32>
    %288 = arith.maximumf %287, %286 : vector<1x256xf32>
    %289 = math.absf %275 : vector<1x256xf32>
    %cst_91 = arith.constant 1.000000e+00 : f32
    %290 = vector.broadcast %cst_91 : f32 to vector<1x256xf32>
    %291 = arith.subf %290, %289 : vector<1x256xf32>
    %cst_92 = arith.constant 0.000000e+00 : f32
    %292 = vector.broadcast %cst_92 : f32 to vector<1x256xf32>
    %293 = arith.maximumf %292, %275 : vector<1x256xf32>
    %294 = arith.mulf %288, %32 : vector<1x256xf32>
    %295 = arith.mulf %291, %33 : vector<1x256xf32>
    %296 = arith.mulf %279, %294 : vector<1x256xf32>
    %297 = vector.broadcast %296 : vector<1x256xf32> to vector<4x256xf32>
    %298 = arith.mulf %297, %12 : vector<4x256xf32>
    %299 = arith.mulf %279, %295 : vector<1x256xf32>
    %300 = vector.broadcast %299 : vector<1x256xf32> to vector<4x256xf32>
    %301 = arith.mulf %300, %13 : vector<4x256xf32>
    %302 = arith.addf %298, %301 : vector<4x256xf32>
    %303 = arith.mulf %279, %293 : vector<1x256xf32>
    %304 = vector.broadcast %303 : vector<1x256xf32> to vector<4x256xf32>
    %305 = arith.mulf %304, %14 : vector<4x256xf32>
    %306 = arith.addf %302, %305 : vector<4x256xf32>
    %307 = arith.mulf %282, %294 : vector<1x256xf32>
    %308 = vector.broadcast %307 : vector<1x256xf32> to vector<4x256xf32>
    %309 = arith.mulf %308, %17 : vector<4x256xf32>
    %310 = arith.addf %306, %309 : vector<4x256xf32>
    %311 = arith.mulf %282, %295 : vector<1x256xf32>
    %312 = vector.broadcast %311 : vector<1x256xf32> to vector<4x256xf32>
    %313 = arith.mulf %312, %18 : vector<4x256xf32>
    %314 = arith.addf %310, %313 : vector<4x256xf32>
    %315 = arith.mulf %282, %293 : vector<1x256xf32>
    %316 = vector.broadcast %315 : vector<1x256xf32> to vector<4x256xf32>
    %317 = arith.mulf %316, %19 : vector<4x256xf32>
    %318 = arith.addf %314, %317 : vector<4x256xf32>
    %319 = arith.mulf %284, %294 : vector<1x256xf32>
    %320 = vector.broadcast %319 : vector<1x256xf32> to vector<4x256xf32>
    %321 = arith.mulf %320, %22 : vector<4x256xf32>
    %322 = arith.addf %318, %321 : vector<4x256xf32>
    %323 = arith.mulf %284, %295 : vector<1x256xf32>
    %324 = vector.broadcast %323 : vector<1x256xf32> to vector<4x256xf32>
    %325 = arith.mulf %324, %23 : vector<4x256xf32>
    %326 = arith.addf %322, %325 : vector<4x256xf32>
    %327 = arith.mulf %284, %293 : vector<1x256xf32>
    %328 = vector.broadcast %327 : vector<1x256xf32> to vector<4x256xf32>
    %329 = arith.mulf %328, %24 : vector<4x256xf32>
    %330 = arith.addf %326, %329 : vector<4x256xf32>
    %331 = vector.extract_strided_slice %91 {offsets = [0, 3], sizes = [4, 1], strides = [1, 1]} : vector<4x9xf32> to vector<4x1xf32>
    %332 = vector.broadcast %331 : vector<4x1xf32> to vector<4x256xf32>
    %333 = arith.mulf %332, %330 : vector<4x256xf32>
    %334 = arith.addf %273, %333 : vector<4x256xf32>
    %c8 = arith.constant 8 : index
    %c0_93 = arith.constant 0 : index
    %335 = vector.load %arg9[%c8, %c0_93] : memref<18x256xf32, #tpu.memory_space<vmem>>, vector<1x256xf32>
    %c9 = arith.constant 9 : index
    %c0_94 = arith.constant 0 : index
    %336 = vector.load %arg9[%c9, %c0_94] : memref<18x256xf32, #tpu.memory_space<vmem>>, vector<1x256xf32>
    %cst_95 = arith.constant 0.000000e+00 : f32
    %337 = vector.broadcast %cst_95 : f32 to vector<1x256xf32>
    %338 = arith.subf %337, %335 : vector<1x256xf32>
    %cst_96 = arith.constant 0.000000e+00 : f32
    %339 = vector.broadcast %cst_96 : f32 to vector<1x256xf32>
    %340 = arith.maximumf %339, %338 : vector<1x256xf32>
    %341 = math.absf %335 : vector<1x256xf32>
    %cst_97 = arith.constant 1.000000e+00 : f32
    %342 = vector.broadcast %cst_97 : f32 to vector<1x256xf32>
    %343 = arith.subf %342, %341 : vector<1x256xf32>
    %cst_98 = arith.constant 0.000000e+00 : f32
    %344 = vector.broadcast %cst_98 : f32 to vector<1x256xf32>
    %345 = arith.maximumf %344, %335 : vector<1x256xf32>
    %cst_99 = arith.constant 0.000000e+00 : f32
    %346 = vector.broadcast %cst_99 : f32 to vector<1x256xf32>
    %347 = arith.subf %346, %336 : vector<1x256xf32>
    %cst_100 = arith.constant 0.000000e+00 : f32
    %348 = vector.broadcast %cst_100 : f32 to vector<1x256xf32>
    %349 = arith.maximumf %348, %347 : vector<1x256xf32>
    %350 = math.absf %336 : vector<1x256xf32>
    %cst_101 = arith.constant 1.000000e+00 : f32
    %351 = vector.broadcast %cst_101 : f32 to vector<1x256xf32>
    %352 = arith.subf %351, %350 : vector<1x256xf32>
    %cst_102 = arith.constant 0.000000e+00 : f32
    %353 = vector.broadcast %cst_102 : f32 to vector<1x256xf32>
    %354 = arith.maximumf %353, %336 : vector<1x256xf32>
    %355 = arith.mulf %349, %33 : vector<1x256xf32>
    %356 = arith.mulf %354, %34 : vector<1x256xf32>
    %357 = arith.mulf %340, %355 : vector<1x256xf32>
    %358 = vector.broadcast %357 : vector<1x256xf32> to vector<4x256xf32>
    %359 = arith.mulf %358, %13 : vector<4x256xf32>
    %360 = arith.mulf %340, %352 : vector<1x256xf32>
    %361 = vector.broadcast %360 : vector<1x256xf32> to vector<4x256xf32>
    %362 = arith.mulf %361, %14 : vector<4x256xf32>
    %363 = arith.addf %359, %362 : vector<4x256xf32>
    %364 = arith.mulf %340, %356 : vector<1x256xf32>
    %365 = vector.broadcast %364 : vector<1x256xf32> to vector<4x256xf32>
    %366 = arith.mulf %365, %15 : vector<4x256xf32>
    %367 = arith.addf %363, %366 : vector<4x256xf32>
    %368 = arith.mulf %343, %355 : vector<1x256xf32>
    %369 = vector.broadcast %368 : vector<1x256xf32> to vector<4x256xf32>
    %370 = arith.mulf %369, %18 : vector<4x256xf32>
    %371 = arith.addf %367, %370 : vector<4x256xf32>
    %372 = arith.mulf %343, %352 : vector<1x256xf32>
    %373 = vector.broadcast %372 : vector<1x256xf32> to vector<4x256xf32>
    %374 = arith.mulf %373, %19 : vector<4x256xf32>
    %375 = arith.addf %371, %374 : vector<4x256xf32>
    %376 = arith.mulf %343, %356 : vector<1x256xf32>
    %377 = vector.broadcast %376 : vector<1x256xf32> to vector<4x256xf32>
    %378 = arith.mulf %377, %20 : vector<4x256xf32>
    %379 = arith.addf %375, %378 : vector<4x256xf32>
    %380 = arith.mulf %345, %355 : vector<1x256xf32>
    %381 = vector.broadcast %380 : vector<1x256xf32> to vector<4x256xf32>
    %382 = arith.mulf %381, %23 : vector<4x256xf32>
    %383 = arith.addf %379, %382 : vector<4x256xf32>
    %384 = arith.mulf %345, %352 : vector<1x256xf32>
    %385 = vector.broadcast %384 : vector<1x256xf32> to vector<4x256xf32>
    %386 = arith.mulf %385, %24 : vector<4x256xf32>
    %387 = arith.addf %383, %386 : vector<4x256xf32>
    %388 = arith.mulf %345, %356 : vector<1x256xf32>
    %389 = vector.broadcast %388 : vector<1x256xf32> to vector<4x256xf32>
    %390 = arith.mulf %389, %25 : vector<4x256xf32>
    %391 = arith.addf %387, %390 : vector<4x256xf32>
    %392 = vector.extract_strided_slice %91 {offsets = [0, 4], sizes = [4, 1], strides = [1, 1]} : vector<4x9xf32> to vector<4x1xf32>
    %393 = vector.broadcast %392 : vector<4x1xf32> to vector<4x256xf32>
    %394 = arith.mulf %393, %391 : vector<4x256xf32>
    %395 = arith.addf %334, %394 : vector<4x256xf32>
    %c10 = arith.constant 10 : index
    %c0_103 = arith.constant 0 : index
    %396 = vector.load %arg9[%c10, %c0_103] : memref<18x256xf32, #tpu.memory_space<vmem>>, vector<1x256xf32>
    %c11 = arith.constant 11 : index
    %c0_104 = arith.constant 0 : index
    %397 = vector.load %arg9[%c11, %c0_104] : memref<18x256xf32, #tpu.memory_space<vmem>>, vector<1x256xf32>
    %cst_105 = arith.constant 0.000000e+00 : f32
    %398 = vector.broadcast %cst_105 : f32 to vector<1x256xf32>
    %399 = arith.subf %398, %396 : vector<1x256xf32>
    %cst_106 = arith.constant 0.000000e+00 : f32
    %400 = vector.broadcast %cst_106 : f32 to vector<1x256xf32>
    %401 = arith.maximumf %400, %399 : vector<1x256xf32>
    %402 = math.absf %396 : vector<1x256xf32>
    %cst_107 = arith.constant 1.000000e+00 : f32
    %403 = vector.broadcast %cst_107 : f32 to vector<1x256xf32>
    %404 = arith.subf %403, %402 : vector<1x256xf32>
    %cst_108 = arith.constant 0.000000e+00 : f32
    %405 = vector.broadcast %cst_108 : f32 to vector<1x256xf32>
    %406 = arith.maximumf %405, %396 : vector<1x256xf32>
    %cst_109 = arith.constant 0.000000e+00 : f32
    %407 = vector.broadcast %cst_109 : f32 to vector<1x256xf32>
    %408 = arith.subf %407, %397 : vector<1x256xf32>
    %cst_110 = arith.constant 0.000000e+00 : f32
    %409 = vector.broadcast %cst_110 : f32 to vector<1x256xf32>
    %410 = arith.maximumf %409, %408 : vector<1x256xf32>
    %411 = math.absf %397 : vector<1x256xf32>
    %cst_111 = arith.constant 1.000000e+00 : f32
    %412 = vector.broadcast %cst_111 : f32 to vector<1x256xf32>
    %413 = arith.subf %412, %411 : vector<1x256xf32>
    %cst_112 = arith.constant 0.000000e+00 : f32
    %414 = vector.broadcast %cst_112 : f32 to vector<1x256xf32>
    %415 = arith.maximumf %414, %397 : vector<1x256xf32>
    %416 = arith.mulf %413, %34 : vector<1x256xf32>
    %417 = arith.mulf %415, %35 : vector<1x256xf32>
    %418 = arith.mulf %401, %410 : vector<1x256xf32>
    %419 = vector.broadcast %418 : vector<1x256xf32> to vector<4x256xf32>
    %420 = arith.mulf %419, %14 : vector<4x256xf32>
    %421 = arith.mulf %401, %416 : vector<1x256xf32>
    %422 = vector.broadcast %421 : vector<1x256xf32> to vector<4x256xf32>
    %423 = arith.mulf %422, %15 : vector<4x256xf32>
    %424 = arith.addf %420, %423 : vector<4x256xf32>
    %425 = arith.mulf %401, %417 : vector<1x256xf32>
    %426 = vector.broadcast %425 : vector<1x256xf32> to vector<4x256xf32>
    %427 = arith.mulf %426, %16 : vector<4x256xf32>
    %428 = arith.addf %424, %427 : vector<4x256xf32>
    %429 = arith.mulf %404, %410 : vector<1x256xf32>
    %430 = vector.broadcast %429 : vector<1x256xf32> to vector<4x256xf32>
    %431 = arith.mulf %430, %19 : vector<4x256xf32>
    %432 = arith.addf %428, %431 : vector<4x256xf32>
    %433 = arith.mulf %404, %416 : vector<1x256xf32>
    %434 = vector.broadcast %433 : vector<1x256xf32> to vector<4x256xf32>
    %435 = arith.mulf %434, %20 : vector<4x256xf32>
    %436 = arith.addf %432, %435 : vector<4x256xf32>
    %437 = arith.mulf %404, %417 : vector<1x256xf32>
    %438 = vector.broadcast %437 : vector<1x256xf32> to vector<4x256xf32>
    %439 = arith.mulf %438, %21 : vector<4x256xf32>
    %440 = arith.addf %436, %439 : vector<4x256xf32>
    %441 = arith.mulf %406, %410 : vector<1x256xf32>
    %442 = vector.broadcast %441 : vector<1x256xf32> to vector<4x256xf32>
    %443 = arith.mulf %442, %24 : vector<4x256xf32>
    %444 = arith.addf %440, %443 : vector<4x256xf32>
    %445 = arith.mulf %406, %416 : vector<1x256xf32>
    %446 = vector.broadcast %445 : vector<1x256xf32> to vector<4x256xf32>
    %447 = arith.mulf %446, %25 : vector<4x256xf32>
    %448 = arith.addf %444, %447 : vector<4x256xf32>
    %449 = arith.mulf %406, %417 : vector<1x256xf32>
    %450 = vector.broadcast %449 : vector<1x256xf32> to vector<4x256xf32>
    %451 = arith.mulf %450, %26 : vector<4x256xf32>
    %452 = arith.addf %448, %451 : vector<4x256xf32>
    %453 = vector.extract_strided_slice %91 {offsets = [0, 5], sizes = [4, 1], strides = [1, 1]} : vector<4x9xf32> to vector<4x1xf32>
    %454 = vector.broadcast %453 : vector<4x1xf32> to vector<4x256xf32>
    %455 = arith.mulf %454, %452 : vector<4x256xf32>
    %456 = arith.addf %395, %455 : vector<4x256xf32>
    %c12 = arith.constant 12 : index
    %c0_113 = arith.constant 0 : index
    %457 = vector.load %arg9[%c12, %c0_113] : memref<18x256xf32, #tpu.memory_space<vmem>>, vector<1x256xf32>
    %c13 = arith.constant 13 : index
    %c0_114 = arith.constant 0 : index
    %458 = vector.load %arg9[%c13, %c0_114] : memref<18x256xf32, #tpu.memory_space<vmem>>, vector<1x256xf32>
    %cst_115 = arith.constant 0.000000e+00 : f32
    %459 = vector.broadcast %cst_115 : f32 to vector<1x256xf32>
    %460 = arith.subf %459, %457 : vector<1x256xf32>
    %cst_116 = arith.constant 0.000000e+00 : f32
    %461 = vector.broadcast %cst_116 : f32 to vector<1x256xf32>
    %462 = arith.maximumf %461, %460 : vector<1x256xf32>
    %463 = math.absf %457 : vector<1x256xf32>
    %cst_117 = arith.constant 1.000000e+00 : f32
    %464 = vector.broadcast %cst_117 : f32 to vector<1x256xf32>
    %465 = arith.subf %464, %463 : vector<1x256xf32>
    %cst_118 = arith.constant 0.000000e+00 : f32
    %466 = vector.broadcast %cst_118 : f32 to vector<1x256xf32>
    %467 = arith.maximumf %466, %457 : vector<1x256xf32>
    %cst_119 = arith.constant 0.000000e+00 : f32
    %468 = vector.broadcast %cst_119 : f32 to vector<1x256xf32>
    %469 = arith.subf %468, %458 : vector<1x256xf32>
    %cst_120 = arith.constant 0.000000e+00 : f32
    %470 = vector.broadcast %cst_120 : f32 to vector<1x256xf32>
    %471 = arith.maximumf %470, %469 : vector<1x256xf32>
    %472 = math.absf %458 : vector<1x256xf32>
    %cst_121 = arith.constant 1.000000e+00 : f32
    %473 = vector.broadcast %cst_121 : f32 to vector<1x256xf32>
    %474 = arith.subf %473, %472 : vector<1x256xf32>
    %cst_122 = arith.constant 0.000000e+00 : f32
    %475 = vector.broadcast %cst_122 : f32 to vector<1x256xf32>
    %476 = arith.maximumf %475, %458 : vector<1x256xf32>
    %477 = arith.mulf %471, %32 : vector<1x256xf32>
    %478 = arith.mulf %474, %33 : vector<1x256xf32>
    %479 = arith.mulf %462, %477 : vector<1x256xf32>
    %480 = vector.broadcast %479 : vector<1x256xf32> to vector<4x256xf32>
    %481 = arith.mulf %480, %17 : vector<4x256xf32>
    %482 = arith.mulf %462, %478 : vector<1x256xf32>
    %483 = vector.broadcast %482 : vector<1x256xf32> to vector<4x256xf32>
    %484 = arith.mulf %483, %18 : vector<4x256xf32>
    %485 = arith.addf %481, %484 : vector<4x256xf32>
    %486 = arith.mulf %462, %476 : vector<1x256xf32>
    %487 = vector.broadcast %486 : vector<1x256xf32> to vector<4x256xf32>
    %488 = arith.mulf %487, %19 : vector<4x256xf32>
    %489 = arith.addf %485, %488 : vector<4x256xf32>
    %490 = arith.mulf %465, %477 : vector<1x256xf32>
    %491 = vector.broadcast %490 : vector<1x256xf32> to vector<4x256xf32>
    %492 = arith.mulf %491, %22 : vector<4x256xf32>
    %493 = arith.addf %489, %492 : vector<4x256xf32>
    %494 = arith.mulf %465, %478 : vector<1x256xf32>
    %495 = vector.broadcast %494 : vector<1x256xf32> to vector<4x256xf32>
    %496 = arith.mulf %495, %23 : vector<4x256xf32>
    %497 = arith.addf %493, %496 : vector<4x256xf32>
    %498 = arith.mulf %465, %476 : vector<1x256xf32>
    %499 = vector.broadcast %498 : vector<1x256xf32> to vector<4x256xf32>
    %500 = arith.mulf %499, %24 : vector<4x256xf32>
    %501 = arith.addf %497, %500 : vector<4x256xf32>
    %502 = arith.mulf %467, %477 : vector<1x256xf32>
    %503 = vector.broadcast %502 : vector<1x256xf32> to vector<4x256xf32>
    %504 = arith.mulf %503, %27 : vector<4x256xf32>
    %505 = arith.addf %501, %504 : vector<4x256xf32>
    %506 = arith.mulf %467, %478 : vector<1x256xf32>
    %507 = vector.broadcast %506 : vector<1x256xf32> to vector<4x256xf32>
    %508 = arith.mulf %507, %28 : vector<4x256xf32>
    %509 = arith.addf %505, %508 : vector<4x256xf32>
    %510 = arith.mulf %467, %476 : vector<1x256xf32>
    %511 = vector.broadcast %510 : vector<1x256xf32> to vector<4x256xf32>
    %512 = arith.mulf %511, %29 : vector<4x256xf32>
    %513 = arith.addf %509, %512 : vector<4x256xf32>
    %514 = vector.extract_strided_slice %91 {offsets = [0, 6], sizes = [4, 1], strides = [1, 1]} : vector<4x9xf32> to vector<4x1xf32>
    %515 = vector.broadcast %514 : vector<4x1xf32> to vector<4x256xf32>
    %516 = arith.mulf %515, %513 : vector<4x256xf32>
    %517 = arith.addf %456, %516 : vector<4x256xf32>
    %c14 = arith.constant 14 : index
    %c0_123 = arith.constant 0 : index
    %518 = vector.load %arg9[%c14, %c0_123] : memref<18x256xf32, #tpu.memory_space<vmem>>, vector<1x256xf32>
    %c15 = arith.constant 15 : index
    %c0_124 = arith.constant 0 : index
    %519 = vector.load %arg9[%c15, %c0_124] : memref<18x256xf32, #tpu.memory_space<vmem>>, vector<1x256xf32>
    %cst_125 = arith.constant 0.000000e+00 : f32
    %520 = vector.broadcast %cst_125 : f32 to vector<1x256xf32>
    %521 = arith.subf %520, %518 : vector<1x256xf32>
    %cst_126 = arith.constant 0.000000e+00 : f32
    %522 = vector.broadcast %cst_126 : f32 to vector<1x256xf32>
    %523 = arith.maximumf %522, %521 : vector<1x256xf32>
    %524 = math.absf %518 : vector<1x256xf32>
    %cst_127 = arith.constant 1.000000e+00 : f32
    %525 = vector.broadcast %cst_127 : f32 to vector<1x256xf32>
    %526 = arith.subf %525, %524 : vector<1x256xf32>
    %cst_128 = arith.constant 0.000000e+00 : f32
    %527 = vector.broadcast %cst_128 : f32 to vector<1x256xf32>
    %528 = arith.maximumf %527, %518 : vector<1x256xf32>
    %cst_129 = arith.constant 0.000000e+00 : f32
    %529 = vector.broadcast %cst_129 : f32 to vector<1x256xf32>
    %530 = arith.subf %529, %519 : vector<1x256xf32>
    %cst_130 = arith.constant 0.000000e+00 : f32
    %531 = vector.broadcast %cst_130 : f32 to vector<1x256xf32>
    %532 = arith.maximumf %531, %530 : vector<1x256xf32>
    %533 = math.absf %519 : vector<1x256xf32>
    %cst_131 = arith.constant 1.000000e+00 : f32
    %534 = vector.broadcast %cst_131 : f32 to vector<1x256xf32>
    %535 = arith.subf %534, %533 : vector<1x256xf32>
    %cst_132 = arith.constant 0.000000e+00 : f32
    %536 = vector.broadcast %cst_132 : f32 to vector<1x256xf32>
    %537 = arith.maximumf %536, %519 : vector<1x256xf32>
    %538 = arith.mulf %532, %33 : vector<1x256xf32>
    %539 = arith.mulf %537, %34 : vector<1x256xf32>
    %540 = arith.mulf %523, %538 : vector<1x256xf32>
    %541 = vector.broadcast %540 : vector<1x256xf32> to vector<4x256xf32>
    %542 = arith.mulf %541, %18 : vector<4x256xf32>
    %543 = arith.mulf %523, %535 : vector<1x256xf32>
    %544 = vector.broadcast %543 : vector<1x256xf32> to vector<4x256xf32>
    %545 = arith.mulf %544, %19 : vector<4x256xf32>
    %546 = arith.addf %542, %545 : vector<4x256xf32>
    %547 = arith.mulf %523, %539 : vector<1x256xf32>
    %548 = vector.broadcast %547 : vector<1x256xf32> to vector<4x256xf32>
    %549 = arith.mulf %548, %20 : vector<4x256xf32>
    %550 = arith.addf %546, %549 : vector<4x256xf32>
    %551 = arith.mulf %526, %538 : vector<1x256xf32>
    %552 = vector.broadcast %551 : vector<1x256xf32> to vector<4x256xf32>
    %553 = arith.mulf %552, %23 : vector<4x256xf32>
    %554 = arith.addf %550, %553 : vector<4x256xf32>
    %555 = arith.mulf %526, %535 : vector<1x256xf32>
    %556 = vector.broadcast %555 : vector<1x256xf32> to vector<4x256xf32>
    %557 = arith.mulf %556, %24 : vector<4x256xf32>
    %558 = arith.addf %554, %557 : vector<4x256xf32>
    %559 = arith.mulf %526, %539 : vector<1x256xf32>
    %560 = vector.broadcast %559 : vector<1x256xf32> to vector<4x256xf32>
    %561 = arith.mulf %560, %25 : vector<4x256xf32>
    %562 = arith.addf %558, %561 : vector<4x256xf32>
    %563 = arith.mulf %528, %538 : vector<1x256xf32>
    %564 = vector.broadcast %563 : vector<1x256xf32> to vector<4x256xf32>
    %565 = arith.mulf %564, %28 : vector<4x256xf32>
    %566 = arith.addf %562, %565 : vector<4x256xf32>
    %567 = arith.mulf %528, %535 : vector<1x256xf32>
    %568 = vector.broadcast %567 : vector<1x256xf32> to vector<4x256xf32>
    %569 = arith.mulf %568, %29 : vector<4x256xf32>
    %570 = arith.addf %566, %569 : vector<4x256xf32>
    %571 = arith.mulf %528, %539 : vector<1x256xf32>
    %572 = vector.broadcast %571 : vector<1x256xf32> to vector<4x256xf32>
    %573 = arith.mulf %572, %30 : vector<4x256xf32>
    %574 = arith.addf %570, %573 : vector<4x256xf32>
    %575 = vector.extract_strided_slice %91 {offsets = [0, 7], sizes = [4, 1], strides = [1, 1]} : vector<4x9xf32> to vector<4x1xf32>
    %576 = vector.broadcast %575 : vector<4x1xf32> to vector<4x256xf32>
    %577 = arith.mulf %576, %574 : vector<4x256xf32>
    %578 = arith.addf %517, %577 : vector<4x256xf32>
    %c16 = arith.constant 16 : index
    %c0_133 = arith.constant 0 : index
    %579 = vector.load %arg9[%c16, %c0_133] : memref<18x256xf32, #tpu.memory_space<vmem>>, vector<1x256xf32>
    %c17 = arith.constant 17 : index
    %c0_134 = arith.constant 0 : index
    %580 = vector.load %arg9[%c17, %c0_134] : memref<18x256xf32, #tpu.memory_space<vmem>>, vector<1x256xf32>
    %cst_135 = arith.constant 0.000000e+00 : f32
    %581 = vector.broadcast %cst_135 : f32 to vector<1x256xf32>
    %582 = arith.subf %581, %579 : vector<1x256xf32>
    %cst_136 = arith.constant 0.000000e+00 : f32
    %583 = vector.broadcast %cst_136 : f32 to vector<1x256xf32>
    %584 = arith.maximumf %583, %582 : vector<1x256xf32>
    %585 = math.absf %579 : vector<1x256xf32>
    %cst_137 = arith.constant 1.000000e+00 : f32
    %586 = vector.broadcast %cst_137 : f32 to vector<1x256xf32>
    %587 = arith.subf %586, %585 : vector<1x256xf32>
    %cst_138 = arith.constant 0.000000e+00 : f32
    %588 = vector.broadcast %cst_138 : f32 to vector<1x256xf32>
    %589 = arith.maximumf %588, %579 : vector<1x256xf32>
    %cst_139 = arith.constant 0.000000e+00 : f32
    %590 = vector.broadcast %cst_139 : f32 to vector<1x256xf32>
    %591 = arith.subf %590, %580 : vector<1x256xf32>
    %cst_140 = arith.constant 0.000000e+00 : f32
    %592 = vector.broadcast %cst_140 : f32 to vector<1x256xf32>
    %593 = arith.maximumf %592, %591 : vector<1x256xf32>
    %594 = math.absf %580 : vector<1x256xf32>
    %cst_141 = arith.constant 1.000000e+00 : f32
    %595 = vector.broadcast %cst_141 : f32 to vector<1x256xf32>
    %596 = arith.subf %595, %594 : vector<1x256xf32>
    %cst_142 = arith.constant 0.000000e+00 : f32
    %597 = vector.broadcast %cst_142 : f32 to vector<1x256xf32>
    %598 = arith.maximumf %597, %580 : vector<1x256xf32>
    %599 = arith.mulf %596, %34 : vector<1x256xf32>
    %600 = arith.mulf %598, %35 : vector<1x256xf32>
    %601 = arith.mulf %584, %593 : vector<1x256xf32>
    %602 = vector.broadcast %601 : vector<1x256xf32> to vector<4x256xf32>
    %603 = arith.mulf %602, %19 : vector<4x256xf32>
    %604 = arith.mulf %584, %599 : vector<1x256xf32>
    %605 = vector.broadcast %604 : vector<1x256xf32> to vector<4x256xf32>
    %606 = arith.mulf %605, %20 : vector<4x256xf32>
    %607 = arith.addf %603, %606 : vector<4x256xf32>
    %608 = arith.mulf %584, %600 : vector<1x256xf32>
    %609 = vector.broadcast %608 : vector<1x256xf32> to vector<4x256xf32>
    %610 = arith.mulf %609, %21 : vector<4x256xf32>
    %611 = arith.addf %607, %610 : vector<4x256xf32>
    %612 = arith.mulf %587, %593 : vector<1x256xf32>
    %613 = vector.broadcast %612 : vector<1x256xf32> to vector<4x256xf32>
    %614 = arith.mulf %613, %24 : vector<4x256xf32>
    %615 = arith.addf %611, %614 : vector<4x256xf32>
    %616 = arith.mulf %587, %599 : vector<1x256xf32>
    %617 = vector.broadcast %616 : vector<1x256xf32> to vector<4x256xf32>
    %618 = arith.mulf %617, %25 : vector<4x256xf32>
    %619 = arith.addf %615, %618 : vector<4x256xf32>
    %620 = arith.mulf %587, %600 : vector<1x256xf32>
    %621 = vector.broadcast %620 : vector<1x256xf32> to vector<4x256xf32>
    %622 = arith.mulf %621, %26 : vector<4x256xf32>
    %623 = arith.addf %619, %622 : vector<4x256xf32>
    %624 = arith.mulf %589, %593 : vector<1x256xf32>
    %625 = vector.broadcast %624 : vector<1x256xf32> to vector<4x256xf32>
    %626 = arith.mulf %625, %29 : vector<4x256xf32>
    %627 = arith.addf %623, %626 : vector<4x256xf32>
    %628 = arith.mulf %589, %599 : vector<1x256xf32>
    %629 = vector.broadcast %628 : vector<1x256xf32> to vector<4x256xf32>
    %630 = arith.mulf %629, %30 : vector<4x256xf32>
    %631 = arith.addf %627, %630 : vector<4x256xf32>
    %632 = arith.mulf %589, %600 : vector<1x256xf32>
    %633 = vector.broadcast %632 : vector<1x256xf32> to vector<4x256xf32>
    %634 = arith.mulf %633, %31 : vector<4x256xf32>
    %635 = arith.addf %631, %634 : vector<4x256xf32>
    %636 = vector.extract_strided_slice %91 {offsets = [0, 8], sizes = [4, 1], strides = [1, 1]} : vector<4x9xf32> to vector<4x1xf32>
    %637 = vector.broadcast %636 : vector<4x1xf32> to vector<4x256xf32>
    %638 = arith.mulf %637, %635 : vector<4x256xf32>
    %639 = arith.addf %578, %638 : vector<4x256xf32>
    %c0_143 = arith.constant 0 : index
    %c0_144 = arith.constant 0 : index
    %640 = vector.load %arg5[%c0_143, %c0_144] : memref<32x4xf32, #tpu.memory_space<vmem>>, vector<32x4xf32>
    %cst_145 = arith.constant dense<0.000000e+00> : vector<32x256xf32>
    %641 = tpu.matmul %640, %639, %cst_145 {dimension_numbers = #tpu.dot_dimension_numbers<[1], [0], [0], [1], [0, 0, 1, 1], [], []>} : vector<32x4xf32>, vector<4x256xf32>, vector<32x256xf32> -> vector<32x256xf32>
    %cst_146 = arith.constant 3.000000e+00 : f32
    %642 = vector.broadcast %cst_146 : f32 to vector<32x256xf32>
    %643 = arith.addf %641, %642 : vector<32x256xf32>
    %cst_147 = arith.constant 0.000000e+00 : f32
    %cst_148 = arith.constant 6.000000e+00 : f32
    %644 = vector.broadcast %cst_147 : f32 to vector<32x256xf32>
    %645 = arith.maximumf %644, %643 : vector<32x256xf32>
    %646 = vector.broadcast %cst_148 : f32 to vector<32x256xf32>
    %647 = arith.minimumf %646, %645 : vector<32x256xf32>
    %648 = arith.mulf %641, %647 : vector<32x256xf32>
    %cst_149 = arith.constant 0.166666672 : f32
    %649 = vector.broadcast %cst_149 : f32 to vector<32x256xf32>
    %650 = arith.mulf %648, %649 : vector<32x256xf32>
    %c0_150 = arith.constant 0 : index
    %c0_151 = arith.constant 0 : index
    %c0_152 = arith.constant 0 : index
    %651 = vector.load %arg7[%c0_150, %c0_151, %c0_152] : memref<1x32x256xf32, #tpu.memory_space<vmem>>, vector<1x32x256xf32>
    %652 = vector.shape_cast %651 : vector<1x32x256xf32> to vector<32x256xf32>
    %653 = vector.shape_cast %650 : vector<32x256xf32> to vector<1x32x256xf32>
    tpu.vector_store %arg7[%c0_150, %c0_151, %c0_152], %653 {strides = array<i32>} : memref<1x32x256xf32, #tpu.memory_space<vmem>>, vector<1x32x256xf32>,
    return
  }
  func.func @transform_0(%arg0: i32) -> (i32, i32, i32) {
    %c0_i32 = arith.constant 0 : i32
    %c0_i32_0 = arith.constant 0 : i32
    %c0_i32_1 = arith.constant 0 : i32
    return %arg0, %c0_i32, %c0_i32_0 : i32, i32, i32
  }
  func.func @transform_1(%arg0: i32) -> (i32, i32) {
    %c0_i32 = arith.constant 0 : i32
    %c0_i32_0 = arith.constant 0 : i32
    %c0_i32_1 = arith.constant 0 : i32
    return %c0_i32, %c0_i32_0 : i32, i32
  }
  func.func @transform_2(%arg0: i32) -> (i32, i32) {
    %c0_i32 = arith.constant 0 : i32
    %c0_i32_0 = arith.constant 0 : i32
    %c0_i32_1 = arith.constant 0 : i32
    return %c0_i32, %c0_i32_0 : i32, i32
  }
  func.func @transform_3(%arg0: i32) -> (i32, i32) {
    %c0_i32 = arith.constant 0 : i32
    %c0_i32_0 = arith.constant 0 : i32
    %c0_i32_1 = arith.constant 0 : i32
    return %c0_i32, %c0_i32_0 : i32, i32
  }
  func.func @transform_4(%arg0: i32) -> (i32, i32) {
    %c0_i32 = arith.constant 0 : i32
    %c0_i32_0 = arith.constant 0 : i32
    %c0_i32_1 = arith.constant 0 : i32
    return %c0_i32, %c0_i32_0 : i32, i32
  }
  func.func @transform_5(%arg0: i32) -> (i32, i32) {
    %c0_i32 = arith.constant 0 : i32
    %c0_i32_0 = arith.constant 0 : i32
    %c0_i32_1 = arith.constant 0 : i32
    return %c0_i32, %c0_i32_0 : i32, i32
  }
  func.func @transform_6(%arg0: i32) -> (i32, i32, i32) {
    %c0_i32 = arith.constant 0 : i32
    %c0_i32_0 = arith.constant 0 : i32
    %c0_i32_1 = arith.constant 0 : i32
    return %arg0, %c0_i32, %c0_i32_0 : i32, i32, i32
  }
}

</mosaic_0001>

<bundles_post_ra>
// kernel: mb_deform_embedding.1
= control target key start
LH: loop header
LB: loop body
LE: loop exit
PB: predicated region body
PF: predicated region fallthrough
CT: control target
= control target key end

     0   :  { %s2650_s21 = smov 0   ;;  %s4268_s0 = inlined_call_operand.vmem [shape: f32[2,4,256], index: 0, kind: input, shape index: {}]   ;;  %s4269_s1 = inlined_call_operand.vmem [shape: f32[4,9], index: 1, kind: input, shape index: {}]   ;;  %s4270_s2 = inlined_call_operand.vmem [shape: f32[18,4], index: 2, kind: input, shape index: {}]   ;;  %s4271_s3 = inlined_call_operand.vmem [shape: f32[4,9], index: 3, kind: input, shape index: {}]   ;;  %s4272_s4 = inlined_call_operand.vmem [shape: f32[32,4], index: 4, kind: input, shape index: {}]   ;;  %s4273_s5 = inlined_call_operand.vmem [shape: f32[5,256], index: 5, kind: input, shape index: {}]   ;;  %s4274_s6 = inlined_call_operand.vmem [shape: f32[2,32,256], index: 6, kind: output, shape index: {}]  }
   0x1 LB: > { %s2475_s22 = sadd.s32 4294967295, %s2579_s21   ;;  %p2479_p0 = scmp.ge.s32.totalorder %s2579_s21, 1  ;;  %s2579_s21 = sphi %s2650_s21, %s16_s21  }
   0x2   : > { %p212_p1 = scmp.lt.s32.totalorder %s2579_s21, 3 }
   0x4   : > { %p213_p2 = pnand %p2479_p0, %p212_p1 }
   0x6   : > { %216 = sbr.rel (%p213_p2) target bundleno = 837 (0x345), region = 44 }
   0xb   : > { %v2661_v0 = vld [vmem:[%s4269_s1] sm:$0xf]  ;;  %p242_p3 = scmp.lt.s32.totalorder %s2475_s22, 1  ;;  %v2581_v1 = vmov 2   ;;  %v2582_v2 = vmov 1   ;;  %v4275_v3 = vmov 0.0   ;;  %v270_v32 = vlaneseq }
   0xc   : > { %2551 = vset.pattern.permute.xlu1 %v2581_v1  ;;  %2550 = vset.pattern.permute.xlu0 %v2582_v2  ;;  %252 = vst [vmem:[#allocation2] sm:$0xf] %v4275_v3  ;;  %253 = vst [vmem:[#allocation2 + $0xc] sm:$0xf] %v4275_v3  ;;  %v2584_v5 = vmov 3   ;;  %v2585_v6 = vmov 4  }
   0xd   : > { %347 = vperm.xlu1 %2551, %v2661_v0   ;;  %304 = vperm.xlu0 %2550, %v2661_v0   ;;  %s4644_s22 = smov (!%p242_p3, %s2475_s22), 1  ;;  %s2586_s29 = smov 17   ;;  %v2590_v11 = vmov 5   ;;  %v2592_v12 = vmov 6   ;;  %v2593_v13 = vmov 0   ;;  %v2595_v15 = vmov 7  }
   0xe   : > { %555 = vmatprep.mubr.f32.mxu0 %v4275_v3  ;;  %2347 = vmatprep.mubr.f32.mxu1 %v4275_v3  ;;  %s2506_s25 = sshll.u32 %s4644_s22, 3  ;;  %s2587_s30 = smov 16   ;;  %v2598_v16 = vmov 8   ;;  %v2756_v17 = vld [vmem:[%s4271_s3] sm:$0xf]  ;;  %v271_v35 = vshrl.u32 %v270_v32, 7 }
   0xf   : > { %s246_s28 = scalar_lea.vmem %s4268_s0, %s2506_s25  ;;  %s2588_s7 = smov 15   ;;  %v2827_v40 = vld [vmem:[%s4273_s5 + $0x1] ss:$8 sm:$0x3]  ;;  %vm289_vm0 = vcmask 138240   ;;  %vm313_vm1 = vcmask 130048  }
  0x10   : > { %v2677_v4 = vld [vmem:[%s246_s28] sm:$0xff]  ;;  %s2589_s8 = smov 1   ;;  %s2591_s9 = smov 127   ;;  %v2818_v38 = vsub.s32 1, %v271_v35  ;;  %vm339_vm2 = vcmask 121856   ;;  %v2845_v46 = vsub.s32 0, %v271_v35 }
  0x11   : > { %2552 = vset.pattern.permute.xlu1 %v2584_v5  ;;  %2553 = vset.pattern.permute.xlu0 %v2585_v6  ;;  %255 = vst [vmem:[#allocation2 + $0x4] sm:$0xff] %v2677_v4  ;;  %v2704_v10 = vcombine.high %v2677_v4, %v2677_v4  ;;  %s2594_s10 = smov 113   ;;  %s2596_s11 = smov 112   ;;  %v2843_v44 = vld [vmem:[%s4273_s5 + $0x3] ss:$8 sm:$0x3] }
  0x12   : > { %s2597_s12 = smov 111   ;;  %s2599_s13 = smov 34   ;;  %4392 = vst [vmem:[#allocation5_spill] sm:$0xff] %v2818_v38  ;;  %v277_v42 = vrot.slane %v2827_v40, %v2818_v38  ;;  %4394 = vst [vmem:[#allocation7_spill] sm:$0xff] %v2845_v46  ;;  %v2851_v48 = vrot.slane %v2843_v44, %v2818_v38  ;;  %vm360_vm3 = vcmask 7168   ;;  %v273_v53 = vrot.slane %v2827_v40, %v2845_v46 }
  0x13   : > { %4391 = vst [vmem:[#allocation4_spill] sm:$0xff] %v2704_v10  ;;  %v2714_v14 = vld [vmem:[#allocation2 + $0xc] sm:$0xf]  ;;  %s2600_s14 = smov 33   ;;  %s2601_s15 = smov 32   ;;  %v2884_v61 = vrot.slane %v2843_v44, %v2845_v46  ;;  %vm395_vm4 = vcmask 1039360  }
  0x14   : > { %s2602_s16 = smov 31   ;;  %s2603_s17 = smov 18   ;;  %vm416_vm5 = vcmask 924672   ;;  %vm441_vm6 = vcmask 916480   ;;  %vm456_vm7 = vcmask 908288   ;;  %vm484_vm8 = vcmask 1043456  }
  0x15   : > { %s2604_s18 = smov 30   ;;  %s2605_s19 = smov 2   ;;  %vm626_vm9 = vcmask 277504   ;;  %vm474_vm10 = vcmask 31744   ;;  %vm651_vm11 = vcmask 269312   ;;  %vm678_vm12 = vcmask 261120  }
  0x16   : > { %s2606_s20 = smov 14   ;;  %s2607_s25 = smov 114   ;;  %vm876_vm13 = vcmask 252928   ;;  %vm705_vm14 = vcmask 146432   ;;  %vm764_vm15 = vcmask 15360  }
  0x17   : > { %s2608_s26 = smov 126   ;;  %s2609_s27 = smov 98  }
  0x18   : > { %v2682_v7 = vld [vmem:[#allocation2 + $0x8] sm:$0xf]  ;;  %v2684_v8 = vld [vmem:[#allocation2] sm:$0xff]  ;;  %s2610_s28 = smov 110  }
  0x19   : > { %287 = vrot.lane.b32.xlu1 %v2682_v7, %s2586_s29  ;;  %283 = vrot.lane.b32.xlu0 %v2684_v8, %s2586_s29  ;;  %v2690_v9 = vcombine.high %v2684_v8, %v2684_v8 }
  0x1d   : > { %311 = vrot.lane.b32.xlu0 %v2682_v7, %s2587_s30  ;;  %285 = vrot.lane.b32.xlu1 %v2690_v9, %s2586_s29  ;;  %s2611_s29 = smov 97  }
  0x21   : > { %337 = vrot.lane.b32.xlu0 %v2682_v7, %s2588_s7  ;;  %309 = vrot.lane.b32.xlu1 %v2690_v9, %s2587_s30 }
  0x25   : > { %307 = vrot.lane.b32.xlu0 %v2684_v8, %s2587_s30  ;;  %335 = vrot.lane.b32.xlu1 %v2690_v9, %s2588_s7  ;;  %s2612_s30 = smov 96  }
  0x29   : > { %356 = vrot.lane.b32.xlu0 %v2690_v9, %s2589_s8  ;;  %368 = vperm.xlu1 %2552, %v2661_v0  }
  0x2d   : > { %376 = vperm.xlu0 %2553, %v2661_v0   ;;  %333 = vrot.lane.b32.xlu1 %v2684_v8, %s2588_s7  ;;  %s2613_s7 = smov 95  }
  0x2e   : > { %2554 = vset.pattern.permute.xlu1 %v2590_v11 }
  0x31   : > { %391 = vrot.lane.b32.xlu0 %v2704_v10, %s2591_s9  ;;  %358 = vrot.lane.b32.xlu1 %v2682_v7, %s2589_s8 }
  0x32   : > { %2555 = vset.pattern.permute.xlu0 %v2592_v12 }
  0x35   : > { %424 = vperm.xlu0 %2555, %v2661_v0   ;;  %354 = vrot.lane.b32.xlu1 %v2684_v8, %s2589_s8 }
  0x39   : > { %2556 = vset.pattern.permute.xlu0 %v2593_v13  ;;  %403 = vperm.xlu1 %2554, %v2661_v0  }
  0x3a   : > { %298 = vperm.xlu0 %2556, %v2661_v0  }
  0x3d   : > { %393 = vrot.lane.b32.xlu1 %v2714_v14, %s2591_s9 }
  0x3e   : > { %414 = vrot.lane.b32.xlu0 %v2714_v14, %s2594_s10  ;;  %2557 = vset.pattern.permute.xlu1 %v2595_v15 }
  0x41   : > { %389 = vrot.lane.b32.xlu1 %v2677_v4, %s2591_s9 }
  0x42   : > { %410 = vrot.lane.b32.xlu0 %v2677_v4, %s2594_s10 }
  0x45   : > { %412 = vrot.lane.b32.xlu1 %v2704_v10, %s2594_s10  ;;  %s2614_s10 = smov 94  }
  0x46   : > { %437 = vrot.lane.b32.xlu0 %v2704_v10, %s2596_s11 }
  0x49   : > { %432 = vperm.xlu1 %2557, %v2661_v0  }
  0x4a   : > { %452 = vrot.lane.b32.xlu0 %v2704_v10, %s2597_s12 }
  0x4d   : > { %2558 = vset.pattern.permute.xlu1 %v2598_v16 }
  0x4e   : > { %435 = vrot.lane.b32.xlu0 %v2677_v4, %s2596_s11  ;;  %464 = vperm.xlu1 %2558, %v2661_v0  }
  0x52   : > { %622 = vrot.lane.b32.xlu0 %v2690_v9, %s2599_s13  ;;  %439 = vrot.lane.b32.xlu1 %v2714_v14, %s2596_s11 }
  0x53   : > { %2559 = vset.pattern.permute.xlu1 %v2582_v2 }
  0x56   : > { %647 = vrot.lane.b32.xlu0 %v2690_v9, %s2600_s14  ;;  %454 = vrot.lane.b32.xlu1 %v2714_v14, %s2597_s12 }
  0x5a   : > { %674 = vrot.lane.b32.xlu0 %v2690_v9, %s2601_s15  ;;  %450 = vrot.lane.b32.xlu1 %v2677_v4, %s2597_s12 }
  0x5e   : > { %620 = vrot.lane.b32.xlu0 %v2684_v8, %s2599_s13  ;;  %624 = vrot.lane.b32.xlu1 %v2682_v7, %s2599_s13  ;;  %s2507_s13 = sshll.u32 %s4644_s22, 6 }
  0x62   : > { %672 = vrot.lane.b32.xlu0 %v2684_v8, %s2601_s15  ;;  %649 = vrot.lane.b32.xlu1 %v2682_v7, %s2600_s14 }
  0x66   : > { %874 = vrot.lane.b32.xlu0 %v2682_v7, %s2602_s16  ;;  %676 = vrot.lane.b32.xlu1 %v2682_v7, %s2601_s15 }
  0x6a   : > { %701 = vrot.lane.b32.xlu0 %v2690_v9, %s2603_s17  ;;  %645 = vrot.lane.b32.xlu1 %v2684_v8, %s2600_s14 }
  0x6e   : > { %1049 = vrot.lane.b32.xlu0 %v2690_v9, %s2604_s18  ;;  %872 = vrot.lane.b32.xlu1 %v2690_v9, %s2602_s16 }
  0x72   : > { %699 = vrot.lane.b32.xlu0 %v2684_v8, %s2603_s17  ;;  %870 = vrot.lane.b32.xlu1 %v2684_v8, %s2602_s16  ;;  %s4255_s16 = scalar_lea.vmem %s4274_s6, %s2507_s13 }
  0x76   : > { %760 = vrot.lane.b32.xlu0 %v2690_v9, %s2605_s19  ;;  %703 = vrot.lane.b32.xlu1 %v2682_v7, %s2603_s17 }
  0x7a   : > { %758 = vrot.lane.b32.xlu0 %v2684_v8, %s2605_s19  ;;  %1051 = vrot.lane.b32.xlu1 %v2682_v7, %s2604_s18 }
  0x7e   : > { %1110 = vrot.lane.b32.xlu0 %v2682_v7, %s2606_s20  ;;  %1047 = vrot.lane.b32.xlu1 %v2684_v8, %s2604_s18 }
  0x82   : > { %807 = vperm.xlu0 %2556, %v2756_v17   ;;  %762 = vrot.lane.b32.xlu1 %v2682_v7, %s2605_s19 }
  0x86   : > { %1108 = vrot.lane.b32.xlu1 %v2690_v9, %s2606_s20  ;;  %1314 = vrot.lane.b32.xlu0 %v2714_v14, %s2607_s25 }
  0x87   : > { %2560 = vset.pattern.permute.xlu0 %v2581_v1 }
  0x88   : > { %v2762_v18 = vpop.permute.xlu0 %304  ;;  %v2765_v19 = vpop.permute.xlu1 %347 }
  0x8a   : > { %1106 = vrot.lane.b32.xlu1 %v2684_v8, %s2606_s20  ;;  %1167 = vrot.lane.b32.xlu0 %v2704_v10, %s2608_s26 }
  0x8c   : > { %v2769_v20 = vpop.permute.xlu0 %283  ;;  %v288_v21 = vpop.permute.xlu1 %287 }
  0x8e   : > { %982 = vperm.xlu1 %2559, %v2756_v17   ;;  %1181 = vperm.xlu0 %2560, %v2756_v17  }
  0x90   : > { %v2773_v22 = vpop.permute.xlu0 %311  ;;  %v2779_v23 = vpop.permute.xlu1 %285 }
  0x91   : > { %v2838_v43 = vsel %vm289_vm0, %v2779_v23, %v288_v21  ;;  %v2870_v56 = vsel %vm289_vm0, %v2769_v20, %v2779_v23  ;;  %vm1053_vm0 = vcmask 244736  }
  0x92   : > { %1312 = vrot.lane.b32.xlu1 %v2704_v10, %s2607_s25  ;;  %2562 = vset.pattern.permute.xlu0 %v2585_v6  ;;  %4393 = vst [vmem:[#allocation6_spill] sm:$0xff] %v2838_v43  ;;  %v295_v49 = vmul.f32 %v2838_v43, %v277_v42  ;;  %4397 = vst [vmem:[#allocation10_spill] sm:$0xff] %v2870_v56  ;;  %v294_v62 = vmul.f32 %v2870_v56, %v273_v53 }
  0x93   : > { %2561 = vset.pattern.permute.xlu1 %v2584_v5  ;;  %1524 = vperm.xlu0 %2562, %v2756_v17  }
  0x94   : > { %v338_v24 = vpop.permute.xlu0 %337  ;;  %v2784_v25 = vpop.permute.xlu1 %309 }
  0x95   : > { %v2859_v50 = vsel %vm313_vm1, %v2784_v25, %v2773_v22 }
  0x96   : > { %1310 = vrot.lane.b32.xlu1 %v2677_v4, %s2607_s25  ;;  %4395 = vst [vmem:[#allocation8_spill] sm:$0xff] %v2859_v50  ;;  %v319_v58 = vmul.f32 %v2859_v50, %v2762_v18 }
  0x97   : > { %1830 = vrot.lane.b32.xlu0 %v2677_v4, %s2609_s27 }
  0x98   : > { %2564 = vset.pattern.permute.xlu0 %v2592_v12  ;;  %v2788_v26 = vpop.permute.xlu0 %307  ;;  %v2793_v27 = vpop.permute.xlu1 %335 }
  0x99   : > { %v2863_v51 = vsel %vm339_vm2, %v2793_v27, %v338_v24  ;;  %v2890_v1 = vsel %vm313_vm1, %v2788_v26, %v2784_v25  ;;  %vm1112_vm1 = vcmask 113664  }
  0x9a   : > { %1169 = vrot.lane.b32.xlu1 %v2714_v14, %s2608_s26  ;;  %4396 = vst [vmem:[#allocation9_spill] sm:$0xff] %v2863_v51  ;;  %v345_v57 = vmul.f32 %v2863_v51, %v2851_v48  ;;  %4399 = vst [vmem:[#allocation12_spill] sm:$0xff] %v2890_v1 }
  0x9b   : > { %1689 = vrot.lane.b32.xlu0 %v2714_v14, %s2610_s28 }
  0x9c   : > { %v2795_v28 = vpop.permute.xlu0 %356  ;;  %v351_v6 = vmul.f32 %v2765_v19, %v345_v57 }
  0x9e   : > { %1165 = vrot.lane.b32.xlu1 %v2677_v4, %s2608_s26 }
  0x9f   : > { %1859 = vrot.lane.b32.xlu0 %v2704_v10, %s2611_s29 }
  0xa2   : > { %1358 = vperm.xlu1 %2561, %v2756_v17  }
  0xa3   : > { %1685 = vrot.lane.b32.xlu0 %v2677_v4, %s2610_s28 }
  0xa4   : > { %v2799_v29 = vpop.permute.xlu1 %368 }
  0xa6   : > { %1832 = vrot.lane.b32.xlu1 %v2704_v10, %s2609_s27 }
  0xa7   : > { %2563 = vset.pattern.permute.xlu1 %v2590_v11  ;;  %1886 = vrot.lane.b32.xlu0 %v2704_v10, %s2612_s30  ;;  %v318_v11 = vmul.f32 %v2890_v1, %v2762_v18 }
  0xa8   : > { %v334_v30 = vpop.permute.xlu1 %333  ;;  %v2805_v31 = vpop.permute.xlu0 %376 }
  0xa9   : > { %v2894_v2 = vsel %vm339_vm2, %v334_v30, %v2793_v27  ;;  %vm1316_vm2 = vcmask 932864  }
  0xaa   : > { %1834 = vrot.lane.b32.xlu1 %v2714_v14, %s2609_s27  ;;  %4400 = vst [vmem:[#allocation13_spill] sm:$0xff] %v2894_v2  ;;  %v344_v9 = vmul.f32 %v2894_v2, %v2884_v61 }
  0xab   : > { %1900 = vperm.xlu0 %2564, %v2756_v17  }
  0xac   : > { %v359_v33 = vpop.permute.xlu1 %358  ;;  %v2809_v34 = vpop.permute.xlu0 %391  ;;  %v350_v18 = vmul.f32 %v2765_v19, %v344_v9 }
  0xad   : > { %v2880_v59 = vsel %vm360_vm3, %v2795_v28, %v359_v33 }
  0xae   : > { %1687 = vrot.lane.b32.xlu1 %v2704_v10, %s2610_s28  ;;  %4398 = vst [vmem:[#allocation11_spill] sm:$0xff] %v2880_v59  ;;  %v366_v7 = vmul.f32 %v2880_v59, %v277_v42 }
  0xaf   : > { %2065 = vrot.lane.b32.xlu0 %v2714_v14, %s2613_s7 }
  0xb0   : > { %v355_v36 = vpop.permute.xlu1 %354  ;;  %v2814_v37 = vpop.permute.xlu0 %424  ;;  %2567 = vset.pattern.permute.xlu0 %v2598_v16  ;;  %v372_v20 = vmul.f32 %v2799_v29, %v366_v7 }
  0xb2   : > { %1701 = vperm.xlu1 %2563, %v2756_v17  }
  0xb3   : > { %2061 = vrot.lane.b32.xlu0 %v2677_v4, %s2613_s7 }
  0xb4   : > { %v2822_v39 = vpop.permute.xlu1 %403 }
  0xb5   : > { %v299_v41 = vpop.permute.xlu0 %298 }
  0xb6   : > { %1861 = vrot.lane.b32.xlu1 %v2714_v14, %s2611_s29  ;;  %v302_v54 = vmul.f32 %v299_v41, %v295_v49  ;;  %v301_v5 = vmul.f32 %v299_v41, %v294_v62 }
  0xb7   : > { %2565 = vset.pattern.permute.xlu1 %v2595_v15  ;;  %2242 = vrot.lane.b32.xlu0 %v2714_v14, %s2614_s10 }
  0xb8   : > { %v394_v45 = vpop.permute.xlu1 %393  ;;  %v321_v63 = vadd.f32 %v319_v58, %v302_v54  ;;  %v320_v15 = vadd.f32 %v318_v11, %v301_v5  ;;  %v382_v54 = vmul.f32 %v2805_v31, %v2677_v4 }
  0xb9   : > { %v415_v47 = vpop.permute.xlu0 %414  ;;  %v2913_v21 = vsel %vm395_vm4, %v2809_v34, %v394_v45 }
  0xba   : > { %1857 = vrot.lane.b32.xlu1 %v2677_v4, %s2611_s29  ;;  %v353_v12 = vadd.f32 %v351_v6, %v321_v63  ;;  %4401 = vst [vmem:[#allocation14_spill] sm:$0xff] %v2913_v21  ;;  %v352_v30 = vadd.f32 %v350_v18, %v320_v15  ;;  %v401_v19 = vmul.f32 %v2913_v21, %v2851_v48 }
  0xbb   : > { %2238 = vrot.lane.b32.xlu0 %v2677_v4, %s2614_s10 }
  0xbc   : > { %v390_v52 = vpop.permute.xlu1 %389  ;;  %v374_v24 = vadd.f32 %v372_v20, %v353_v12 }
  0xbd   : > { %v411_v55 = vpop.permute.xlu0 %410  ;;  %v2922_v27 = vsel %vm395_vm4, %v390_v52, %v2809_v34  ;;  %v407_v52 = vmul.f32 %v2822_v39, %v401_v19  ;;  %vm1836_vm4 = vcmask 801792  }
  0xbe   : > { %1888 = vrot.lane.b32.xlu1 %v2714_v14, %s2612_s30  ;;  %v2906_v14 = vsel %vm360_vm3, %v355_v36, %v2795_v28  ;;  %v383_v28 = vmul.f32 %v2704_v10, %v2805_v31  ;;  %v400_v45 = vmul.f32 %v2922_v27, %v2884_v61  ;;  %vm1171_vm3 = vcmask 1031168  }
  0xbf   : > { %v365_v23 = vmul.f32 %v2906_v14, %v273_v53 }
  0xc0   : > { %v413_v60 = vpop.permute.xlu1 %412  ;;  %v385_v41 = vadd.f32 %v383_v28, %v374_v24  ;;  %v406_v62 = vmul.f32 %v2822_v39, %v400_v45 }
  0xc1   : > { %v438_v0 = vpop.permute.xlu0 %437  ;;  %v2916_v22 = vsel %vm416_vm5, %v413_v60, %v415_v47  ;;  %v2931_v33 = vsel %vm416_vm5, %v411_v55, %v413_v60  ;;  %v371_v35 = vmul.f32 %v2799_v29, %v365_v23  ;;  %vm1691_vm5 = vcmask 900096  }
  0xc2   : > { %1884 = vrot.lane.b32.xlu1 %v2677_v4, %s2612_s30  ;;  %4402 = vst [vmem:[#allocation15_spill] sm:$0xff] %v2916_v22  ;;  %v422_v32 = vmul.f32 %v2916_v22, %v277_v42  ;;  %4403 = vst [vmem:[#allocation16_spill] sm:$0xff] %v2931_v33  ;;  %v421_v49 = vmul.f32 %v2931_v33, %v273_v53  ;;  %v409_v58 = vadd.f32 %v407_v52, %v385_v41 }
  0xc3   : > { %v373_v42 = vadd.f32 %v371_v35, %v352_v30  ;;  %v473_v35 = vld [vmem:[%s4270_s2 + $0x10] sm:$0x3] }
  0xc4   : > { %v433_v8 = vpop.permute.xlu1 %432  ;;  %v428_v29 = vmul.f32 %v2814_v37, %v422_v32  ;;  %v427_v6 = vmul.f32 %v2814_v37, %v421_v49 }
  0xc5   : > { %v453_v13 = vpop.permute.xlu0 %452  ;;  %v384_v5 = vadd.f32 %v382_v54, %v373_v42 }
  0xc6   : > { %2063 = vrot.lane.b32.xlu1 %v2704_v10, %s2613_s7 }
  0xc7   : > { %v408_v12 = vadd.f32 %v406_v62, %v384_v5 }
  0xc9   : > { %v436_v25 = vpop.permute.xlu0 %435  ;;  %v465_v26 = vpop.permute.xlu1 %464  ;;  %v429_v20 = vadd.f32 %v427_v6, %v408_v12 }
  0xca   : > { %2077 = vperm.xlu1 %2565, %v2756_v17   ;;  %v2950_v63 = vsel %vm441_vm6, %v436_v25, %v438_v0 }
  0xcd   : > { %v623_v36 = vpop.permute.xlu0 %622  ;;  %v440_v34 = vpop.permute.xlu1 %439 }
  0xce   : > { %v2937_v47 = vsel %vm441_vm6, %v438_v0, %v440_v34  ;;  %2240 = vrot.lane.b32.xlu1 %v2704_v10, %s2614_s10  ;;  %v446_v0 = vmul.f32 %v2950_v63, %v433_v8  ;;  %vm1863_vm6 = vcmask 793600  }
  0xcf   : > { %4404 = vst [vmem:[#allocation17_spill] sm:$0xff] %v2937_v47  ;;  %2566 = vset.pattern.permute.xlu1 %v2598_v16  ;;  %v447_v60 = vmul.f32 %v2937_v47, %v433_v8  ;;  %v430_v16 = vadd.f32 %v428_v29, %v409_v58 }
  0xd0   : > { %v448_v37 = vadd.f32 %v446_v0, %v429_v20 }
  0xd1   : > { %v648_v55 = vpop.permute.xlu0 %647  ;;  %v455_v57 = vpop.permute.xlu1 %454  ;;  %v449_v11 = vadd.f32 %v447_v60, %v430_v16 }
  0xd2   : > { %v2953_v53 = vsel %vm456_vm7, %v453_v13, %v455_v57  ;;  %2254 = vperm.xlu1 %2566, %v2756_v17  }
  0xd3   : > { %4405 = vst [vmem:[#allocation18_spill] sm:$0xff] %v2953_v53  ;;  %v462_v31 = vmul.f32 %v2953_v53, %v2851_v48 }
  0xd5   : > { %v2959_v7 = vpop.permute.xlu0 %674  ;;  %v451_v9 = vpop.permute.xlu1 %450  ;;  %v468_v39 = vmul.f32 %v465_v26, %v462_v31 }
  0xd6   : > { %v2963_v15 = vsel %vm456_vm7, %v451_v9, %v453_v13  ;;  %v471_v13 = vld [vmem:[%s4270_s2] sm:$0xff]  ;;  %vm1890_vm7 = vcmask 785408  }
  0xd7   : > { %v470_v17 = vadd.f32 %v468_v39, %v449_v11  ;;  %v461_v48 = vmul.f32 %v2963_v15, %v2884_v61 }
  0xd9   : > { %v621_v18 = vpop.permute.xlu0 %620  ;;  %2487 = vmatprep.subr.msk.mxu0 %vm484_vm8, %v470_v17  ;;  %v467_v23 = vmul.f32 %v465_v26, %v461_v48  ;;  %v625_v24 = vpop.permute.xlu1 %624  ;;  %v472_v26 = vld [vmem:[%s4270_s2 + $0x8] sm:$0xff] }
  0xda   : > { %v2968_v25 = vsel %vm626_vm9, %v621_v18, %v623_v36  ;;  %v2970_v28 = vsel %vm626_vm9, %v623_v36, %v625_v24  ;;  %vm2067_vm9 = vcmask 777216  }
  0xdb   : > { %v469_v8 = vadd.f32 %v467_v23, %v448_v37 }
  0xdd   : > { %2488 = vmatpush1.msk.msra.mxu0 %vm484_vm8, %v469_v8  ;;  %v650_v61 = vpop.permute.xlu1 %649  ;;  %v3003_v52 = vpop.permute.xlu0 %672 }
  0xde   : > { %2489 = vmatmul.mubr.msk.f32.vlgmr.msra.gmra.mxu0 %vm474_vm10, %v471_v13  ;;  %v2977_v30 = vsel %vm651_vm11, %v648_v55, %v650_v61 }
  0xdf   : > { %4406 = vst [vmem:[#allocation19_spill] sm:$0xff] %v2977_v30  ;;  %561 = vmatprep.mubr.f32.mxu0 %v4275_v3 }
  0xe1   : > { %v677_v32 = vpop.permute.xlu1 %676  ;;  %v3007_v54 = vpop.permute.xlu0 %874 }
  0xe2   : > { %2490 = vmatmul.mubr.msk.f32.gmra.mxu0 %vm474_vm10, %v472_v26  ;;  %v2986_v19 = vsel %vm678_vm12, %v2959_v7, %v677_v32 }
  0xe3   : > { %4407 = vst [vmem:[#allocation20_spill] sm:$0xff] %v2986_v19  ;;  %567 = vmatprep.mubr.f32.mxu0 %v4275_v3 }
  0xe5   : > { %v646_v36 = vpop.permute.xlu1 %645 }
  0xe6   : > { %2491 = vmatmul.mubr.msk.f32.gmra.mxu0 %vm474_vm10, %v473_v35  ;;  %v2993_v34 = vsel %vm651_vm11, %v646_v36, %v648_v55  ;;  %v3011_v55 = vpop.permute.xlu0 %701  ;;  %vm2244_vm11 = vcmask 769024  }
  0xe7   : > { %4408 = vst [vmem:[#allocation21_spill] sm:$0xff] %v2993_v34 }
  0xe9   : > { %v2995_v41 = vpop.permute.xlu1 %872 }
  0xea   : > { %v3015_v60 = vpop.permute.xlu0 %1049 }
  0xed   : > { %v871_v45 = vpop.permute.xlu1 %870 }
  0xee   : > { %v2999_v42 = vsel %vm876_vm13, %v871_v45, %v2995_v41  ;;  %v3019_v5 = vpop.permute.xlu0 %699 }
  0xef   : > { %4409 = vst [vmem:[#allocation22_spill] sm:$0xff] %v2999_v42 }
  0xf1   : > { %v3001_v49 = vpop.permute.xlu1 %703 }
  0xf2   : > { %v3023_v31 = vpop.permute.xlu0 %760 }
  0xf5   : > { %v3005_v29 = vpop.permute.xlu1 %1051 }
  0xf6   : > { %v3027_v9 = vpop.permute.xlu0 %758 }
  0xf9   : > { %v3009_v57 = vpop.permute.xlu1 %1047 }
  0xfa   : > { %v3031_v39 = vpop.permute.xlu0 %1110 }
  0xfd   : > { %v3013_v58 = vpop.permute.xlu1 %762 }
  0xfe   : > { %v3035_v0 = vpop.permute.xlu0 %807 }
  0xff   : > { %4411 = vst [vmem:[#allocation24_spill] sm:$0xff] %v3035_v0 }
 0x101   : > { %v3017_v62 = vpop.permute.xlu1 %1108 }
 0x102   : > { %v3037_v17 = vpop.permute.xlu0 %1314 }
 0x105   : > { %v3021_v16 = vpop.permute.xlu1 %1106 }
 0x106   : > { %v3041_v48 = vpop.permute.xlu0 %1167 }
 0x109   : > { %v3025_v6 = vpop.permute.xlu1 %982 }
 0x10a   : > { %4410 = vst [vmem:[#allocation23_spill] sm:$0xff] %v3025_v6  ;;  %v3045_v37 = vpop.permute.xlu0 %1181 }
 0x10b   : > { %4412 = vst [vmem:[#allocation25_spill] sm:$0xff] %v3045_v37 }
 0x10d   : > { %v3029_v11 = vpop.permute.xlu1 %1312 }
 0x10e   : > { %v3049_v24 = vpop.permute.xlu0 %1524 }
 0x10f   : > { %4414 = vst [vmem:[#allocation27_spill] sm:$0xff] %v3049_v24 }
 0x111   : > { %v3033_v12 = vpop.permute.xlu1 %1310 }
 0x112   : > { %v3053_v13 = vpop.permute.xlu0 %1830 }
 0x115   : > { %v3039_v20 = vpop.permute.xlu1 %1169 }
 0x116   : > { %v3057_v26 = vpop.permute.xlu0 %1689 }
 0x119   : > { %v3043_v18 = vpop.permute.xlu1 %1165 }
 0x11a   : > { %v3061_v45 = vpop.permute.xlu0 %1859 }
 0x11d   : > { %v3047_v23 = vpop.permute.xlu1 %1358 }
 0x11e   : > { %4413 = vst [vmem:[#allocation26_spill] sm:$0xff] %v3047_v23  ;;  %v3065_v23 = vpop.permute.xlu0 %1685 }
 0x121   : > { %v3051_v8 = vpop.permute.xlu1 %1832 }
 0x125   : > { %v3055_v61 = vpop.permute.xlu1 %1834 }
 0x129   : > { %v3059_v32 = vpop.permute.xlu1 %1687 }
 0x12d   : > { %v3063_v3 = vpop.permute.xlu1 %1701 }
 0x12e   : > { %4415 = vst [vmem:[#allocation28_spill] sm:$0xff] %v3063_v3  ;;  %v3069_v3 = vpop.permute.xlu0 %1886 }
 0x131   : > { %v3067_v37 = vpop.permute.xlu1 %1861 }
 0x19e   : > { %v557_v35 = vpop.f32.mrf.mxu0 }
 0x19f   : > { %v2492_v36 = vclamps-f32 %v557_v35, 1.0 }
 0x1a0   : > { %v559_v51 = vpop.f32.mrf.mxu0 }
 0x1a1   : > { %586 = vst [vmem:[#allocation3] sm:$0xff] %v2492_v36  ;;  %v2493_v50 = vclamps-f32 %v559_v51, 1.0  ;;  %v3071_v36 = vpop.permute.xlu1 %1857 }
 0x1a2   : > { %v563_v24 = vpop.f32.mrf.mxu0 }
 0x1a3   : > { %587 = vst [vmem:[#allocation3 + $0x8] sm:$0xff] %v2493_v50  ;;  %v2494_v43 = vclamps-f32 %v563_v24, 1.0 }
 0x1a4   : > { %v565_v19 = vpop.f32.mrf.mxu0 }
 0x1a5   : > { %588 = vst [vmem:[#allocation3 + $0x10] sm:$0xff] %v2494_v43  ;;  %v2495_v6 = vclamps-f32 %v565_v19, 1.0 }
 0x1a6   : > { %v569_v0 = vpop.f32.mrf.mxu0 }
 0x1a7   : > { %589 = vst [vmem:[#allocation3 + $0x18] sm:$0xff] %v2495_v6  ;;  %v2496_v35 = vclamps-f32 %v569_v0, 1.0  ;;  %v3083_v6 = vld [vmem:[%s4273_s5] ss:$8 sm:$0x3] }
 0x1a8   : > { %v571_v2 = vpop.f32.mrf.mxu0 }
 0x1a9   : > { %590 = vst [vmem:[#allocation3 + $0x20] sm:$0x3] %v2496_v35  ;;  %v2497_v42 = vclamps-f32 %v571_v2, 1.0  ;;  %v1889_v35 = vpop.permute.xlu1 %1888 }
 0x1aa   : > { %v3073_v50 = vld [vmem:[#allocation3] ss:$8 sm:$0x3]  ;;  %v3075_v51 = vld [vmem:[#allocation3 + $0x1] ss:$8 sm:$0x3] }
 0x1ab   : > { %591 = vst [vmem:[#allocation3 + $0x28] sm:$0x3] %v2497_v42  ;;  %v596_v43 = vsub.f32 0.0, %v3073_v50  ;;  %v601_v24 = vsub.f32 0.0, %v3075_v51  ;;  %v603_v19 = vand.u32 2147483647, %v3075_v51  ;;  %v3085_v42 = vpop.permute.xlu0 %1900 }
 0x1ac   : > { %4416 = vst [vmem:[#allocation29_spill] sm:$0xff] %v3085_v42 }
 0x1ad   : > { %v602_v2 = vmax.f32 %v601_v24, 0.0  ;;  %v604_v0 = vsub.f32 1.0, %v603_v19  ;;  %v3087_v53 = vmax.f32 %v596_v43, 0.0  ;;  %v3098_v24 = vsel %vm678_vm12, %v3003_v52, %v2959_v7 }
 0x1ae   : > { %v3103_v19 = vsel %vm705_vm14, %v3019_v5, %v3011_v55  ;;  %v3108_v43 = vsel %vm876_vm13, %v2995_v41, %v3007_v54  ;;  %v3118_v7 = vsel %vm705_vm14, %v3011_v55, %v3001_v49  ;;  %v3127_v41 = vsel %vm1053_vm0, %v3015_v60, %v3005_v29 }
 0x1af   : > { %v3090_v21 = vmul.f32 %v602_v2, %v3083_v6  ;;  %v3093_v1 = vmul.f32 %v2827_v40, %v604_v0  ;;  %4417 = vst [vmem:[#allocation30_spill] sm:$0xff] %v3108_v43  ;;  %v3113_v2 = vsel %vm764_vm15, %v3027_v9, %v3023_v31  ;;  %4419 = vst [vmem:[#allocation32_spill] sm:$0xff] %v3127_v41  ;;  %v1711_v41 = vld [vmem:[#allocation3 + $0x15] ss:$8 sm:$0x3] }
 0x1b0   : > { %4418 = vst [vmem:[#allocation31_spill] sm:$0xff] %v3113_v2  ;;  %v3132_v54 = vsel %vm1053_vm0, %v3009_v57, %v3015_v60  ;;  %v3137_v49 = vsel %vm764_vm15, %v3023_v31, %v3013_v58  ;;  %v3142_v55 = vsel %vm1112_vm1, %v3017_v62, %v3031_v39  ;;  %v3151_v57 = vsel %vm1112_vm1, %v3021_v16, %v3017_v62  ;;  %v2066_v60 = vpop.permute.xlu0 %2065  ;;  %v1885_v31 = vpop.permute.xlu1 %1884 }
 0x1b1   : > { %v608_v52 = vmul.f32 %v3090_v21, %v3087_v53  ;;  %v633_v5 = vmul.f32 %v3093_v1, %v3087_v53  ;;  %4420 = vst [vmem:[#allocation33_spill] sm:$0xff] %v3137_v49  ;;  %4421 = vst [vmem:[#allocation34_spill] sm:$0xff] %v3142_v55  ;;  %v3156_v58 = vsel %vm1316_vm2, %v3029_v11, %v3037_v17  ;;  %v3182_v17 = vld [vmem:[#allocation3 + $0x3] ss:$8 sm:$0x3] }
 0x1b2   : > { %4422 = vst [vmem:[#allocation35_spill] sm:$0xff] %v3151_v57  ;;  %4423 = vst [vmem:[#allocation36_spill] sm:$0xff] %v3156_v58  ;;  %v3165_v62 = vsel %vm1316_vm2, %v3033_v12, %v3029_v11  ;;  %v3170_v16 = vsel %vm1171_vm3, %v3041_v48, %v3039_v20  ;;  %v3189_v11 = vsel %vm1836_vm4, %v3051_v8, %v3055_v61  ;;  %v3232_v57 = vld [vmem:[#allocation3 + $0x16] ss:$8 sm:$0x3] }
 0x1b3   : > { %v613_v9 = vrot.slane %v608_v52, %v2845_v46  ;;  %v617_v29 = vrot.slane %v608_v52, %v2818_v38  ;;  %v638_v0 = vrot.slane %v633_v5, %v2845_v46  ;;  %v642_v42 = vrot.slane %v633_v5, %v2818_v38  ;;  %4424 = vst [vmem:[#allocation37_spill] sm:$0xff] %v3165_v62 }
 0x1b4   : > { %4425 = vst [vmem:[#allocation38_spill] sm:$0xff] %v3170_v16  ;;  %4427 = vst [vmem:[#allocation40_spill] sm:$0xff] %v3182_v17  ;;  %v3194_v12 = vsel %vm1691_vm5, %v3059_v32, %v3057_v26  ;;  %v3214_v61 = vsel %vm1863_vm6, %v3061_v45, %v3067_v37  ;;  %v1717_v26 = vsub.f32 0.0, %v1711_v41  ;;  %v2062_v43 = vpop.permute.xlu0 %2061 }
 0x1b5   : > { %v631_v39 = vmul.f32 %v2968_v25, %v613_v9  ;;  %v632_v52 = vmul.f32 %v2970_v28, %v617_v29  ;;  %v656_v5 = vmul.f32 %v2993_v34, %v638_v0  ;;  %v657_v55 = vmul.f32 %v2977_v30, %v642_v42  ;;  %v3184_v42 = vld [vmem:[#allocation3 + $0x14] ss:$8 sm:$0x3]  ;;  %4428 = vst [vmem:[#allocation41_spill] sm:$0xff] %v3194_v12  ;;  %v2064_v30 = vpop.permute.xlu1 %2063 }
 0x1b6   : > { %v3175_v25 = vsel %vm1171_vm3, %v3043_v18, %v3041_v48  ;;  %v3180_v28 = vsel %vm1836_vm4, %v3053_v13, %v3051_v8  ;;  %v3200_v18 = vld [vmem:[#allocation3 + $0x7] ss:$8 sm:$0x3]  ;;  %v3202_v13 = vld [vmem:[#allocation3 + $0x17] ss:$8 sm:$0x3]  ;;  %v3209_v8 = vsel %vm1691_vm5, %v3065_v23, %v3059_v32 }
 0x1b7   : > { %4426 = vst [vmem:[#allocation39_spill] sm:$0xff] %v3175_v25  ;;  %v3196_v20 = vadd.f32 %v656_v5, %v631_v39  ;;  %v3198_v48 = vadd.f32 %v657_v55, %v632_v52  ;;  %4431 = vst [vmem:[#allocation44_spill] sm:$0xff] %v3200_v18  ;;  %v3204_v9 = vld [vmem:[#allocation3 + $0x4] ss:$8 sm:$0x3]  ;;  %v821_v55 = vsub.f32 0.0, %v3182_v17  ;;  %v3221_v39 = vsel %vm1863_vm6, %v3071_v36, %v3061_v45 }
 0x1b8   : > { %4432 = vst [vmem:[#allocation45_spill] sm:$0xff] %v3209_v8  ;;  %4433 = vst [vmem:[#allocation46_spill] sm:$0xff] %v3214_v61  ;;  %v1712_v29 = vsub.f32 0.0, %v3184_v42  ;;  %v1719_v0 = vand.u32 2147483647, %v1711_v41  ;;  %v1197_v23 = vsub.f32 0.0, %v3200_v18  ;;  %v3229_v5 = vsel %vm1890_vm7, %v3069_v3, %v1889_v35 }
 0x1b9   : > { %4429 = vst [vmem:[#allocation42_spill] sm:$0xff] %v3196_v20  ;;  %4430 = vst [vmem:[#allocation43_spill] sm:$0xff] %v3198_v48  ;;  %v3223_v52 = vld [vmem:[#allocation3 + $0x6] ss:$8 sm:$0x3]  ;;  %v1718_v32 = vmax.f32 %v1717_v26, 0.0  ;;  %v3236_v45 = vsel %vm1890_vm7, %v1885_v31, %v3069_v3  ;;  %v3239_v36 = vsel %vm2067_vm9, %v2062_v43, %v2064_v30  ;;  %v3246_v25 = vsel %vm2067_vm9, %v2064_v30, %v2066_v60 }
 0x1ba   : > { %4434 = vst [vmem:[#allocation47_spill] sm:$0xff] %v3223_v52  ;;  %v1916_v37 = vsub.f32 0.0, %v3202_v13  ;;  %4435 = vst [vmem:[#allocation48_spill] sm:$0xff] %v3229_v5  ;;  %v598_v48 = vand.u32 2147483647, %v3073_v50  ;;  %v1720_v8 = vsub.f32 1.0, %v1719_v0 }
 0x1bb   : > { %4436 = vst [vmem:[#allocation49_spill] sm:$0xff] %v3236_v45  ;;  %4437 = vst [vmem:[#allocation50_spill] sm:$0xff] %v3239_v36  ;;  %v3242_v26 = vmul.f32 %v1718_v32, %v3083_v6  ;;  %v993_v35 = vsub.f32 0.0, %v3204_v9  ;;  %v822_v12 = vmax.f32 %v821_v55, 0.0  ;;  %v1192_v0 = vsub.f32 0.0, %v3223_v52 }
 0x1bc   : > { %v1917_v34 = vmax.f32 %v1916_v37, 0.0  ;;  %4438 = vst [vmem:[#allocation51_spill] sm:$0xff] %v3246_v25  ;;  %v1713_v16 = vmax.f32 %v1712_v29, 0.0  ;;  %v3250_v56 = vmul.f32 %v2827_v40, %v1720_v8  ;;  %v1198_v3 = vmax.f32 %v1197_v23, 0.0 }
 0x1bd   : > { %v1911_v43 = vsub.f32 0.0, %v3232_v57  ;;  %v1918_v31 = vand.u32 2147483647, %v3202_v13  ;;  %v3255_v37 = vsub.f32 1.0, %v598_v48  ;;  %v3258_v36 = vmax.f32 %v3075_v51, 0.0 }
 0x1be   : > { %v1724_v30 = vmul.f32 %v3242_v26, %v1713_v16  ;;  %v1738_v60 = vmul.f32 %v3250_v56, %v1713_v16  ;;  %v3263_v55 = vmax.f32 %v3073_v50, 0.0  ;;  %v1194_v8 = vand.u32 2147483647, %v3223_v52 }
 0x1bf   : > { %4439 = vst [vmem:[#allocation52_spill] sm:$0xff] %v3258_v36  ;;  %v3267_v29 = vmul.f32 %v2827_v40, %v1917_v34  ;;  %v3269_v23 = vmax.f32 %v993_v35, 0.0  ;;  %v3273_v48 = vmul.f32 %v3258_v36, %v3087_v53  ;;  %v687_v51 = vmul.f32 %v3090_v21, %v3255_v37 }
 0x1c0   : > { %4440 = vst [vmem:[#allocation53_spill] sm:$0xff] %v3263_v55  ;;  %v3277_v32 = vmax.f32 %v1192_v0, 0.0  ;;  %v3280_v25 = vmul.f32 %v2827_v40, %v822_v12  ;;  %v3283_v50 = vmul.f32 %v1198_v3, %v3083_v6  ;;  %v1912_v52 = vmax.f32 %v1911_v43, 0.0 }
 0x1c1   : > { %4441 = vst [vmem:[#allocation54_spill] sm:$0xff] %v3273_v48  ;;  %v3285_v34 = vsub.f32 1.0, %v1918_v31  ;;  %v1920_v35 = vmax.f32 %v3202_v13, 0.0  ;;  %v1714_v17 = vand.u32 2147483647, %v3184_v42  ;;  %v3289_v53 = vmax.f32 %v1711_v41, 0.0 }
 0x1c2   : > { %4442 = vst [vmem:[#allocation55_spill] sm:$0xff] %v3277_v32  ;;  %4443 = vst [vmem:[#allocation56_spill] sm:$0xff] %v3280_v25  ;;  %v1729_v45 = vrot.slane %v1724_v30, %v2845_v46  ;;  %v1743_v0 = vrot.slane %v1738_v60, %v2845_v46  ;;  %v3293_v20 = vsub.f32 1.0, %v1194_v8  ;;  %v1199_v40 = vand.u32 2147483647, %v3200_v18 }
 0x1c3   : > { %4444 = vst [vmem:[#allocation57_spill] sm:$0xff] %v3283_v50  ;;  %v3297_v6 = vmul.f32 %v3267_v29, %v1912_v52  ;;  %v3301_v12 = vmul.f32 %v3258_v36, %v3255_v37  ;;  %v692_v3 = vrot.slane %v687_v51, %v2845_v46  ;;  %v1754_v43 = vmul.f32 %v3289_v53, %v1713_v16 }
 0x1c4   : > { %4445 = vst [vmem:[#allocation58_spill] sm:$0xff] %v3293_v20  ;;  %v696_v31 = vrot.slane %v687_v51, %v2818_v38  ;;  %v3312_v8 = vmul.f32 %v3283_v50, %v3277_v32  ;;  %v3315_v18 = vmul.f32 %v2843_v44, %v1920_v35  ;;  %v3318_v36 = vmul.f32 %v3285_v34, %v1912_v52 }
 0x1c5   : > { %4446 = vst [vmem:[#allocation59_spill] sm:$0xff] %v3297_v6  ;;  %4447 = vst [vmem:[#allocation60_spill] sm:$0xff] %v3301_v12  ;;  %v1715_v13 = vsub.f32 1.0, %v1714_v17  ;;  %v1736_v25 = vmul.f32 %v1729_v45, %v3113_v2  ;;  %v1747_v41 = vrot.slane %v1738_v60, %v2818_v38  ;;  %v1750_v12 = vmul.f32 %v1743_v0, %v2906_v14 }
 0x1c6   : > { %4448 = vst [vmem:[#allocation61_spill] sm:$0xff] %v3318_v36  ;;  %v3325_v16 = vmul.f32 %v3090_v21, %v3263_v55  ;;  %v3327_v51 = vsub.f32 1.0, %v1199_v40  ;;  %v1913_v32 = vand.u32 2147483647, %v3232_v57  ;;  %v1928_v35 = vrot.slane %v3297_v6, %v2845_v46 }
 0x1c7   : > { %v3333_v5 = vmax.f32 %v3184_v42, 0.0  ;;  %v1733_v17 = vrot.slane %v1724_v30, %v2818_v38  ;;  %v1759_v45 = vrot.slane %v1754_v43, %v2845_v46  ;;  %v1770_v60 = vmul.f32 %v3242_v26, %v1715_v13 }
 0x1c8   : > { %4449 = vst [vmem:[#allocation62_spill] sm:$0xff] %v3325_v16  ;;  %4450 = vst [vmem:[#allocation63_spill] sm:$0xff] %v3327_v51  ;;  %v3339_v0 = vmul.f32 %v3103_v19, %v692_v3  ;;  %v3343_v21 = vmul.f32 %v3283_v50, %v3293_v20  ;;  %v1942_v40 = vrot.slane %v3318_v36, %v2845_v46  ;;  %v1914_v20 = vsub.f32 1.0, %v1913_v32 }
 0x1c9   : > { %v3348_v51 = vmul.f32 %v3315_v18, %v1912_v52  ;;  %v3351_v42 = vmul.f32 %v3118_v7, %v696_v31  ;;  %v1209_v30 = vrot.slane %v3312_v8, %v2845_v46  ;;  %v1751_v2 = vmul.f32 %v1747_v41, %v2880_v59  ;;  %v4480_v59 = vld [vmem:[#allocation40_spill] sm:$0xff] }
 0x1ca   : > { %v1752_v3 = vadd.f32 %v1750_v12, %v1736_v25  ;;  %v1213_v55 = vrot.slane %v3312_v8, %v2818_v38  ;;  %v1786_v50 = vmul.f32 %v3250_v56, %v1715_v13  ;;  %v1935_v36 = vmul.f32 %v1928_v35, %v2906_v14 }
 0x1cb   : > { %4451 = vst [vmem:[#allocation64_spill] sm:$0xff] %v3348_v51  ;;  %4452 = vst [vmem:[#allocation65_spill] sm:$0xff] %v3351_v42  ;;  %v1766_v52 = vmul.f32 %v1759_v45, %v2677_v4  ;;  %v1775_v16 = vrot.slane %v1770_v60, %v2845_v46  ;;  %v3363_v31 = vmul.f32 %v3289_v53, %v1715_v13 }
 0x1cc   : > { %v1737_v42 = vmul.f32 %v1733_v17, %v3137_v49  ;;  %v1949_v41 = vmul.f32 %v1942_v40, %v2677_v4  ;;  %v1958_v25 = vrot.slane %v3348_v51, %v2845_v46  ;;  %v3370_v12 = vmul.f32 %v3267_v29, %v1914_v20 }
 0x1cd   : > { %v1763_v32 = vrot.slane %v1754_v43, %v2818_v38  ;;  %v1768_v35 = vadd.f32 %v1766_v52, %v1752_v3  ;;  %v3377_v13 = vmul.f32 %v3242_v26, %v3333_v5  ;;  %v1791_v17 = vrot.slane %v1786_v50, %v2845_v46 }
 0x1ce   : > { %4453 = vst [vmem:[#allocation66_spill] sm:$0xff] %v3370_v12  ;;  %v1753_v45 = vadd.f32 %v1751_v2, %v1737_v42  ;;  %v1951_v40 = vadd.f32 %v1949_v41, %v1935_v36  ;;  %v3383_v49 = vmul.f32 %v3285_v34, %v1914_v20  ;;  %v1782_v43 = vmul.f32 %v1775_v16, %v3165_v62 }
 0x1cf   : > { %v3387_v51 = vmul.f32 %v3315_v18, %v1914_v20  ;;  %v1767_v3 = vmul.f32 %v1763_v32, %v2704_v10  ;;  %v1779_v26 = vrot.slane %v1770_v60, %v2818_v38  ;;  %v1807_v2 = vrot.slane %v3363_v31, %v2845_v46  ;;  %v992_v60 = vld [vmem:[#allocation3 + $0x5] ss:$8 sm:$0x3] }
 0x1d0   : > { %4454 = vst [vmem:[#allocation67_spill] sm:$0xff] %v3383_v49  ;;  %v3394_v42 = vmax.f32 %v3232_v57, 0.0  ;;  %v1965_v36 = vmul.f32 %v1958_v25, %v2922_v27  ;;  %v1974_v52 = vrot.slane %v3370_v12, %v2845_v46  ;;  %v1784_v41 = vadd.f32 %v1782_v43, %v1768_v35 }
 0x1d1   : > { %4455 = vst [vmem:[#allocation68_spill] sm:$0xff] %v3387_v51  ;;  %v1823_v20 = vrot.slane %v3377_v13, %v2845_v46  ;;  %v3403_v16 = vmul.f32 %v3250_v56, %v3333_v5  ;;  %v1769_v32 = vadd.f32 %v1767_v3, %v1753_v45  ;;  %v3406_v4 = vmul.f32 %v1209_v30, %v3103_v19 }
 0x1d2   : > { %v1795_v57 = vrot.slane %v1786_v50, %v2818_v38  ;;  %v1967_v8 = vadd.f32 %v1965_v36, %v1951_v40  ;;  %v1990_v25 = vrot.slane %v3383_v49, %v2845_v46  ;;  %v1798_v35 = vmul.f32 %v1791_v17, %v2931_v33 }
 0x1d3   : > { %v2006_v43 = vrot.slane %v3387_v51, %v2845_v46  ;;  %v3416_v56 = vmul.f32 %v3267_v29, %v3394_v42  ;;  %v1783_v45 = vmul.f32 %v1779_v26, %v3156_v58  ;;  %v3420_v19 = vmul.f32 %v1213_v55, %v3118_v7  ;;  %v3430_v29 = vld [vmem:[%s4273_s5 + $0x4] ss:$8 sm:$0x3] }
 0x1d4   : > { %v1814_v50 = vmul.f32 %v1807_v2, %v2950_v63  ;;  %v1981_v30 = vmul.f32 %v1974_v52, %v2931_v33  ;;  %v1002_v40 = vmax.f32 %v992_v60, 0.0  ;;  %v1800_v3 = vadd.f32 %v1798_v35, %v1784_v41  ;;  %v2085_v41 = vld [vmem:[#allocation3 + $0x20] ss:$8 sm:$0x3] }
 0x1d5   : > { %4456 = vst [vmem:[#allocation69_spill] sm:$0xff] %v3416_v56  ;;  %4457 = vst [vmem:[#allocation70_spill] sm:$0xff] %v3420_v19  ;;  %v1841_v17 = vmul.f32 %v3180_v28, %v1823_v20  ;;  %v1850_v36 = vrot.slane %v3403_v16, %v2845_v46  ;;  %v1785_v26 = vadd.f32 %v1783_v45, %v1769_v32  ;;  %v2087_v28 = vld [vmem:[#allocation3 + $0x21] ss:$8 sm:$0x3] }
 0x1d6   : > { %v1854_v7 = vrot.slane %v3403_v16, %v2818_v38  ;;  %v1983_v2 = vadd.f32 %v1981_v30, %v1967_v8  ;;  %v1997_v52 = vmul.f32 %v1990_v25, %v2950_v63  ;;  %v2013_v20 = vmul.f32 %v2006_v43, %v2963_v15 }
 0x1d7   : > { %v2022_v35 = vrot.slane %v3416_v56, %v2845_v46  ;;  %v1799_v58 = vmul.f32 %v1795_v57, %v2916_v22  ;;  %v1811_v32 = vrot.slane %v3363_v31, %v2818_v38  ;;  %v995_v45 = vand.u32 2147483647, %v3204_v9 }
 0x1d8   : > { %v998_v8 = vsub.f32 0.0, %v992_v60  ;;  %v3447_v25 = vmul.f32 %v3430_v29, %v1002_v40  ;;  %v1816_v30 = vadd.f32 %v1814_v50, %v1800_v3  ;;  %v2090_v43 = vand.u32 2147483647, %v2085_v41 }
 0x1d9   : > { %v1801_v55 = vadd.f32 %v1799_v58, %v1785_v26  ;;  %v2093_v19 = vsub.f32 0.0, %v2087_v28  ;;  %v1999_v51 = vadd.f32 %v1997_v52, %v1983_v2  ;;  %v1868_v49 = vmul.f32 %v3221_v39, %v1850_v36 }
 0x1da   : > { %v1000_v57 = vand.u32 2147483647, %v992_v60  ;;  %v2095_v22 = vand.u32 2147483647, %v2087_v28  ;;  %v1815_v31 = vmul.f32 %v1811_v32, %v2937_v47  ;;  %v1827_v16 = vrot.slane %v3377_v13, %v2818_v38 }
 0x1db   : > { %v2088_v56 = vsub.f32 0.0, %v2085_v41  ;;  %v2097_v12 = vmax.f32 %v2087_v28, 0.0  ;;  %v2029_v6 = vmul.f32 %v2022_v35, %v3221_v39  ;;  %v3454_v40 = vsub.f32 1.0, %v995_v45 }
 0x1dc   : > { %v3456_v50 = vmax.f32 %v998_v8, 0.0  ;;  %v3460_v58 = vmul.f32 %v3447_v25, %v3269_v23  ;;  %v1843_v3 = vadd.f32 %v1841_v17, %v1816_v30  ;;  %v1817_v60 = vadd.f32 %v1815_v31, %v1801_v55 }
 0x1dd   : > { %v2091_v36 = vsub.f32 1.0, %v2090_v43  ;;  %v2094_v26 = vmax.f32 %v2093_v19, 0.0  ;;  %v2015_v2 = vadd.f32 %v2013_v20, %v1999_v51  ;;  %v3462_v52 = vsub.f32 1.0, %v1000_v57 }
 0x1de   : > { %4458 = vst [vmem:[#allocation71_spill] sm:$0xff] %v3460_v58  ;;  %v1872_v13 = vmul.f32 %v3289_v53, %v3333_v5  ;;  %v2096_v28 = vsub.f32 1.0, %v2095_v22  ;;  %v1842_v39 = vmul.f32 %v3189_v11, %v1827_v16  ;;  %v3469_v35 = vmul.f32 %v3285_v34, %v3394_v42 }
 0x1df   : > { %v2089_v32 = vmax.f32 %v2088_v56, 0.0  ;;  %v3472_v45 = vmul.f32 %v3430_v29, %v2097_v12  ;;  %v3476_v19 = vmul.f32 %v3456_v50, %v3269_v23  ;;  %v1040_v51 = vrot.slane %v3460_v58, %v2845_v46 }
 0x1e0   : > { %v3482_v22 = vmul.f32 %v3447_v25, %v3454_v40  ;;  %v3484_v11 = vmax.f32 %v2085_v41, 0.0  ;;  %v3486_v5 = vadd.f32 %v1868_v49, %v1843_v3  ;;  %v1844_v34 = vadd.f32 %v1842_v39, %v1817_v60  ;;  %v4468_v39 = vld [vmem:[#allocation42_spill] sm:$0xff] }
 0x1e1   : > { %4459 = vst [vmem:[#allocation72_spill] sm:$0xff] %v3472_v45  ;;  %4460 = vst [vmem:[#allocation73_spill] sm:$0xff] %v3476_v19  ;;  %v2100_v53 = vmul.f32 %v2094_v26, %v2089_v32  ;;  %v3488_v56 = vmul.f32 %v2094_v26, %v2091_v36  ;;  %v1869_v17 = vmul.f32 %v3214_v61, %v1854_v7  ;;  %v4473_v61 = vld [vmem:[#allocation10_spill] sm:$0xff] }
 0x1e2   : > { %4461 = vst [vmem:[#allocation74_spill] sm:$0xff] %v3482_v22  ;;  %4462 = vst [vmem:[#allocation75_spill] sm:$0xff] %v3484_v11  ;;  %v1881_v55 = vrot.slane %v1872_v13, %v2818_v38  ;;  %v3495_v20 = vmul.f32 %v2843_v44, %v2096_v28  ;;  %v3497_v16 = vadd.f32 %v2029_v6, %v2015_v2  ;;  %v4467_v2 = vld [vmem:[#allocation48_spill] sm:$0xff] }
 0x1e3   : > { %v2042_v49 = vrot.slane %v3469_v35, %v2818_v38  ;;  %v3502_v41 = vmul.f32 %v3472_v45, %v2089_v32  ;;  %v3505_v8 = vmul.f32 %v3472_v45, %v2091_v36  ;;  %v3508_v30 = vmul.f32 %v3132_v54, %v1040_v51 }
 0x1e4   : > { %4463 = vst [vmem:[#allocation76_spill] sm:$0xff] %v3495_v20  ;;  %4464 = vst [vmem:[#allocation77_spill] sm:$0xff] %v3497_v16  ;;  %v3511_v7 = vmul.f32 %v2094_v26, %v3484_v11  ;;  %v4465_v43 = vrot.slane %v3273_v48, %v2845_v46  ;;  %v3519_v57 = vmul.f32 %v3093_v1, %v3255_v37 }
 0x1e5   : > { %v1871_v31 = vadd.f32 %v1869_v17, %v1844_v34  ;;  %v2109_v3 = vrot.slane %v2100_v53, %v2818_v38  ;;  %v2155_v60 = vrot.slane %v3488_v56, %v2818_v38  ;;  %v1877_v54 = vrot.slane %v1872_v13, %v2845_v46 }
 0x1e6   : > { %v683_v6 = vmul.f32 %v3098_v24, %v4465_v43  ;;  %4466 = vst [vmem:[#allocation78_spill] sm:$0xff] %v3519_v57  ;;  %v2114_v26 = vmul.f32 %v3495_v20, %v2089_v32  ;;  %v1896_v28 = vmul.f32 %v4467_v2, %v1881_v55  ;;  %v719_v43 = vrot.slane %v3519_v57, %v2845_v46  ;;  %v813_v32 = vld [vmem:[#allocation3 + $0x2] ss:$8 sm:$0x3]  ;;  %v4474_v57 = vld [vmem:[#allocation60_spill] sm:$0xff] }
 0x1e7   : > { %v2139_v37 = vrot.slane %v3502_v41, %v2818_v38  ;;  %v3533_v34 = vmul.f32 %v3495_v20, %v2091_v36  ;;  %v2187_v17 = vrot.slane %v3505_v8, %v2818_v38  ;;  %v3538_v13 = vmul.f32 %v2042_v49, %v4467_v2  ;;  %v4472_v49 = vld [vmem:[#allocation49_spill] sm:$0xff] }
 0x1e8   : > { %v685_v51 = vadd.f32 %v683_v6, %v4468_v39  ;;  %v2105_v55 = vrot.slane %v2100_v53, %v2845_v46  ;;  %v2203_v6 = vrot.slane %v3511_v7, %v2818_v38  ;;  %v3547_v36 = vmul.f32 %v2109_v3, %v2704_v10 }
 0x1e9   : > { %4469 = vst [vmem:[#allocation48_spill] sm:$0xff] %v3538_v13  ;;  %v3550_v16 = vmul.f32 %v2155_v60, %v2937_v47  ;;  %v3552_v45 = vadd.f32 %v1896_v28, %v1871_v31  ;;  %v3555_v13 = vmul.f32 %v4472_v49, %v1877_v54  ;;  %v2123_v53 = vrot.slane %v2114_v26, %v2818_v38  ;;  %v4476_v60 = vld [vmem:[#allocation41_spill] sm:$0xff] }
 0x1ea   : > { %v712_v12 = vadd.f32 %v3339_v0, %v685_v51  ;;  %v726_v58 = vmul.f32 %v719_v43, %v4473_v61  ;;  %v735_v39 = vrot.slane %v4474_v57, %v2845_v46  ;;  %v816_v48 = vsub.f32 0.0, %v813_v32  ;;  %v4475_v0 = vld [vmem:[#allocation38_spill] sm:$0xff] }
 0x1eb   : > { %4470 = vst [vmem:[#allocation42_spill] sm:$0xff] %v3550_v16  ;;  %4471 = vst [vmem:[#allocation79_spill] sm:$0xff] %v3552_v45  ;;  %v3562_v51 = vmul.f32 %v2139_v37, %v4475_v0  ;;  %v2171_v3 = vrot.slane %v3533_v34, %v2818_v38  ;;  %v3567_v31 = vmul.f32 %v2187_v17, %v4476_v60  ;;  %v818_v28 = vand.u32 2147483647, %v813_v32  ;;  %v3572_v45 = vld [vmem:[#allocation2 + $0x4] sm:$0xff]  ;;  %v4479_v0 = vld [vmem:[#allocation62_spill] sm:$0xff] }
 0x1ec   : > { %v3570_v54 = vmul.f32 %v2203_v6, %v4467_v2  ;;  %v3575_v43 = vmul.f32 %v3572_v45, %v2105_v55  ;;  %v728_v47 = vadd.f32 %v726_v58, %v712_v12  ;;  %v817_v57 = vmax.f32 %v816_v48, 0.0  ;;  %v4482_v2 = vld [vmem:[#allocation12_spill] sm:$0xff]  ;;  %v4487_v12 = vld [vmem:[#allocation14_spill] sm:$0xff] }
 0x1ed   : > { %4477 = vst [vmem:[#allocation49_spill] sm:$0xff] %v3567_v31  ;;  %v2119_v37 = vrot.slane %v2114_v26, %v2845_v46  ;;  %v751_v10 = vrot.slane %v4479_v0, %v2845_v46  ;;  %v823_v38 = vand.u32 2147483647, %v4480_v59  ;;  %v4481_v17 = vmax.f32 %v4480_v59, 0.0  ;;  %v4485_v58 = vld [vmem:[#allocation56_spill] sm:$0xff] }
 0x1ee   : > { %4478 = vst [vmem:[#allocation10_spill] sm:$0xff] %v3570_v54  ;;  %v742_v6 = vmul.f32 %v735_v39, %v4482_v2  ;;  %v4483_v54 = vld [vmem:[#allocation53_spill] sm:$0xff]  ;;  %v819_v55 = vsub.f32 1.0, %v818_v28  ;;  %v3590_v48 = vmul.f32 %v4485_v58, %v817_v57  ;;  %v3593_v26 = vmul.f32 %v2123_v53, %v4487_v12 }
 0x1ef   : > { %v827_v60 = vmul.f32 %v2843_v44, %v4481_v17  ;;  %v3587_v31 = vmul.f32 %v3093_v1, %v4483_v54  ;;  %v2135_v0 = vrot.slane %v3502_v41, %v2845_v46  ;;  %v824_v33 = vsub.f32 1.0, %v823_v38  ;;  %v4489_v17 = vld [vmem:[#allocation18_spill] sm:$0xff]  ;;  %v4491_v1 = vld [vmem:[#allocation52_spill] sm:$0xff] }
 0x1f0   : > { %4486 = vst [vmem:[#allocation12_spill] sm:$0xff] %v3590_v48  ;;  %v3600_v20 = vmul.f32 %v2171_v3, %v4489_v17  ;;  %v744_v39 = vadd.f32 %v742_v6, %v728_v47  ;;  %v3604_v11 = vmul.f32 %v4491_v1, %v4483_v54  ;;  %v833_v28 = vrot.slane %v3590_v48, %v2845_v46  ;;  %v4493_v3 = vld [vmem:[#allocation31_spill] sm:$0xff] }
 0x1f1   : > { %4484 = vst [vmem:[#allocation40_spill] sm:$0xff] %v3587_v31  ;;  %v3597_v59 = vmul.f32 %v827_v60, %v817_v57  ;;  %v3612_v38 = vmul.f32 %v824_v33, %v817_v57  ;;  %v3615_v12 = vmul.f32 %v4485_v58, %v819_v55  ;;  %v769_v47 = vmul.f32 %v4493_v3, %v751_v10  ;;  %v4495_v17 = vld [vmem:[#allocation39_spill] sm:$0xff]  ;;  %v4496_v57 = vld [vmem:[#allocation21_spill] sm:$0xff] }
 0x1f2   : > { %4490 = vst [vmem:[#allocation56_spill] sm:$0xff] %v3600_v20  ;;  %4492 = vst [vmem:[#allocation52_spill] sm:$0xff] %v3604_v11  ;;  %v778_v54 = vrot.slane %v3587_v31, %v2845_v46  ;;  %v3622_v1 = vmul.f32 %v824_v33, %v819_v55  ;;  %v3625_v53 = vmul.f32 %v2119_v37, %v2922_v27  ;;  %v820_v16 = vmax.f32 %v813_v32, 0.0 }
 0x1f3   : > { %4488 = vst [vmem:[#allocation53_spill] sm:$0xff] %v3597_v59  ;;  %v863_v6 = vrot.slane %v3597_v59, %v2845_v46  ;;  %v3628_v41 = vmul.f32 %v2135_v0, %v4495_v17  ;;  %v840_v48 = vmul.f32 %v833_v28, %v4496_v57  ;;  %v847_v20 = vrot.slane %v3612_v38, %v2845_v46 }
 0x1f4   : > { %4494 = vst [vmem:[#allocation31_spill] sm:$0xff] %v3622_v1  ;;  %v771_v10 = vadd.f32 %v769_v47, %v744_v39  ;;  %v794_v31 = vrot.slane %v3604_v11, %v2845_v46  ;;  %v3635_v62 = vmul.f32 %v827_v60, %v819_v55  ;;  %v890_v0 = vrot.slane %v3615_v12, %v2845_v46  ;;  %v4498_v39 = vld [vmem:[#allocation22_spill] sm:$0xff] }
 0x1f5   : > { %v854_v37 = vmul.f32 %v847_v20, %v3098_v24  ;;  %v1003_v28 = vmul.f32 %v2843_v44, %v3462_v52  ;;  %v785_v57 = vmul.f32 %v778_v54, %v2906_v14  ;;  %v881_v47 = vmul.f32 %v4498_v39, %v863_v6 }
 0x1f6   : > { %4497 = vst [vmem:[#allocation39_spill] sm:$0xff] %v3635_v62  ;;  %v906_v32 = vrot.slane %v3622_v1, %v2845_v46  ;;  %v3649_v55 = vmul.f32 %v4485_v58, %v820_v16  ;;  %v1010_v20 = vrot.slane %v3476_v19, %v2845_v46  ;;  %v3658_v44 = vmul.f32 %v3456_v50, %v3454_v40 }
 0x1f7   : > { %v856_v11 = vadd.f32 %v854_v37, %v840_v48  ;;  %v3654_v59 = vmul.f32 %v1003_v28, %v3269_v23  ;;  %v787_v52 = vadd.f32 %v785_v57, %v771_v10  ;;  %v801_v54 = vmul.f32 %v3572_v45, %v794_v31 }
 0x1f8   : > { %4499 = vst [vmem:[#allocation21_spill] sm:$0xff] %v3649_v55  ;;  %4501 = vst [vmem:[#allocation80_spill] sm:$0xff] %v3658_v44  ;;  %v922_v6 = vrot.slane %v3635_v62, %v2845_v46  ;;  %v3663_v1 = vmul.f32 %v824_v33, %v820_v16  ;;  %v897_v48 = vmul.f32 %v890_v0, %v4473_v61  ;;  %v997_v57 = vmax.f32 %v3204_v9, 0.0 }
 0x1f9   : > { %4500 = vst [vmem:[#allocation22_spill] sm:$0xff] %v3654_v59  ;;  %v883_v58 = vadd.f32 %v881_v47, %v856_v11  ;;  %v1024_v37 = vrot.slane %v3654_v59, %v2845_v46  ;;  %v3669_v23 = vmul.f32 %v1003_v28, %v3454_v40  ;;  %v913_v19 = vmul.f32 %v906_v32, %v4482_v2  ;;  %v4503_v40 = vld [vmem:[#allocation13_spill] sm:$0xff] }
 0x1fa   : > { %v938_v10 = vrot.slane %v3649_v55, %v2845_v46  ;;  %v3674_v31 = vmul.f32 %v827_v60, %v820_v16  ;;  %v1017_v11 = vmul.f32 %v1010_v20, %v3098_v24  ;;  %v1067_v47 = vrot.slane %v3658_v44, %v2845_v46  ;;  %v2571_v24 = vld [vmem:[%s4273_s5 + $0x1] ss:$8 sm:$0x3] }
 0x1fb   : > { %4502 = vst [vmem:[#allocation81_spill] sm:$0xff] %v3669_v23  ;;  %v899_v33 = vadd.f32 %v897_v48, %v883_v58  ;;  %v1031_v0 = vmul.f32 %v1024_v37, %v4498_v39  ;;  %v803_v59 = vadd.f32 %v801_v54, %v787_v52  ;;  %v929_v62 = vmul.f32 %v922_v6, %v4503_v40  ;;  %v4505_v39 = vld [vmem:[#allocation63_spill] sm:$0xff] }
 0x1fc   : > { %v954_v32 = vrot.slane %v3663_v1, %v2845_v46  ;;  %v3685_v55 = vmul.f32 %v3456_v50, %v997_v57  ;;  %v1083_v9 = vrot.slane %v3669_v23, %v2845_v46  ;;  %v3693_v20 = vmul.f32 %v2571_v24, %v4505_v39  ;;  %v4507_v37 = vld [vmem:[#allocation55_spill] sm:$0xff]  ;;  %v4510_v39 = vld [vmem:[#allocation44_spill] sm:$0xff] }
 0x1fd   : > { %v915_v16 = vadd.f32 %v913_v19, %v899_v33  ;;  %v1033_v60 = vadd.f32 %v1031_v0, %v1017_v11  ;;  %v945_v52 = vmul.f32 %v938_v10, %v2906_v14  ;;  %v970_v54 = vrot.slane %v3674_v31, %v2845_v46 }
 0x1fe   : > { %4504 = vst [vmem:[#allocation13_spill] sm:$0xff] %v3685_v55  ;;  %v1099_v50 = vrot.slane %v3482_v22, %v2845_v46  ;;  %v3700_v19 = vmul.f32 %v1003_v28, %v997_v57  ;;  %v1074_v48 = vmul.f32 %v1067_v47, %v4482_v2  ;;  %v3706_v33 = vmul.f32 %v3693_v20, %v4507_v37 }
 0x1ff   : > { %v931_v6 = vadd.f32 %v929_v62, %v915_v16  ;;  %v1060_v58 = vadd.f32 %v3508_v30, %v1033_v60  ;;  %v961_v11 = vmul.f32 %v3572_v45, %v954_v32  ;;  %v1126_v10 = vrot.slane %v3685_v55, %v2845_v46  ;;  %v3720_v60 = vld [vmem:[#allocation3 + $0x10] ss:$8 sm:$0x3] }
 0x200   : > { %4506 = vst [vmem:[#allocation63_spill] sm:$0xff] %v3700_v19  ;;  %4508 = vst [vmem:[#allocation55_spill] sm:$0xff] %v3706_v33  ;;  %v3712_v0 = vmul.f32 %v3447_v25, %v997_v57  ;;  %v3715_v28 = vmax.f32 %v4510_v39, 0.0  ;;  %v1090_v30 = vmul.f32 %v1083_v9, %v4503_v40  ;;  %v1223_v47 = vrot.slane %v3706_v33, %v2845_v46  ;;  %v4512_v9 = vld [vmem:[#allocation35_spill] sm:$0xff] }
 0x201   : > { %v947_v62 = vadd.f32 %v945_v52, %v931_v6  ;;  %v1076_v16 = vadd.f32 %v1074_v48, %v1060_v58  ;;  %v977_v55 = vmul.f32 %v970_v54, %v2922_v27  ;;  %v1142_v25 = vrot.slane %v3700_v19, %v2845_v46  ;;  %v1368_v39 = vld [vmem:[#allocation3 + $0x11] ss:$8 sm:$0x3] }
 0x202   : > { %4509 = vst [vmem:[#allocation82_spill] sm:$0xff] %v3712_v0  ;;  %v3729_v57 = vmul.f32 %v3715_v28, %v4507_v37  ;;  %v1117_v58 = vmul.f32 %v4512_v9, %v1099_v50  ;;  %v1230_v48 = vmul.f32 %v1223_v47, %v4473_v61  ;;  %v3735_v33 = vadd.f32 %v3593_v26, %v3547_v36  ;;  %v4514_v19 = vld [vmem:[#allocation24_spill] sm:$0xff] }
 0x203   : > { %v963_v52 = vadd.f32 %v961_v11, %v947_v62  ;;  %v1092_v6 = vadd.f32 %v1090_v30, %v1076_v16  ;;  %v4513_v54 = vrot.slane %v3488_v56, %v2845_v46  ;;  %v810_v37 = vmul.f32 %v4514_v19, %v803_v59 }
 0x204   : > { %4511 = vst [vmem:[#allocation44_spill] sm:$0xff] %v3729_v57  ;;  %v1369_v11 = vsub.f32 0.0, %v3720_v60  ;;  %v1133_v50 = vmul.f32 %v3572_v45, %v1126_v10  ;;  %v1158_v30 = vrot.slane %v3712_v0, %v2845_v46  ;;  %v4515_v36 = vrot.slane %v3533_v34, %v2845_v46 }
 0x205   : > { %v3741_v32 = vmul.f32 %v4513_v54, %v2950_v63  ;;  %v979_v62 = vadd.f32 %v977_v55, %v963_v52  ;;  %v1119_v16 = vadd.f32 %v1117_v58, %v1092_v6  ;;  %v1149_v56 = vmul.f32 %v1142_v25, %v2922_v27  ;;  %v4516_v54 = vld [vmem:[#allocation23_spill] sm:$0xff]  ;;  %v4517_v25 = vld [vmem:[#allocation58_spill] sm:$0xff] }
 0x206   : > { %v3752_v26 = vmul.f32 %v4515_v36, %v2963_v15  ;;  %v1239_v59 = vrot.slane %v3729_v57, %v2845_v46  ;;  %v1374_v47 = vsub.f32 0.0, %v1368_v39  ;;  %v1232_v10 = vadd.f32 %v1230_v48, %v3406_v4  ;;  %v2572_v4 = vld [vmem:[%s4273_s5 + $0x3] ss:$8 sm:$0x3] }
 0x207   : > { %v985_v55 = vmul.f32 %v4516_v54, %v979_v62  ;;  %v1135_v52 = vadd.f32 %v1133_v50, %v1119_v16  ;;  %v1371_v6 = vand.u32 2147483647, %v3720_v60  ;;  %v1370_v58 = vmax.f32 %v1369_v11, 0.0 }
 0x208   : > { %v1375_v19 = vmax.f32 %v1374_v47, 0.0  ;;  %v1376_v0 = vand.u32 2147483647, %v1368_v39  ;;  %v1378_v22 = vmax.f32 %v1368_v39, 0.0  ;;  %v1176_v23 = vmul.f32 %v4495_v17, %v1158_v30 }
 0x209   : > { %v987_v34 = vadd.f32 %v985_v55, %v810_v37  ;;  %v1151_v36 = vadd.f32 %v1149_v56, %v1135_v52  ;;  %v3763_v44 = vmul.f32 %v3693_v20, %v4517_v25  ;;  %v1246_v57 = vmul.f32 %v1239_v59, %v4482_v2  ;;  %v4520_v56 = vld [vmem:[#allocation25_spill] sm:$0xff] }
 0x20a   : > { %v3766_v62 = vsub.f32 1.0, %v1376_v0  ;;  %v3768_v16 = vmul.f32 %v2571_v24, %v1375_v19  ;;  %v3773_v48 = vmul.f32 %v2572_v4, %v1378_v22  ;;  %v2128_v39 = vadd.f32 %v3625_v53, %v3575_v43  ;;  %v3790_v22 = vld [vmem:[#allocation3 + $0x12] ss:$8 sm:$0x3] }
 0x20b   : > { %v3779_v37 = vadd.f32 %v3555_v13, %v3486_v5  ;;  %v1178_v11 = vadd.f32 %v1176_v23, %v1151_v36  ;;  %v1372_v50 = vsub.f32 1.0, %v1371_v6  ;;  %v1248_v30 = vadd.f32 %v1246_v57, %v1232_v10 }
 0x20c   : > { %v3782_v0 = vmul.f32 %v3768_v16, %v1370_v58  ;;  %v3785_v24 = vmul.f32 %v3766_v62, %v1370_v58  ;;  %v3788_v19 = vmul.f32 %v3773_v48, %v1370_v58  ;;  %v4521_v5 = vrot.slane %v3343_v21, %v2845_v46 }
 0x20d   : > { %4518 = vst [vmem:[#allocation35_spill] sm:$0xff] %v3779_v37  ;;  %v1184_v43 = vmul.f32 %v4520_v56, %v1178_v11  ;;  %v3799_v53 = vmul.f32 %v3715_v28, %v4517_v25  ;;  %v3802_v23 = vmul.f32 %v3768_v16, %v1372_v50  ;;  %v1271_v57 = vrot.slane %v3763_v44, %v2845_v46  ;;  %v4527_v11 = vld [vmem:[#allocation47_spill] sm:$0xff] }
 0x20e   : > { %4519 = vst [vmem:[#allocation23_spill] sm:$0xff] %v3788_v19  ;;  %v1262_v13 = vmul.f32 %v4521_v5, %v4493_v3  ;;  %v1386_v59 = vrot.slane %v3782_v0, %v2845_v46  ;;  %v1400_v47 = vrot.slane %v3785_v24, %v2845_v46  ;;  %v1416_v55 = vrot.slane %v3788_v19, %v2845_v46  ;;  %v4522_v3 = vld [vmem:[#allocation45_spill] sm:$0xff] }
 0x20f   : > { %v4523_v52 = vrot.slane %v3505_v8, %v2845_v46  ;;  %v4524_v6 = vrot.slane %v3469_v35, %v2845_v46  ;;  %v3824_v36 = vadd.f32 %v1184_v43, %v987_v34  ;;  %v1535_v25 = vsub.f32 0.0, %v3790_v22  ;;  %v1534_v8 = vld [vmem:[#allocation3 + $0x13] ss:$8 sm:$0x3] }
 0x210   : > { %v1196_v5 = vmax.f32 %v4527_v11, 0.0  ;;  %v1264_v37 = vadd.f32 %v1262_v13, %v1248_v30  ;;  %v1393_v56 = vmul.f32 %v1386_v59, %v4473_v61  ;;  %v1407_v19 = vmul.f32 %v1400_v47, %v4482_v2  ;;  %v4530_v30 = vld [vmem:[#allocation57_spill] sm:$0xff] }
 0x211   : > { %v3816_v10 = vmul.f32 %v4523_v52, %v4522_v3  ;;  %v3822_v58 = vmul.f32 %v4524_v6, %v4472_v49  ;;  %4526 = vst [vmem:[#allocation83_spill] sm:$0xff] %v3824_v36  ;;  %v4528_v52 = vrot.slane %v3511_v7, %v2845_v46  ;;  %v1287_v35 = vrot.slane %v3799_v53, %v2845_v46 }
 0x212   : > { %v1432_v34 = vrot.slane %v3802_v23, %v2845_v46  ;;  %v3841_v43 = vmul.f32 %v3766_v62, %v1372_v50  ;;  %v1278_v61 = vmul.f32 %v1271_v57, %v2906_v14  ;;  %v3845_v13 = vmul.f32 %v4530_v30, %v1196_v5 }
 0x213   : > { %4525 = vst [vmem:[#allocation58_spill] sm:$0xff] %v3822_v58  ;;  %v3834_v3 = vmul.f32 %v4528_v52, %v4472_v49  ;;  %v1409_v59 = vadd.f32 %v1407_v19, %v1393_v56  ;;  %v1423_v47 = vmul.f32 %v1416_v55, %v4503_v40  ;;  %v3849_v7 = vmul.f32 %v3693_v20, %v1196_v5 }
 0x214   : > { %v1536_v49 = vmax.f32 %v1535_v25, 0.0  ;;  %v1540_v6 = vsub.f32 0.0, %v1534_v8  ;;  %v1542_v11 = vand.u32 2147483647, %v1534_v8  ;;  %v1280_v52 = vadd.f32 %v1278_v61, %v1264_v37 }
 0x215   : > { %4529 = vst [vmem:[#allocation47_spill] sm:$0xff] %v3834_v3  ;;  %v1425_v58 = vadd.f32 %v1423_v47, %v1409_v59  ;;  %v3852_v3 = vmul.f32 %v3773_v48, %v1372_v50  ;;  %v1544_v36 = vmax.f32 %v1534_v8, 0.0  ;;  %v1439_v57 = vmul.f32 %v1432_v34, %v2906_v14 }
 0x216   : > { %v1448_v30 = vrot.slane %v3841_v43, %v2845_v46  ;;  %v1541_v19 = vmax.f32 %v1540_v6, 0.0  ;;  %v1543_v56 = vsub.f32 1.0, %v1542_v11  ;;  %v1294_v55 = vmul.f32 %v3572_v45, %v1287_v35  ;;  %v4534_v11 = vld [vmem:[#allocation42_spill] sm:$0xff] }
 0x217   : > { %v1303_v20 = vrot.slane %v3845_v13, %v2845_v46  ;;  %v1373_v25 = vmax.f32 %v3720_v60, 0.0  ;;  %v1537_v37 = vand.u32 2147483647, %v3790_v22  ;;  %v1441_v61 = vadd.f32 %v1439_v57, %v1425_v58 }
 0x218   : > { %v3862_v50 = vmul.f32 %v2572_v4, %v1543_v56  ;;  %v3865_v8 = vmul.f32 %v3430_v29, %v1544_v36  ;;  %v3867_v14 = vmul.f32 %v1541_v19, %v1536_v49  ;;  %v2145_v34 = vadd.f32 %v3562_v51, %v3735_v33  ;;  %v4533_v36 = vld [vmem:[#allocation37_spill] sm:$0xff]  ;;  %v4536_v56 = vld [vmem:[#allocation76_spill] sm:$0xff] }
 0x219   : > { %v2144_v35 = vadd.f32 %v3628_v41, %v2128_v39  ;;  %v3874_v59 = vmul.f32 %v3315_v18, %v3394_v42  ;;  %v1296_v60 = vadd.f32 %v1294_v55, %v1280_v52  ;;  %v1455_v47 = vmul.f32 %v3572_v45, %v1448_v30  ;;  %v4535_v30 = vld [vmem:[#allocation75_spill] sm:$0xff] }
 0x21a   : > { %v1464_v4 = vrot.slane %v3852_v3, %v2845_v46  ;;  %v3880_v29 = vmul.f32 %v3768_v16, %v1373_v25  ;;  %v3883_v58 = vmul.f32 %v3862_v50, %v1536_v49  ;;  %v1321_v51 = vmul.f32 %v4533_v36, %v1303_v20 }
 0x21b   : > { %4531 = vst [vmem:[#allocation57_spill] sm:$0xff] %v3874_v59  ;;  %v1330_v41 = vrot.slane %v3849_v7, %v2845_v46  ;;  %v3889_v18 = vmul.f32 %v3715_v28, %v1196_v5  ;;  %v1538_v42 = vsub.f32 1.0, %v1537_v37  ;;  %v1457_v33 = vadd.f32 %v1455_v47, %v1441_v61 }
 0x21c   : > { %4532 = vst [vmem:[#allocation84_spill] sm:$0xff] %v3883_v58  ;;  %v1552_v39 = vrot.slane %v3867_v14, %v2845_v46  ;;  %v1566_v16 = vrot.slane %v3883_v58, %v2845_v46  ;;  %v3896_v6 = vmul.f32 %v3865_v8, %v1536_v49  ;;  %v2161_v52 = vadd.f32 %v4534_v11, %v2145_v34  ;;  %v4538_v34 = vld [vmem:[#allocation16_spill] sm:$0xff] }
 0x21d   : > { %v2054_v57 = vrot.slane %v3874_v59, %v2845_v46  ;;  %v3903_v28 = vmul.f32 %v4536_v56, %v4535_v30  ;;  %v1323_v5 = vadd.f32 %v1321_v51, %v1296_v60  ;;  %v1471_v55 = vmul.f32 %v1464_v4, %v2922_v27  ;;  %v4539_v60 = vld [vmem:[#allocation5_spill] sm:$0xff]  ;;  %v4540_v30 = vld [vmem:[#allocation56_spill] sm:$0xff] }
 0x21e   : > { %v1480_v20 = vrot.slane %v3880_v29, %v2845_v46  ;;  %v3909_v37 = vmul.f32 %v3766_v62, %v1373_v25  ;;  %v1573_v49 = vmul.f32 %v1566_v16, %v4503_v40  ;;  %v2160_v61 = vadd.f32 %v3741_v32, %v2144_v35  ;;  %v4559_v59 = vld [vmem:[#allocation4_spill] sm:$0xff] }
 0x21f   : > { %4537 = vst [vmem:[#allocation37_spill] sm:$0xff] %v3903_v28  ;;  %v1337_v47 = vmul.f32 %v1330_v41, %v4538_v34  ;;  %v1346_v36 = vrot.slane %v3889_v18, %v2845_v46  ;;  %v3916_v11 = vmul.f32 %v1541_v19, %v1538_v42  ;;  %v1473_v51 = vadd.f32 %v1471_v55, %v1457_v33 }
 0x220   : > { %v1559_v56 = vmul.f32 %v1552_v39, %v4482_v2  ;;  %v1582_v62 = vrot.slane %v3896_v6, %v2845_v46  ;;  %v2177_v40 = vadd.f32 %v4540_v30, %v2161_v52  ;;  %v3925_v32 = vmul.f32 %v3773_v48, %v1373_v25 }
 0x221   : > { %v1339_v16 = vadd.f32 %v1337_v47, %v1323_v5  ;;  %v1539_v35 = vmax.f32 %v3790_v22, 0.0  ;;  %v1487_v41 = vmul.f32 %v1480_v20, %v4538_v34  ;;  %v1496_v58 = vrot.slane %v3909_v37, %v2845_v46 }
 0x222   : > { %v1575_v4 = vadd.f32 %v1573_v49, %v1559_v56  ;;  %v3932_v33 = vmul.f32 %v3865_v8, %v1538_v42  ;;  %v2176_v2 = vadd.f32 %v3752_v26, %v2160_v61  ;;  %v1353_v39 = vmul.f32 %v1346_v36, %v2950_v63  ;;  %v4542_v26 = vld [vmem:[#allocation50_spill] sm:$0xff]  ;;  %v4544_v61 = vld [vmem:[#allocation49_spill] sm:$0xff] }
 0x223   : > { %v1598_v52 = vrot.slane %v3916_v11, %v2845_v46  ;;  %v3938_v48 = vmul.f32 %v1541_v19, %v1539_v35  ;;  %v1489_v25 = vadd.f32 %v1487_v41, %v1473_v51  ;;  %v1589_v30 = vmul.f32 %v1582_v62, %v4512_v9  ;;  %v4547_v56 = vld [vmem:[#allocation61_spill] sm:$0xff] }
 0x224   : > { %v3944_v5 = vmul.f32 %v3862_v50, %v1538_v42  ;;  %v3949_v20 = vmul.f32 %v4542_v26, %v2054_v57  ;;  %v1355_v49 = vadd.f32 %v1353_v39, %v1339_v16  ;;  %v1512_v19 = vrot.slane %v3925_v32, %v2845_v46  ;;  %v4552_v39 = vld [vmem:[#allocation59_spill] sm:$0xff] }
 0x225   : > { %4541 = vst [vmem:[#allocation42_spill] sm:$0xff] %v3938_v48  ;;  %v3954_v34 = vadd.f32 %v4544_v61, %v2177_v40  ;;  %v1503_v47 = vmul.f32 %v1496_v58, %v2950_v63  ;;  %v1591_v36 = vadd.f32 %v1589_v30, %v1575_v4  ;;  %v1630_v9 = vrot.slane %v3932_v33, %v2845_v46 }
 0x226   : > { %4543 = vst [vmem:[#allocation76_spill] sm:$0xff] %v3949_v20  ;;  %v3960_v42 = vadd.f32 %v3816_v10, %v2176_v2  ;;  %v1605_v51 = vmul.f32 %v3572_v45, %v1598_v52  ;;  %v1646_v57 = vrot.slane %v3938_v48, %v2845_v46  ;;  %v1946_v62 = vrot.slane %v4547_v56, %v4539_v60  ;;  %v4550_v10 = vld [vmem:[#allocation26_spill] sm:$0xff]  ;;  %v4551_v2 = vld [vmem:[#allocation11_spill] sm:$0xff]  ;;  %v4576_v48 = vld [vmem:[#allocation52_spill] sm:$0xff] }
 0x227   : > { %4545 = vst [vmem:[#allocation16_spill] sm:$0xff] %v3954_v34  ;;  %v1505_v16 = vadd.f32 %v1503_v47, %v1489_v25  ;;  %v1614_v40 = vrot.slane %v3944_v5, %v2845_v46  ;;  %v3970_v58 = vmul.f32 %v3862_v50, %v1539_v35  ;;  %v3973_v4 = vmul.f32 %v3865_v8, %v1539_v35  ;;  %v4554_v25 = vld [vmem:[#allocation54_spill] sm:$0xff]  ;;  %v4556_v47 = vld [vmem:[#allocation20_spill] sm:$0xff] }
 0x228   : > { %4546 = vst [vmem:[#allocation5_spill] sm:$0xff] %v3960_v42  ;;  %v3976_v41 = vmul.f32 %v4550_v10, %v1355_v49  ;;  %v1519_v45 = vmul.f32 %v1512_v19, %v2963_v15  ;;  %v4553_v52 = vrot.slane %v4552_v39, %v4539_v60  ;;  %v4555_v61 = vrot.slane %v4554_v25, %v4539_v60  ;;  %v4557_v8 = vld [vmem:[#allocation64_spill] sm:$0xff]  ;;  %v4558_v49 = vld [vmem:[#allocation78_spill] sm:$0xff]  ;;  %v4560_v39 = vld [vmem:[#allocation43_spill] sm:$0xff] }
 0x229   : > { %4548 = vst [vmem:[#allocation56_spill] sm:$0xff] %v3970_v58  ;;  %4549 = vst [vmem:[#allocation49_spill] sm:$0xff] %v3973_v4  ;;  %v1607_v50 = vadd.f32 %v1605_v51, %v1591_v36  ;;  %v1637_v55 = vmul.f32 %v1630_v9, %v4495_v17  ;;  %v1962_v35 = vrot.slane %v4557_v8, %v4539_v60  ;;  %v4561_v34 = vld [vmem:[#allocation60_spill] sm:$0xff] }
 0x22a   : > { %v1936_v30 = vmul.f32 %v4553_v52, %v4551_v2  ;;  %v684_v56 = vmul.f32 %v4556_v47, %v4555_v61  ;;  %v723_v22 = vrot.slane %v4558_v49, %v4539_v60  ;;  %v1653_v19 = vmul.f32 %v1646_v57, %v2950_v63  ;;  %v4563_v61 = vld [vmem:[#allocation65_spill] sm:$0xff]  ;;  %v4564_v57 = vld [vmem:[#allocation6_spill] sm:$0xff]  ;;  %v4569_v42 = vld [vmem:[#allocation8_spill] sm:$0xff] }
 0x22b   : > { %v1950_v20 = vmul.f32 %v1946_v62, %v4559_v59  ;;  %v739_v25 = vrot.slane %v4561_v34, %v4539_v60  ;;  %v3997_v28 = vadd.f32 %v1519_v45, %v1505_v16  ;;  %v1621_v36 = vmul.f32 %v1614_v40, %v2922_v27  ;;  %v4566_v34 = vld [vmem:[#allocation14_spill] sm:$0xff]  ;;  %v4567_v45 = vld [vmem:[#allocation40_spill] sm:$0xff] }
 0x22c   : > { %v686_v52 = vadd.f32 %v684_v56, %v4560_v39  ;;  %v1662_v17 = vrot.slane %v3970_v58, %v2845_v46  ;;  %v727_v62 = vmul.f32 %v723_v22, %v4564_v57  ;;  %v4565_v56 = vld [vmem:[#allocation62_spill] sm:$0xff]  ;;  %v1966_v16 = vmul.f32 %v1962_v35, %v4566_v34  ;;  %v4568_v40 = vld [vmem:[#allocation12_spill] sm:$0xff]  ;;  %v4570_v22 = vld [vmem:[#allocation53_spill] sm:$0xff] }
 0x22d   : > { %4562 = vst [vmem:[#allocation61_spill] sm:$0xff] %v3997_v28  ;;  %v1952_v51 = vadd.f32 %v1950_v20, %v1936_v30  ;;  %v755_v8 = vrot.slane %v4565_v56, %v4539_v60  ;;  %v1623_v49 = vadd.f32 %v1621_v36, %v1607_v50  ;;  %v782_v27 = vrot.slane %v4567_v45, %v4539_v60  ;;  %v4572_v35 = vld [vmem:[#allocation67_spill] sm:$0xff] }
 0x22e   : > { %v713_v63 = vadd.f32 %v4563_v61, %v686_v52  ;;  %v837_v39 = vrot.slane %v4568_v40, %v4539_v60  ;;  %v743_v9 = vmul.f32 %v739_v25, %v4569_v42  ;;  %v851_v20 = vrot.slane %v3612_v38, %v4539_v60  ;;  %v4571_v52 = vld [vmem:[#allocation66_spill] sm:$0xff]  ;;  %v4573_v61 = vld [vmem:[#allocation68_spill] sm:$0xff]  ;;  %v4574_v45 = vld [vmem:[#allocation19_spill] sm:$0xff] }
 0x22f   : > { %v867_v30 = vrot.slane %v4570_v22, %v4539_v60  ;;  %v1978_v50 = vrot.slane %v4571_v52, %v4539_v60  ;;  %v1994_v36 = vrot.slane %v4572_v35, %v4539_v60  ;;  %v2010_v56 = vrot.slane %v4573_v61, %v4539_v60  ;;  %v4575_v25 = vld [vmem:[#allocation33_spill] sm:$0xff]  ;;  %v4577_v61 = vld [vmem:[#allocation30_spill] sm:$0xff] }
 0x230   : > { %v729_v26 = vadd.f32 %v727_v62, %v713_v63  ;;  %v841_v40 = vmul.f32 %v837_v39, %v4574_v45  ;;  %v1968_v63 = vadd.f32 %v1966_v16, %v1952_v51  ;;  %v770_v58 = vmul.f32 %v4575_v25, %v755_v8  ;;  %v4578_v51 = vld [vmem:[#allocation31_spill] sm:$0xff]  ;;  %v4582_v39 = vld [vmem:[#allocation18_spill] sm:$0xff] }
 0x231   : > { %v855_v38 = vmul.f32 %v851_v20, %v4556_v47  ;;  %v1639_v28 = vadd.f32 %v1637_v55, %v1623_v49  ;;  %v786_v22 = vmul.f32 %v782_v27, %v4551_v2  ;;  %v798_v52 = vrot.slane %v4576_v48, %v4539_v60  ;;  %v4579_v8 = vld [vmem:[#allocation15_spill] sm:$0xff]  ;;  %v4580_v49 = vld [vmem:[#allocation17_spill] sm:$0xff] }
 0x232   : > { %v745_v62 = vadd.f32 %v743_v9, %v729_v26  ;;  %v894_v35 = vrot.slane %v3615_v12, %v4539_v60  ;;  %v882_v4 = vmul.f32 %v4577_v61, %v867_v30  ;;  %v910_v26 = vrot.slane %v4578_v51, %v4539_v60  ;;  %v4581_v48 = vld [vmem:[#allocation39_spill] sm:$0xff] }
 0x233   : > { %v857_v46 = vadd.f32 %v855_v38, %v841_v40  ;;  %v4036_v9 = vmul.f32 %v1662_v17, %v2963_v15  ;;  %v1982_v55 = vmul.f32 %v1978_v50, %v4579_v8  ;;  %v4040_v16 = vmul.f32 %v1994_v36, %v4580_v49  ;;  %v4583_v15 = vld [vmem:[#allocation73_spill] sm:$0xff]  ;;  %v4584_v50 = vld [vmem:[#allocation22_spill] sm:$0xff] }
 0x234   : > { %v772_v10 = vadd.f32 %v770_v58, %v745_v62  ;;  %v926_v27 = vrot.slane %v4581_v48, %v4539_v60  ;;  %v4045_v12 = vmul.f32 %v2010_v56, %v4582_v39  ;;  %v898_v30 = vmul.f32 %v894_v35, %v4564_v57 }
 0x235   : > { %v884_v20 = vadd.f32 %v882_v4, %v857_v46  ;;  %v4048_v45 = vadd.f32 %v1653_v19, %v1639_v28  ;;  %v4050_v40 = vadd.f32 %v1982_v55, %v1968_v63  ;;  %v1014_v17 = vrot.slane %v4583_v15, %v4539_v60  ;;  %v4586_v4 = vld [vmem:[#allocation9_spill] sm:$0xff]  ;;  %v4587_v55 = vld [vmem:[#allocation80_spill] sm:$0xff] }
 0x236   : > { %v788_v58 = vadd.f32 %v786_v22, %v772_v10  ;;  %v1028_v36 = vrot.slane %v4584_v50, %v4539_v60  ;;  %v802_v62 = vmul.f32 %v798_v52, %v4559_v59  ;;  %v914_v56 = vmul.f32 %v910_v26, %v4569_v42  ;;  %v4585_v10 = vld [vmem:[#allocation21_spill] sm:$0xff] }
 0x237   : > { %v900_v38 = vadd.f32 %v898_v30, %v884_v20  ;;  %v942_v46 = vrot.slane %v4585_v10, %v4539_v60  ;;  %v930_v22 = vmul.f32 %v926_v27, %v4586_v4  ;;  %v958_v28 = vrot.slane %v3663_v1, %v4539_v60  ;;  %v4588_v20 = vld [vmem:[#allocation71_spill] sm:$0xff]  ;;  %v4590_v27 = vld [vmem:[#allocation32_spill] sm:$0xff]  ;;  %v4591_v1 = vld [vmem:[#allocation81_spill] sm:$0xff] }
 0x238   : > { %v1018_v19 = vmul.f32 %v1014_v17, %v4556_v47  ;;  %v1032_v63 = vmul.f32 %v1028_v36, %v4577_v61  ;;  %v804_v35 = vadd.f32 %v802_v62, %v788_v58  ;;  %v974_v52 = vrot.slane %v3674_v31, %v4539_v60  ;;  %v4592_v47 = vld [vmem:[#allocation74_spill] sm:$0xff]  ;;  %v4593_v31 = vld [vmem:[#allocation13_spill] sm:$0xff]  ;;  %v4594_v62 = vld [vmem:[#allocation63_spill] sm:$0xff] }
 0x239   : > { %v916_v51 = vadd.f32 %v914_v56, %v900_v38  ;;  %v1071_v26 = vrot.slane %v4587_v55, %v4539_v60  ;;  %v4589_v30 = vrot.slane %v4588_v20, %v4539_v60  ;;  %v1087_v50 = vrot.slane %v4591_v1, %v4539_v60  ;;  %v4598_v1 = vld [vmem:[#allocation24_spill] sm:$0xff] }
 0x23a   : > { %v1034_v48 = vadd.f32 %v1032_v63, %v1018_v19  ;;  %v1103_v61 = vrot.slane %v4592_v47, %v4539_v60  ;;  %v946_v17 = vmul.f32 %v942_v46, %v4551_v2  ;;  %v1130_v36 = vrot.slane %v4593_v31, %v4539_v60  ;;  %v4595_v63 = vld [vmem:[#allocation82_spill] sm:$0xff] }
 0x23b   : > { %v1059_v15 = vmul.f32 %v4590_v27, %v4589_v30  ;;  %v932_v58 = vadd.f32 %v930_v22, %v916_v51  ;;  %v1146_v38 = vrot.slane %v4594_v62, %v4539_v60  ;;  %v962_v56 = vmul.f32 %v958_v28, %v4559_v59  ;;  %v4596_v22 = vld [vmem:[#allocation55_spill] sm:$0xff]  ;;  %v4597_v51 = vld [vmem:[#allocation44_spill] sm:$0xff] }
 0x23c   : > { %v1075_v19 = vmul.f32 %v1071_v26, %v4569_v42  ;;  %v1162_v55 = vrot.slane %v4595_v63, %v4539_v60  ;;  %v978_v30 = vmul.f32 %v974_v52, %v4566_v34  ;;  %v1227_v46 = vrot.slane %v4596_v22, %v4539_v60  ;;  %v4600_v63 = vld [vmem:[#allocation38_spill] sm:$0xff] }
 0x23d   : > { %v1061_v10 = vadd.f32 %v1059_v15, %v1034_v48  ;;  %v948_v20 = vadd.f32 %v946_v17, %v932_v58  ;;  %v1243_v27 = vrot.slane %v4597_v51, %v4539_v60  ;;  %v811_v47 = vmul.f32 %v4598_v1, %v804_v35  ;;  %v4599_v48 = vld [vmem:[#allocation34_spill] sm:$0xff] }
 0x23e   : > { %v1091_v28 = vmul.f32 %v1087_v50, %v4586_v4  ;;  %v1118_v15 = vmul.f32 %v4599_v48, %v1103_v61  ;;  %v1134_v62 = vmul.f32 %v1130_v36, %v4559_v59  ;;  %v1150_v58 = vmul.f32 %v1146_v38, %v4566_v34  ;;  %v4602_v61 = vld [vmem:[#allocation70_spill] sm:$0xff] }
 0x23f   : > { %v1077_v31 = vadd.f32 %v1075_v19, %v1061_v10  ;;  %v964_v26 = vadd.f32 %v962_v56, %v948_v20  ;;  %v1231_v52 = vmul.f32 %v1227_v46, %v4564_v57  ;;  %v1177_v22 = vmul.f32 %v4600_v63, %v1162_v55  ;;  %v4603_v46 = vld [vmem:[#allocation23_spill] sm:$0xff] }
 0x240   : > { %v4601_v51 = vrot.slane %v3343_v21, %v4539_v60  ;;  %v1275_v50 = vrot.slane %v3763_v44, %v4539_v60  ;;  %v1247_v36 = vmul.f32 %v1243_v27, %v4569_v42  ;;  %v1291_v38 = vrot.slane %v3799_v53, %v4539_v60 }
 0x241   : > { %v1093_v17 = vadd.f32 %v1091_v28, %v1077_v31  ;;  %v980_v10 = vadd.f32 %v978_v30, %v964_v26  ;;  %v1233_v56 = vadd.f32 %v1231_v52, %v4602_v61  ;;  %v1307_v55 = vrot.slane %v3845_v13, %v4539_v60 }
 0x242   : > { %v1263_v35 = vmul.f32 %v4601_v51, %v4575_v25  ;;  %v1390_v20 = vrot.slane %v3782_v0, %v4539_v60  ;;  %v1404_v21 = vrot.slane %v3785_v24, %v4539_v60  ;;  %v1334_v30 = vrot.slane %v3849_v7, %v4539_v60 }
 0x243   : > { %v1120_v19 = vadd.f32 %v1118_v15, %v1093_v17  ;;  %v986_v44 = vmul.f32 %v4516_v54, %v980_v10  ;;  %v1249_v25 = vadd.f32 %v1247_v36, %v1233_v56  ;;  %v1420_v27 = vrot.slane %v4603_v46, %v4539_v60  ;;  %v4605_v36 = vld [vmem:[#allocation25_spill] sm:$0xff] }
 0x244   : > { %v1394_v1 = vmul.f32 %v1390_v20, %v4564_v57  ;;  %v1408_v13 = vmul.f32 %v1404_v21, %v4569_v42  ;;  %v1436_v0 = vrot.slane %v3802_v23, %v4539_v60  ;;  %v1279_v24 = vmul.f32 %v1275_v50, %v4551_v2  ;;  %v4604_v57 = vld [vmem:[#allocation36_spill] sm:$0xff] }
 0x245   : > { %v1136_v53 = vadd.f32 %v1134_v62, %v1120_v19  ;;  %v988_v31 = vadd.f32 %v986_v44, %v811_v47  ;;  %v1265_v28 = vadd.f32 %v1263_v35, %v1249_v25  ;;  %v1452_v54 = vrot.slane %v3841_v43, %v4539_v60 }
 0x246   : > { %v1295_v7 = vmul.f32 %v1291_v38, %v4559_v59  ;;  %v1410_v26 = vadd.f32 %v1408_v13, %v1394_v1  ;;  %v1424_v62 = vmul.f32 %v1420_v27, %v4586_v4  ;;  %v1322_v17 = vmul.f32 %v4604_v57, %v1307_v55 }
 0x247   : > { %v1152_v15 = vadd.f32 %v1150_v58, %v1136_v53  ;;  %v1281_v52 = vadd.f32 %v1279_v24, %v1265_v28  ;;  %v1350_v51 = vrot.slane %v3889_v18, %v4539_v60  ;;  %v1468_v23 = vrot.slane %v3852_v3, %v4539_v60 }
 0x248   : > { %v1338_v35 = vmul.f32 %v1334_v30, %v4579_v8  ;;  %v1426_v50 = vadd.f32 %v1424_v62, %v1410_v26  ;;  %v1440_v43 = vmul.f32 %v1436_v0, %v4551_v2  ;;  %v1456_v10 = vmul.f32 %v1452_v54, %v4559_v59  ;;  %v4164_v0 = vpop.permute.xlu1 %2077  ;;  %v4612_v26 = vld [vmem:[#allocation26_spill] sm:$0xff] }
 0x249   : > { %v1179_v47 = vadd.f32 %v1177_v22, %v1152_v15  ;;  %v1297_v58 = vadd.f32 %v1295_v7, %v1281_v52  ;;  %v1484_v61 = vrot.slane %v3880_v29, %v4539_v60  ;;  %v1556_v56 = vrot.slane %v3867_v14, %v4539_v60  ;;  %v4606_v22 = vld [vmem:[#allocation84_spill] sm:$0xff]  ;;  %v4611_v15 = vld [vmem:[#allocation45_spill] sm:$0xff] }
 0x24a   : > { %v1442_v38 = vadd.f32 %v1440_v43, %v1426_v50  ;;  %v1500_v3 = vrot.slane %v3909_v37, %v4539_v60  ;;  %v1570_v19 = vrot.slane %v4606_v22, %v4539_v60  ;;  %v1472_v2 = vmul.f32 %v1468_v23, %v4566_v34  ;;  %v4615_v23 = vld [vmem:[#allocation27_spill] sm:$0xff]  ;;  %v4617_v50 = vld [vmem:[#allocation69_spill] sm:$0xff]  ;;  %v4621_v22 = vld [vmem:[#allocation72_spill] sm:$0xff] }
 0x24b   : > { %v1185_v18 = vmul.f32 %v4605_v36, %v1179_v47  ;;  %v1324_v55 = vadd.f32 %v1322_v17, %v1297_v58  ;;  %v1560_v20 = vmul.f32 %v1556_v56, %v4569_v42  ;;  %v1586_v29 = vrot.slane %v3896_v6, %v4539_v60 }
 0x24c   : > { %v1458_v44 = vadd.f32 %v1456_v10, %v1442_v38  ;;  %v1574_v14 = vmul.f32 %v1570_v19, %v4586_v4  ;;  %v1602_v25 = vrot.slane %v3916_v11, %v4539_v60  ;;  %v2000_v37 = vadd.f32 %v4040_v16, %v4050_v40  ;;  %v2243_v40 = vpop.permute.xlu0 %2242 }
 0x24d   : > { %v1187_v21 = vadd.f32 %v1185_v18, %v988_v31  ;;  %v1340_v30 = vadd.f32 %v1338_v35, %v1324_v55  ;;  %v1354_v46 = vmul.f32 %v1350_v51, %v4580_v49  ;;  %v1488_v27 = vmul.f32 %v1484_v61, %v4579_v8  ;;  %v4616_v35 = vld [vmem:[#allocation46_spill] sm:$0xff] }
 0x24e   : > { %v1474_v53 = vadd.f32 %v1472_v2, %v1458_v44  ;;  %v1576_v42 = vadd.f32 %v1574_v14, %v1560_v20  ;;  %v1590_v1 = vmul.f32 %v1586_v29, %v4599_v48  ;;  %v1618_v6 = vrot.slane %v3944_v5, %v4539_v60  ;;  %v4607_v5 = vld [vmem:[#allocation83_spill] sm:$0xff]  ;;  %v2241_v2 = vpop.permute.xlu1 %2240  ;;  %v4622_v14 = vld [vmem:[#allocation5_spill] sm:$0xff] }
 0x24f   : > { %v1671_v4 = vadd.f32 %v4036_v9, %v4048_v45  ;;  %v1356_v13 = vadd.f32 %v1354_v46, %v1340_v30  ;;  %v1504_v11 = vmul.f32 %v1500_v3, %v4580_v49  ;;  %v1516_v16 = vrot.slane %v3925_v32, %v4539_v60  ;;  %v4608_v9 = vld [vmem:[#allocation49_spill] sm:$0xff]  ;;  %v4609_v45 = vld [vmem:[#allocation7_spill] sm:$0xff] }
 0x250   : > { %v1490_v8 = vadd.f32 %v1488_v27, %v1474_v53  ;;  %v1592_v31 = vadd.f32 %v1590_v1, %v1576_v42  ;;  %v1606_v28 = vmul.f32 %v1602_v25, %v4559_v59  ;;  %v1634_v48 = vrot.slane %v3932_v33, %v4539_v60  ;;  %v4613_v59 = vld [vmem:[#allocation42_spill] sm:$0xff]  ;;  %v4614_v33 = vld [vmem:[#allocation61_spill] sm:$0xff]  ;;  %v4620_v3 = vld [vmem:[#allocation75_spill] sm:$0xff]  ;;  %v2239_v55 = vpop.permute.xlu0 %2238 }
 0x251   : > { %v1363_v24 = vadd.f32 %v3976_v41, %v4607_v5  ;;  %v4610_v54 = vrot.slane %v4608_v9, %v4609_v45  ;;  %v2016_v32 = vadd.f32 %v4045_v12, %v2000_v37  ;;  %v1362_v62 = vmul.f32 %v4612_v26, %v1356_v13  ;;  %v4624_v37 = vld [vmem:[#allocation50_spill] sm:$0xff]  ;;  %v4625_v30 = vld [vmem:[#allocation37_spill] sm:$0xff]  ;;  %v4627_v53 = vld [vmem:[#allocation28_spill] sm:$0xff] }
 0x252   : > { %v1506_v52 = vadd.f32 %v1504_v11, %v1490_v8  ;;  %v1608_v57 = vadd.f32 %v1606_v28, %v1592_v31  ;;  %v1622_v17 = vmul.f32 %v1618_v6, %v4566_v34  ;;  %v1650_v51 = vrot.slane %v4613_v59, %v4539_v60  ;;  %v4619_v34 = vld [vmem:[#allocation56_spill] sm:$0xff]  ;;  %v4628_v1 = vld [vmem:[#allocation77_spill] sm:$0xff]  ;;  %v4629_v6 = vld [vmem:[#allocation58_spill] sm:$0xff] }
 0x253   : > { %v1696_v7 = vmul.f32 %v4611_v15, %v4610_v54  ;;  %v1527_v47 = vmul.f32 %v4615_v23, %v4614_v33  ;;  %v4618_v43 = vrot.slane %v4617_v50, %v4539_v60  ;;  %v1364_v10 = vadd.f32 %v1362_v62, %v1187_v21  ;;  %v4630_v13 = vld [vmem:[#allocation16_spill] sm:$0xff]  ;;  %v4631_v11 = vld [vmem:[#allocation10_spill] sm:$0xff]  ;;  %v4635_v62 = vld [vmem:[#allocation41_spill] sm:$0xff] }
 0x254   : > { %v1520_v12 = vmul.f32 %v1516_v16, %v4582_v39  ;;  %v1624_v61 = vadd.f32 %v1622_v17, %v1608_v57  ;;  %v1638_v56 = vmul.f32 %v1634_v48, %v4600_v63  ;;  %v1666_v36 = vrot.slane %v4619_v34, %v4539_v60  ;;  %v4623_v63 = vld [vmem:[#allocation47_spill] sm:$0xff]  ;;  %v4634_v15 = vld [vmem:[#allocation48_spill] sm:$0xff]  ;;  %v4637_v17 = vld [vmem:[#allocation29_spill] sm:$0xff] }
 0x255   : > { %v1698_v41 = vadd.f32 %v1696_v7, %v1671_v4  ;;  %v2030_v58 = vmul.f32 %v4618_v43, %v4616_v35  ;;  %v1529_v18 = vadd.f32 %v1527_v47, %v1363_v24  ;;  %v2226_v19 = vmul.f32 %v4621_v22, %v4620_v3  ;;  %v4636_v57 = vld [vmem:[#allocation35_spill] sm:$0xff] }
 0x256   : > { %v1522_v20 = vadd.f32 %v1520_v12, %v1506_v52  ;;  %v1640_v29 = vadd.f32 %v1638_v56, %v1624_v61  ;;  %v1654_v21 = vmul.f32 %v1650_v51, %v4580_v49  ;;  %v1682_v44 = vrot.slane %v4608_v9, %v4539_v60  ;;  %v4632_v49 = vld [vmem:[#allocation51_spill] sm:$0xff]  ;;  %v4638_v51 = vld [vmem:[#allocation76_spill] sm:$0xff] }
 0x257   : > { %v2032_v38 = vadd.f32 %v2030_v58, %v2016_v32  ;;  %v2208_v25 = vadd.f32 %v4623_v63, %v4622_v14  ;;  %v4626_v46 = vrot.slane %v4625_v30, %v4609_v45  ;;  %v1704_v42 = vmul.f32 %v4627_v53, %v1698_v41  ;;  %v4641_v22 = vld [vmem:[#allocation79_spill] sm:$0xff]  ;;  %v2261_v14 = vld [vmem:[%s4272_s4] sm:$0xff] }
 0x258   : > { %v2047_v4 = vadd.f32 %v4629_v6, %v4628_v1  ;;  %v2209_v16 = vadd.f32 %v4631_v11, %v4630_v13  ;;  %v4633_v8 = vrot.slane %v4625_v30, %v4539_v60  ;;  %v1656_v28 = vadd.f32 %v1654_v21, %v1640_v29 }
 0x259   : > { %v2222_v27 = vmul.f32 %v4626_v46, %v4624_v37  ;;  %v1670_v48 = vmul.f32 %v1666_v36, %v4582_v39  ;;  %v1706_v5 = vadd.f32 %v1704_v42, %v1529_v18  ;;  %v2231_v24 = vrot.slane %v2226_v19, %v4609_v45  ;;  %v4639_v45 = vld [vmem:[#allocation57_spill] sm:$0xff]  ;;  %v2264_v37 = vld [vmem:[%s4272_s4 + $0x18] sm:$0xff] }
 0x25a   : > { %v2223_v31 = vmul.f32 %v4633_v8, %v4632_v49  ;;  %v2235_v9 = vrot.slane %v2226_v19, %v4539_v60  ;;  %v2245_v54 = vsel %vm2244_vm11, %v2239_v55, %v2241_v2  ;;  %v2048_v7 = vadd.f32 %v4634_v15, %v2032_v38 }
 0x25b   : > { %v1528_v32 = vmul.f32 %v4615_v23, %v1522_v20  ;;  %v1672_v26 = vadd.f32 %v1670_v48, %v1656_v28  ;;  %v1697_v52 = vmul.f32 %v4635_v62, %v1682_v44  ;;  %v1903_v59 = vmul.f32 %v4637_v17, %v4636_v57 }
 0x25c   : > { %v2074_v33 = vadd.f32 %v4638_v51, %v2047_v4  ;;  %v2246_v39 = vsel %vm2244_vm11, %v2241_v2, %v2243_v40  ;;  %v2224_v47 = vadd.f32 %v2222_v27, %v2208_v25  ;;  %v4640_v41 = vrot.slane %v4639_v45, %v4539_v60  ;;  %v2255_v40 = vpop.permute.xlu1 %2254  ;;  %v2263_v25 = vld [vmem:[%s4272_s4 + $0x10] sm:$0xff] }
 0x25d   : > { %v2225_v50 = vadd.f32 %v2223_v31, %v2209_v16  ;;  %v1530_v43 = vadd.f32 %v1528_v32, %v1364_v10  ;;  %v1699_v58 = vadd.f32 %v1697_v52, %v1672_v26  ;;  %v1905_v23 = vadd.f32 %v1903_v59, %v1706_v5 }
 0x25e   : > { %v2073_v35 = vmul.f32 %v4632_v49, %v4640_v41  ;;  %v2249_v12 = vmul.f32 %v2245_v54, %v2231_v24  ;;  %v2250_v56 = vmul.f32 %v2246_v39, %v2235_v9  ;;  %v2080_v36 = vmul.f32 %v4164_v0, %v2074_v33 }
 0x25f   : > { %v1705_v34 = vmul.f32 %v4627_v53, %v1699_v58  ;;  %v1904_v60 = vmul.f32 %v4637_v17, %v4641_v22  ;;  %v4642_v63 = vmov 0.0  }
 0x260   : > { %v2075_v61 = vadd.f32 %v2073_v35, %v2048_v7  ;;  %v2251_v18 = vadd.f32 %v2249_v12, %v2224_v47  ;;  %v2252_v38 = vadd.f32 %v2250_v56, %v2225_v50  ;;  %v2082_v19 = vadd.f32 %v2080_v36, %v1905_v23 }
 0x261   : > { %v1707_v3 = vadd.f32 %v1705_v34, %v1530_v43 }
 0x262   : > { %v2081_v55 = vmul.f32 %v4164_v0, %v2075_v61  ;;  %v2257_v2 = vmul.f32 %v2255_v40, %v2251_v18  ;;  %v2258_v20 = vmul.f32 %v2255_v40, %v2252_v38  ;;  %v2262_v0 = vld [vmem:[%s4272_s4 + $0x8] sm:$0xff] }
 0x263   : > { %v1906_v10 = vadd.f32 %v1904_v60, %v1707_v3 }
 0x264   : > { %v2259_v21 = vadd.f32 %v2257_v2, %v2082_v19 }
 0x265   : > { %v2083_v29 = vadd.f32 %v2081_v55, %v1906_v10 }
 0x267   : > { %v2260_v44 = vadd.f32 %v2258_v20, %v2083_v29 }
 0x269   : > { %2498 = vmatprep.subr.msk.mxu1 %vm484_vm8, %v2260_v44 }
 0x26a   : > { %2499 = vmatpush1.msk.msra.mxu1 %vm484_vm8, %v2259_v21 }
 0x26b   : > { %2500 = vmatmul.mubr.msk.f32.vlgmr.msra.gmra.mxu1 %vm474_vm10, %v2261_v14 }
 0x26c   : > { %2353 = vmatprep.mubr.f32.mxu1 %v4642_v63 }
 0x26f   : > { %2501 = vmatmul.mubr.msk.f32.gmra.mxu1 %vm474_vm10, %v2262_v0 }
 0x270   : > { %2359 = vmatprep.mubr.f32.mxu1 %v4642_v63 }
 0x273   : > { %2502 = vmatmul.mubr.msk.f32.gmra.mxu1 %vm474_vm10, %v2263_v25 }
 0x274   : > { %2365 = vmatprep.mubr.f32.mxu1 %v4642_v63 }
 0x277   : > { %2503 = vmatmul.mubr.msk.f32.gmra.mxu1 %vm474_vm10, %v2264_v37 }
 0x32b   : > { %v2349_v30 = vpop.f32.mrf.mxu1 }
 0x32c   : > { %v2372_v46 = vadd.f32 3.0, %v2349_v30 }
 0x32d   : > { %v2351_v27 = vpop.f32.mrf.mxu1 }
 0x32e   : > { %v2380_v53 = vmax.f32 %v2372_v46, 0.0  ;;  %v2373_v42 = vadd.f32 3.0, %v2351_v27 }
 0x32f   : > { %v2355_v1 = vpop.f32.mrf.mxu1 }
 0x330   : > { %v2388_v6 = vmin.f32 %v2380_v53, 6.0  ;;  %v2381_v4 = vmax.f32 %v2373_v42, 0.0  ;;  %v2374_v13 = vadd.f32 3.0, %v2355_v1 }
 0x331   : > { %v2357_v11 = vpop.f32.mrf.mxu1 }
 0x332   : > { %v2396_v16 = vmul.f32 %v2388_v6, %v2349_v30  ;;  %v2389_v49 = vmin.f32 %v2381_v4, 6.0  ;;  %v2382_v8 = vmax.f32 %v2374_v13, 0.0  ;;  %v2375_v31 = vadd.f32 3.0, %v2357_v11 }
 0x333   : > { %v2361_v28 = vpop.f32.mrf.mxu1 }
 0x334   : > { %v2404_v48 = vmul.f32 0.16666667, %v2396_v16  ;;  %v2397_v5 = vmul.f32 %v2389_v49, %v2351_v27  ;;  %v2390_v24 = vmin.f32 %v2382_v8, 6.0  ;;  %v2383_v9 = vmax.f32 %v2375_v31, 0.0 }
 0x335   : > { %v2376_v54 = vadd.f32 3.0, %v2361_v28  ;;  %v2363_v15 = vpop.f32.mrf.mxu1 }
 0x336   : > { %2412 = vst [vmem:[%s4255_s16] sm:$0xff] %v2404_v48  ;;  %v2405_v7 = vmul.f32 0.16666667, %v2397_v5  ;;  %v2398_v32 = vmul.f32 %v2390_v24, %v2355_v1  ;;  %v2391_v26 = vmin.f32 %v2383_v9, 6.0  ;;  %v2377_v62 = vadd.f32 3.0, %v2363_v15 }
 0x337   : > { %v2384_v52 = vmax.f32 %v2376_v54, 0.0  ;;  %v2367_v57 = vpop.f32.mrf.mxu1 }
 0x338   : > { %2413 = vst [vmem:[%s4255_s16 + $0x8] sm:$0xff] %v2405_v7  ;;  %v2406_v17 = vmul.f32 0.16666667, %v2398_v32  ;;  %v2399_v59 = vmul.f32 %v2391_v26, %v2357_v11  ;;  %v2385_v51 = vmax.f32 %v2377_v62, 0.0  ;;  %v2378_v33 = vadd.f32 3.0, %v2367_v57 }
 0x339   : > { %v2392_v39 = vmin.f32 %v2384_v52, 6.0  ;;  %v2369_v47 = vpop.f32.mrf.mxu1 }
 0x33a   : > { %2414 = vst [vmem:[%s4255_s16 + $0x10] sm:$0xff] %v2406_v17  ;;  %v2407_v45 = vmul.f32 0.16666667, %v2399_v59  ;;  %v2393_v41 = vmin.f32 %v2385_v51, 6.0  ;;  %v2386_v35 = vmax.f32 %v2378_v33, 0.0  ;;  %v2379_v50 = vadd.f32 3.0, %v2369_v47 }
 0x33b   : > { %v2400_v43 = vmul.f32 %v2392_v39, %v2361_v28 }
 0x33c   : > { %2415 = vst [vmem:[%s4255_s16 + $0x18] sm:$0xff] %v2407_v45  ;;  %v2401_v58 = vmul.f32 %v2393_v41, %v2363_v15  ;;  %v2394_v23 = vmin.f32 %v2386_v35, 6.0  ;;  %v2387_v12 = vmax.f32 %v2379_v50, 0.0 }
 0x33d   : > { %v2408_v61 = vmul.f32 0.16666667, %v2400_v43 }
 0x33e   : > { %v2409_v56 = vmul.f32 0.16666667, %v2401_v58  ;;  %v2402_v34 = vmul.f32 %v2394_v23, %v2367_v57  ;;  %v2395_v36 = vmin.f32 %v2387_v12, 6.0 }
 0x33f   : > { %2416 = vst [vmem:[%s4255_s16 + $0x20] sm:$0xff] %v2408_v61 }
 0x340   : > { %2417 = vst [vmem:[%s4255_s16 + $0x28] sm:$0xff] %v2409_v56  ;;  %v2410_v18 = vmul.f32 0.16666667, %v2402_v34  ;;  %v2403_v38 = vmul.f32 %v2395_v36, %v2369_v47 }
 0x342   : > { %2418 = vst [vmem:[%s4255_s16 + $0x30] sm:$0xff] %v2410_v18  ;;  %v2411_v40 = vmul.f32 0.16666667, %v2403_v38 }
 0x344   : > { %2419 = vst [vmem:[%s4255_s16 + $0x38] sm:$0xff] %v2411_v40 }
 0x345 PF: > { %s16_s21 = sadd.s32 1, %s2579_s21  }
 0x346   : > { %p13_p4 = scmp.ge.s32.totalorder %s16_s21, 4  }
 0x348   :  { %15 = sbr.rel (!%p13_p4) target bundleno = 1 (0x1), region = 94 }

</bundles_post_ra>
